<compile_context>
chip_gen: v6e
topology: v6e:2x2x1
jax: 0.10.0
libtpu: 0.0.40
codegen_flags: <defaults>
</compile_context>

<pallas_src>
import functools
import math

import jax
import jax.numpy as jnp
from jax.experimental import pallas as pl
from jax.experimental.pallas import tpu as pltpu

# ----------------------------- config (small) --------------------------------
VOCAB = 100
MAX_POS = 32
HIDDEN = 32
N_HEADS = 4
HEAD_DIM = HIDDEN // N_HEADS
INTERMEDIATE = 64
N_LAYERS = 2
N_CLASSES = 3
LN_EPS = 1e-12
LOGIT_PAD = 128      # lane-dense classifier output; sliced to N_CLASSES outside


# ----------------------------- kernel helpers --------------------------------
def _gelu(x):
    # TODO(synk): HF BERT uses erf-based GELU; tanh approximation used here for
    # guaranteed Mosaic lowering (difference is ~1e-3 relative).
    c = math.sqrt(2.0 / math.pi)
    return 0.5 * x * (1.0 + jnp.tanh(c * (x + 0.044715 * x * x * x)))


def _layernorm(x, g, b):
    mean = jnp.mean(x, axis=-1, keepdims=True)
    xc = x - mean
    var = jnp.mean(xc * xc, axis=-1, keepdims=True)
    return xc * jax.lax.rsqrt(var + LN_EPS) * g + b


# ----------------------------- fused forward kernel --------------------------
def _fused_bert_kernel(
    emb_ref, mask_ref, eg_ref, eb_ref,
    wq_ref, bq_ref, wk_ref, bk_ref, wv_ref, bv_ref,
    wo_ref, bo_ref, g1_ref, b1_ref,
    wi_ref, bi_ref, wf_ref, bf_ref, g2_ref, b2_ref,
    pw_ref, pb_ref, ow_ref, ob_ref,
    logits_ref,
    attn_scratch,
    *, n_layers, n_heads, batch, seq,
):
    f32 = jnp.float32
    scale = 1.0 / math.sqrt(HEAD_DIM)

    # Embedding LayerNorm (no residual add, no zeros buffer).
    x = _layernorm(emb_ref[...], eg_ref[...], eb_ref[...])          # [B*S, H]

    for l in range(n_layers):
        # ---------------- multi-head self-attention ----------------
        for b in range(batch):
            r0 = b * seq
            x_b = x[r0:r0 + seq, :]                                  # [S, H] aligned slice
            bias = mask_ref[b]                                       # [1, S] additive mask
            attn_b = jnp.zeros((seq, HIDDEN), f32)
            for h in range(n_heads):
                idx = l * n_heads + h
                q = jnp.dot(x_b, wq_ref[idx], preferred_element_type=f32) + bq_ref[idx]
                k = jnp.dot(x_b, wk_ref[idx], preferred_element_type=f32) + bk_ref[idx]
                v = jnp.dot(x_b, wv_ref[idx], preferred_element_type=f32) + bv_ref[idx]
                s = jax.lax.dot_general(
                    q, k, (((1,), (1,)), ((), ())),
                    preferred_element_type=f32) * scale + bias       # [S, S]
                s = s - jnp.max(s, axis=-1, keepdims=True)
                p = jnp.exp(s)
                p = p / jnp.sum(p, axis=-1, keepdims=True)
                ctx = jnp.dot(p, v, preferred_element_type=f32)      # [S, Dh]
                # Per-head output projection accumulated in-register; avoids
                # materializing the head-concat (no unaligned lane slicing).
                attn_b = attn_b + jnp.dot(ctx, wo_ref[idx],
                                          preferred_element_type=f32)
            attn_scratch[pl.ds(r0, seq), :] = attn_b                 # aligned store
        attn = attn_scratch[...] + bo_ref[l]
        x = _layernorm(attn + x, g1_ref[l], b1_ref[l])

        # ---------------- feed-forward (GELU) ----------------
        hmid = _gelu(jnp.dot(x, wi_ref[l], preferred_element_type=f32) + bi_ref[l])
        ffn = jnp.dot(hmid, wf_ref[l], preferred_element_type=f32) + bf_ref[l]
        x = _layernorm(ffn + x, g2_ref[l], b2_ref[l])

    # ---------------- pooler (tanh) + classifier ----------------
    # Computed on all tokens so the final store is a full, lane-dense
    # [B*S, 128] slab (unmasked vst); the CLS rows / N_CLASSES columns are
    # selected by the wrapper.  Dropout(p=0.3) is identity at inference.
    pooled = jnp.tanh(jnp.dot(x, pw_ref[...], preferred_element_type=f32) + pb_ref[...])
    logits_ref[...] = (jnp.dot(pooled, ow_ref[...], preferred_element_type=f32)
                       + ob_ref[...])


# ----------------------------- parameters ------------------------------------
def init_params(key):
    keys = iter(jax.random.split(key, 256))

    def nrm(shape, std=0.02):
        return jax.random.normal(next(keys), shape, jnp.float32) * std

    p = {
        "word_emb": nrm((VOCAB, HIDDEN)),
        "pos_emb": nrm((MAX_POS, HIDDEN)),
        "type_emb": nrm((2, HIDDEN)),
        "emb_ln_g": jnp.ones((HIDDEN,), jnp.float32),
        "emb_ln_b": jnp.zeros((HIDDEN,), jnp.float32),
        "layers": [],
        "pool_w": nrm((HIDDEN, HIDDEN)),
        "pool_b": jnp.zeros((HIDDEN,), jnp.float32),
        "out_w": nrm((HIDDEN, N_CLASSES)),
        "out_b": jnp.zeros((N_CLASSES,), jnp.float32),
    }
    for _ in range(N_LAYERS):
        p["layers"].append({
            "wq": nrm((HIDDEN, HIDDEN)), "bq": jnp.zeros((HIDDEN,), jnp.float32),
            "wk": nrm((HIDDEN, HIDDEN)), "bk": jnp.zeros((HIDDEN,), jnp.float32),
            "wv": nrm((HIDDEN, HIDDEN)), "bv": jnp.zeros((HIDDEN,), jnp.float32),
            "wo": nrm((HIDDEN, HIDDEN)), "bo": jnp.zeros((HIDDEN,), jnp.float32),
            "ln1_g": jnp.ones((HIDDEN,), jnp.float32),
            "ln1_b": jnp.zeros((HIDDEN,), jnp.float32),
            "wi": nrm((HIDDEN, INTERMEDIATE)),
            "bi": jnp.zeros((INTERMEDIATE,), jnp.float32),
            "wf": nrm((INTERMEDIATE, HIDDEN)),
            "bf": jnp.zeros((HIDDEN,), jnp.float32),
            "ln2_g": jnp.ones((HIDDEN,), jnp.float32),
            "ln2_b": jnp.zeros((HIDDEN,), jnp.float32),
        })
    return p


def _pack_params(p):
    """Stack per-layer weights and pre-split attention heads so the fused kernel
    only ever does leading-axis ref indexing and tile-aligned slices."""
    L, nH, Dh, H, I = N_LAYERS, N_HEADS, HEAD_DIM, HIDDEN, INTERMEDIATE
    layers = p["layers"]

    def w_heads(w):          # [H, H] -> [nH, H, Dh]  (split output dim by head)
        return w.reshape(H, nH, Dh).transpose(1, 0, 2)

    def b_heads(b):          # [H] -> [nH, 1, Dh]
        return b.reshape(nH, 1, Dh)

    def stack(fn):
        return jnp.stack([fn(l) for l in layers], axis=0)

    return {
        "wq": stack(lambda l: w_heads(l["wq"])).reshape(L * nH, H, Dh),
        "bq": stack(lambda l: b_heads(l["bq"])).reshape(L * nH, 1, Dh),
        "wk": stack(lambda l: w_heads(l["wk"])).reshape(L * nH, H, Dh),
        "bk": stack(lambda l: b_heads(l["bk"])).reshape(L * nH, 1, Dh),
        "wv": stack(lambda l: w_heads(l["wv"])).reshape(L * nH, H, Dh),
        "bv": stack(lambda l: b_heads(l["bv"])).reshape(L * nH, 1, Dh),
        "wo": stack(lambda l: l["wo"].reshape(nH, Dh, H)).reshape(L * nH, Dh, H),
        "bo": stack(lambda l: l["bo"].reshape(1, H)),
        "ln1_g": stack(lambda l: l["ln1_g"].reshape(1, H)),
        "ln1_b": stack(lambda l: l["ln1_b"].reshape(1, H)),
        "wi": stack(lambda l: l["wi"]),
        "bi": stack(lambda l: l["bi"].reshape(1, I)),
        "wf": stack(lambda l: l["wf"]),
        "bf": stack(lambda l: l["bf"].reshape(1, H)),
        "ln2_g": stack(lambda l: l["ln2_g"].reshape(1, H)),
        "ln2_b": stack(lambda l: l["ln2_b"].reshape(1, H)),
        # Pad classifier to a 128-wide lane slab (zeros in the padded columns).
        "out_w_pad": jnp.zeros((H, LOGIT_PAD), jnp.float32)
                       .at[:, :N_CLASSES].set(p["out_w"]),
        "out_b_pad": jnp.zeros((1, LOGIT_PAD), jnp.float32)
                       .at[0, :N_CLASSES].set(p["out_b"]),
    }


# ----------------------------- forward ----------------------------------------
def sentiment_classifier_forward(params, input_ids, attention_mask):
    B, S = input_ids.shape
    H = HIDDEN

    # Embedding gather stays in plain JAX glue (data-dependent table lookup).
    emb = (params["word_emb"][input_ids]
           + params["pos_emb"][:S][None, :, :]
           + params["type_emb"][0][None, None, :])
    emb = emb.reshape(B * S, H).astype(jnp.float32)

    # Additive attention bias: 0 where attended, -1e4 where masked.
    mask_bias = ((1.0 - attention_mask.astype(jnp.float32)) * -10000.0
                 ).reshape(B, 1, S)

    pk = _pack_params(params)

    kernel = functools.partial(
        _fused_bert_kernel,
        n_layers=N_LAYERS, n_heads=N_HEADS, batch=B, seq=S)

    logits_full = pl.pallas_call(
        kernel,
        out_shape=jax.ShapeDtypeStruct((B * S, LOGIT_PAD), jnp.float32),
        scratch_shapes=[pltpu.VMEM((B * S, H), jnp.float32)],
    )(
        emb, mask_bias,
        params["emb_ln_g"].reshape(1, H), params["emb_ln_b"].reshape(1, H),
        pk["wq"], pk["bq"], pk["wk"], pk["bk"], pk["wv"], pk["bv"],
        pk["wo"], pk["bo"], pk["ln1_g"], pk["ln1_b"],
        pk["wi"], pk["bi"], pk["wf"], pk["bf"], pk["ln2_g"], pk["ln2_b"],
        params["pool_w"], params["pool_b"].reshape(1, H),
        pk["out_w_pad"], pk["out_b_pad"],
    )

    # Select the [CLS] row per batch element and drop the lane padding.
    return logits_full.reshape(B, S, LOGIT_PAD)[:, 0, :N_CLASSES]


# ----------------------------- main -------------------------------------------
if __name__ == "__main__":
    key = jax.random.PRNGKey(0)
    pkey, ikey = jax.random.split(key)
    params = init_params(pkey)

    B, S = 2, 8
    input_ids = jax.random.randint(ikey, (B, S), 0, VOCAB, dtype=jnp.int32)
    attention_mask = jnp.ones((B, S), jnp.int32).at[1, 6:].set(0)

    fwd = jax.jit(sentiment_classifier_forward)
    logits = fwd(params, input_ids, attention_mask)
    jax.block_until_ready(logits)

    assert logits.shape == (B, N_CLASSES)
    assert bool(jnp.all(jnp.isfinite(logits)))
    print("KERNEL_OK")
</pallas_src>

<mosaic_0001>
module attributes {stable_mosaic.version = 11 : i64} {
  func.func @_fused_bert_kernel(%arg0: memref<16x32xf32, #tpu.memory_space<vmem>>, %arg1: memref<2x1x8xf32, #tpu.memory_space<vmem>>, %arg2: memref<1x32xf32, #tpu.memory_space<vmem>>, %arg3: memref<1x32xf32, #tpu.memory_space<vmem>>, %arg4: memref<8x32x8xf32, #tpu.memory_space<vmem>>, %arg5: memref<8x1x8xf32, #tpu.memory_space<vmem>>, %arg6: memref<8x32x8xf32, #tpu.memory_space<vmem>>, %arg7: memref<8x1x8xf32, #tpu.memory_space<vmem>>, %arg8: memref<8x32x8xf32, #tpu.memory_space<vmem>>, %arg9: memref<8x1x8xf32, #tpu.memory_space<vmem>>, %arg10: memref<8x8x32xf32, #tpu.memory_space<vmem>>, %arg11: memref<2x1x32xf32, #tpu.memory_space<vmem>>, %arg12: memref<2x1x32xf32, #tpu.memory_space<vmem>>, %arg13: memref<2x1x32xf32, #tpu.memory_space<vmem>>, %arg14: memref<2x32x64xf32, #tpu.memory_space<vmem>>, %arg15: memref<2x1x64xf32, #tpu.memory_space<vmem>>, %arg16: memref<2x64x32xf32, #tpu.memory_space<vmem>>, %arg17: memref<2x1x32xf32, #tpu.memory_space<vmem>>, %arg18: memref<2x1x32xf32, #tpu.memory_space<vmem>>, %arg19: memref<2x1x32xf32, #tpu.memory_space<vmem>>, %arg20: memref<32x32xf32, #tpu.memory_space<vmem>>, %arg21: memref<1x32xf32, #tpu.memory_space<vmem>>, %arg22: memref<32x128xf32, #tpu.memory_space<vmem>>, %arg23: memref<1x128xf32, #tpu.memory_space<vmem>>, %arg24: memref<16x128xf32, #tpu.memory_space<vmem>>, %arg25: memref<16x32xf32, #tpu.memory_space<vmem>>) attributes {dimension_semantics = [], scalar_prefetch = 0 : i64, scratch_operands = 1 : i64, tpu.core_type = #tpu.core_type<tc>} {
    %c0 = arith.constant 0 : index
    %c0_0 = arith.constant 0 : index
    %0 = vector.load %arg0[%c0, %c0_0] : memref<16x32xf32, #tpu.memory_space<vmem>>, vector<16x32xf32>
    %c0_1 = arith.constant 0 : index
    %c0_2 = arith.constant 0 : index
    %1 = vector.load %arg2[%c0_1, %c0_2] : memref<1x32xf32, #tpu.memory_space<vmem>>, vector<1x32xf32>
    %c0_3 = arith.constant 0 : index
    %c0_4 = arith.constant 0 : index
    %2 = vector.load %arg3[%c0_3, %c0_4] : memref<1x32xf32, #tpu.memory_space<vmem>>, vector<1x32xf32>
    %cst = arith.constant dense<0.000000e+00> : vector<16xf32>
    %3 = vector.multi_reduction <add>, %0, %cst [1] : vector<16x32xf32> to vector<16xf32>
    %4 = vector.shape_cast %3 : vector<16xf32> to vector<16x1xf32>
    %cst_5 = arith.constant 3.200000e+01 : f32
    %5 = vector.broadcast %cst_5 : f32 to vector<16x1xf32>
    %6 = arith.divf %4, %5 : vector<16x1xf32>
    %7 = vector.broadcast %6 : vector<16x1xf32> to vector<16x32xf32>
    %8 = arith.subf %0, %7 : vector<16x32xf32>
    %9 = arith.mulf %8, %8 : vector<16x32xf32>
    %cst_6 = arith.constant dense<0.000000e+00> : vector<16xf32>
    %10 = vector.multi_reduction <add>, %9, %cst_6 [1] : vector<16x32xf32> to vector<16xf32>
    %11 = vector.shape_cast %10 : vector<16xf32> to vector<16x1xf32>
    %cst_7 = arith.constant 3.200000e+01 : f32
    %12 = vector.broadcast %cst_7 : f32 to vector<16x1xf32>
    %13 = arith.divf %11, %12 : vector<16x1xf32>
    %cst_8 = arith.constant 9.99999996E-13 : f32
    %14 = vector.broadcast %cst_8 : f32 to vector<16x1xf32>
    %15 = arith.addf %13, %14 : vector<16x1xf32>
    %16 = math.rsqrt %15 : vector<16x1xf32>
    %17 = vector.broadcast %16 : vector<16x1xf32> to vector<16x32xf32>
    %18 = arith.mulf %8, %17 : vector<16x32xf32>
    %19 = vector.broadcast %1 : vector<1x32xf32> to vector<16x32xf32>
    %20 = arith.mulf %18, %19 : vector<16x32xf32>
    %21 = vector.broadcast %2 : vector<1x32xf32> to vector<16x32xf32>
    %22 = arith.addf %20, %21 : vector<16x32xf32>
    %23 = vector.extract_strided_slice %22 {offsets = [0, 0], sizes = [8, 32], strides = [1, 1]} : vector<16x32xf32> to vector<8x32xf32>
    %c0_9 = arith.constant 0 : index
    %c0_10 = arith.constant 0 : index
    %c0_11 = arith.constant 0 : index
    %24 = vector.load %arg1[%c0_9, %c0_10, %c0_11] : memref<2x1x8xf32, #tpu.memory_space<vmem>>, vector<1x1x8xf32>
    %25 = vector.shape_cast %24 : vector<1x1x8xf32> to vector<1x8xf32>
    %cst_12 = arith.constant 0.000000e+00 : f32
    %26 = vector.broadcast %cst_12 : f32 to vector<8x32xf32>
    %c0_13 = arith.constant 0 : index
    %c0_14 = arith.constant 0 : index
    %c0_15 = arith.constant 0 : index
    %27 = vector.load %arg4[%c0_13, %c0_14, %c0_15] : memref<8x32x8xf32, #tpu.memory_space<vmem>>, vector<1x32x8xf32>
    %28 = vector.shape_cast %27 : vector<1x32x8xf32> to vector<32x8xf32>
    %cst_16 = arith.constant dense<0.000000e+00> : vector<8x8xf32>
    %29 = tpu.matmul %23, %28, %cst_16 {dimension_numbers = #tpu.dot_dimension_numbers<[1], [0], [0], [1], [0, 0, 1, 1], [], []>} : vector<8x32xf32>, vector<32x8xf32>, vector<8x8xf32> -> vector<8x8xf32>
    %c0_17 = arith.constant 0 : index
    %c0_18 = arith.constant 0 : index
    %c0_19 = arith.constant 0 : index
    %30 = vector.load %arg5[%c0_17, %c0_18, %c0_19] : memref<8x1x8xf32, #tpu.memory_space<vmem>>, vector<1x1x8xf32>
    %31 = vector.shape_cast %30 : vector<1x1x8xf32> to vector<1x8xf32>
    %32 = vector.broadcast %31 : vector<1x8xf32> to vector<8x8xf32>
    %33 = arith.addf %29, %32 : vector<8x8xf32>
    %c0_20 = arith.constant 0 : index
    %c0_21 = arith.constant 0 : index
    %c0_22 = arith.constant 0 : index
    %34 = vector.load %arg6[%c0_20, %c0_21, %c0_22] : memref<8x32x8xf32, #tpu.memory_space<vmem>>, vector<1x32x8xf32>
    %35 = vector.shape_cast %34 : vector<1x32x8xf32> to vector<32x8xf32>
    %cst_23 = arith.constant dense<0.000000e+00> : vector<8x8xf32>
    %36 = tpu.matmul %23, %35, %cst_23 {dimension_numbers = #tpu.dot_dimension_numbers<[1], [0], [0], [1], [0, 0, 1, 1], [], []>} : vector<8x32xf32>, vector<32x8xf32>, vector<8x8xf32> -> vector<8x8xf32>
    %c0_24 = arith.constant 0 : index
    %c0_25 = arith.constant 0 : index
    %c0_26 = arith.constant 0 : index
    %37 = vector.load %arg7[%c0_24, %c0_25, %c0_26] : memref<8x1x8xf32, #tpu.memory_space<vmem>>, vector<1x1x8xf32>
    %38 = vector.shape_cast %37 : vector<1x1x8xf32> to vector<1x8xf32>
    %39 = vector.broadcast %38 : vector<1x8xf32> to vector<8x8xf32>
    %40 = arith.addf %36, %39 : vector<8x8xf32>
    %c0_27 = arith.constant 0 : index
    %c0_28 = arith.constant 0 : index
    %c0_29 = arith.constant 0 : index
    %41 = vector.load %arg8[%c0_27, %c0_28, %c0_29] : memref<8x32x8xf32, #tpu.memory_space<vmem>>, vector<1x32x8xf32>
    %42 = vector.shape_cast %41 : vector<1x32x8xf32> to vector<32x8xf32>
    %cst_30 = arith.constant dense<0.000000e+00> : vector<8x8xf32>
    %43 = tpu.matmul %23, %42, %cst_30 {dimension_numbers = #tpu.dot_dimension_numbers<[1], [0], [0], [1], [0, 0, 1, 1], [], []>} : vector<8x32xf32>, vector<32x8xf32>, vector<8x8xf32> -> vector<8x8xf32>
    %c0_31 = arith.constant 0 : index
    %c0_32 = arith.constant 0 : index
    %c0_33 = arith.constant 0 : index
    %44 = vector.load %arg9[%c0_31, %c0_32, %c0_33] : memref<8x1x8xf32, #tpu.memory_space<vmem>>, vector<1x1x8xf32>
    %45 = vector.shape_cast %44 : vector<1x1x8xf32> to vector<1x8xf32>
    %46 = vector.broadcast %45 : vector<1x8xf32> to vector<8x8xf32>
    %47 = arith.addf %43, %46 : vector<8x8xf32>
    %cst_34 = arith.constant dense<0.000000e+00> : vector<8x8xf32>
    %48 = tpu.matmul %33, %40, %cst_34 {dimension_numbers = #tpu.dot_dimension_numbers<[1], [1], [0], [0], [0, 0, 1, 0], [], []>} : vector<8x8xf32>, vector<8x8xf32>, vector<8x8xf32> -> vector<8x8xf32>
    %cst_35 = arith.constant 0.353553385 : f32
    %49 = vector.broadcast %cst_35 : f32 to vector<8x8xf32>
    %50 = arith.mulf %48, %49 : vector<8x8xf32>
    %51 = vector.broadcast %25 : vector<1x8xf32> to vector<8x8xf32>
    %52 = arith.addf %50, %51 : vector<8x8xf32>
    %cst_36 = arith.constant dense<0xFF800000> : vector<8xf32>
    %53 = vector.multi_reduction <maximumf>, %52, %cst_36 [1] : vector<8x8xf32> to vector<8xf32>
    %54 = vector.shape_cast %53 : vector<8xf32> to vector<8x1xf32>
    %55 = vector.broadcast %54 : vector<8x1xf32> to vector<8x8xf32>
    %56 = arith.subf %52, %55 : vector<8x8xf32>
    %57 = math.exp %56 : vector<8x8xf32>
    %cst_37 = arith.constant dense<0.000000e+00> : vector<8xf32>
    %58 = vector.multi_reduction <add>, %57, %cst_37 [1] : vector<8x8xf32> to vector<8xf32>
    %59 = vector.shape_cast %58 : vector<8xf32> to vector<8x1xf32>
    %60 = vector.broadcast %59 : vector<8x1xf32> to vector<8x8xf32>
    %61 = arith.divf %57, %60 : vector<8x8xf32>
    %cst_38 = arith.constant dense<0.000000e+00> : vector<8x8xf32>
    %62 = tpu.matmul %61, %47, %cst_38 {dimension_numbers = #tpu.dot_dimension_numbers<[1], [0], [0], [1], [0, 0, 1, 1], [], []>} : vector<8x8xf32>, vector<8x8xf32>, vector<8x8xf32> -> vector<8x8xf32>
    %c0_39 = arith.constant 0 : index
    %c0_40 = arith.constant 0 : index
    %c0_41 = arith.constant 0 : index
    %63 = vector.load %arg10[%c0_39, %c0_40, %c0_41] : memref<8x8x32xf32, #tpu.memory_space<vmem>>, vector<1x8x32xf32>
    %64 = vector.shape_cast %63 : vector<1x8x32xf32> to vector<8x32xf32>
    %cst_42 = arith.constant dense<0.000000e+00> : vector<8x32xf32>
    %65 = tpu.matmul %62, %64, %cst_42 {dimension_numbers = #tpu.dot_dimension_numbers<[1], [0], [0], [1], [0, 0, 1, 1], [], []>} : vector<8x8xf32>, vector<8x32xf32>, vector<8x32xf32> -> vector<8x32xf32>
    %66 = arith.addf %26, %65 : vector<8x32xf32>
    %c1 = arith.constant 1 : index
    %c0_43 = arith.constant 0 : index
    %c0_44 = arith.constant 0 : index
    %67 = vector.load %arg4[%c1, %c0_43, %c0_44] : memref<8x32x8xf32, #tpu.memory_space<vmem>>, vector<1x32x8xf32>
    %68 = vector.shape_cast %67 : vector<1x32x8xf32> to vector<32x8xf32>
    %cst_45 = arith.constant dense<0.000000e+00> : vector<8x8xf32>
    %69 = tpu.matmul %23, %68, %cst_45 {dimension_numbers = #tpu.dot_dimension_numbers<[1], [0], [0], [1], [0, 0, 1, 1], [], []>} : vector<8x32xf32>, vector<32x8xf32>, vector<8x8xf32> -> vector<8x8xf32>
    %c1_46 = arith.constant 1 : index
    %c0_47 = arith.constant 0 : index
    %c0_48 = arith.constant 0 : index
    %70 = vector.load %arg5[%c1_46, %c0_47, %c0_48] : memref<8x1x8xf32, #tpu.memory_space<vmem>>, vector<1x1x8xf32>
    %71 = vector.shape_cast %70 : vector<1x1x8xf32> to vector<1x8xf32>
    %72 = vector.broadcast %71 : vector<1x8xf32> to vector<8x8xf32>
    %73 = arith.addf %69, %72 : vector<8x8xf32>
    %c1_49 = arith.constant 1 : index
    %c0_50 = arith.constant 0 : index
    %c0_51 = arith.constant 0 : index
    %74 = vector.load %arg6[%c1_49, %c0_50, %c0_51] : memref<8x32x8xf32, #tpu.memory_space<vmem>>, vector<1x32x8xf32>
    %75 = vector.shape_cast %74 : vector<1x32x8xf32> to vector<32x8xf32>
    %cst_52 = arith.constant dense<0.000000e+00> : vector<8x8xf32>
    %76 = tpu.matmul %23, %75, %cst_52 {dimension_numbers = #tpu.dot_dimension_numbers<[1], [0], [0], [1], [0, 0, 1, 1], [], []>} : vector<8x32xf32>, vector<32x8xf32>, vector<8x8xf32> -> vector<8x8xf32>
    %c1_53 = arith.constant 1 : index
    %c0_54 = arith.constant 0 : index
    %c0_55 = arith.constant 0 : index
    %77 = vector.load %arg7[%c1_53, %c0_54, %c0_55] : memref<8x1x8xf32, #tpu.memory_space<vmem>>, vector<1x1x8xf32>
    %78 = vector.shape_cast %77 : vector<1x1x8xf32> to vector<1x8xf32>
    %79 = vector.broadcast %78 : vector<1x8xf32> to vector<8x8xf32>
    %80 = arith.addf %76, %79 : vector<8x8xf32>
    %c1_56 = arith.constant 1 : index
    %c0_57 = arith.constant 0 : index
    %c0_58 = arith.constant 0 : index
    %81 = vector.load %arg8[%c1_56, %c0_57, %c0_58] : memref<8x32x8xf32, #tpu.memory_space<vmem>>, vector<1x32x8xf32>
    %82 = vector.shape_cast %81 : vector<1x32x8xf32> to vector<32x8xf32>
    %cst_59 = arith.constant dense<0.000000e+00> : vector<8x8xf32>
    %83 = tpu.matmul %23, %82, %cst_59 {dimension_numbers = #tpu.dot_dimension_numbers<[1], [0], [0], [1], [0, 0, 1, 1], [], []>} : vector<8x32xf32>, vector<32x8xf32>, vector<8x8xf32> -> vector<8x8xf32>
    %c1_60 = arith.constant 1 : index
    %c0_61 = arith.constant 0 : index
    %c0_62 = arith.constant 0 : index
    %84 = vector.load %arg9[%c1_60, %c0_61, %c0_62] : memref<8x1x8xf32, #tpu.memory_space<vmem>>, vector<1x1x8xf32>
    %85 = vector.shape_cast %84 : vector<1x1x8xf32> to vector<1x8xf32>
    %86 = vector.broadcast %85 : vector<1x8xf32> to vector<8x8xf32>
    %87 = arith.addf %83, %86 : vector<8x8xf32>
    %cst_63 = arith.constant dense<0.000000e+00> : vector<8x8xf32>
    %88 = tpu.matmul %73, %80, %cst_63 {dimension_numbers = #tpu.dot_dimension_numbers<[1], [1], [0], [0], [0, 0, 1, 0], [], []>} : vector<8x8xf32>, vector<8x8xf32>, vector<8x8xf32> -> vector<8x8xf32>
    %cst_64 = arith.constant 0.353553385 : f32
    %89 = vector.broadcast %cst_64 : f32 to vector<8x8xf32>
    %90 = arith.mulf %88, %89 : vector<8x8xf32>
    %91 = vector.broadcast %25 : vector<1x8xf32> to vector<8x8xf32>
    %92 = arith.addf %90, %91 : vector<8x8xf32>
    %cst_65 = arith.constant dense<0xFF800000> : vector<8xf32>
    %93 = vector.multi_reduction <maximumf>, %92, %cst_65 [1] : vector<8x8xf32> to vector<8xf32>
    %94 = vector.shape_cast %93 : vector<8xf32> to vector<8x1xf32>
    %95 = vector.broadcast %94 : vector<8x1xf32> to vector<8x8xf32>
    %96 = arith.subf %92, %95 : vector<8x8xf32>
    %97 = math.exp %96 : vector<8x8xf32>
    %cst_66 = arith.constant dense<0.000000e+00> : vector<8xf32>
    %98 = vector.multi_reduction <add>, %97, %cst_66 [1] : vector<8x8xf32> to vector<8xf32>
    %99 = vector.shape_cast %98 : vector<8xf32> to vector<8x1xf32>
    %100 = vector.broadcast %99 : vector<8x1xf32> to vector<8x8xf32>
    %101 = arith.divf %97, %100 : vector<8x8xf32>
    %cst_67 = arith.constant dense<0.000000e+00> : vector<8x8xf32>
    %102 = tpu.matmul %101, %87, %cst_67 {dimension_numbers = #tpu.dot_dimension_numbers<[1], [0], [0], [1], [0, 0, 1, 1], [], []>} : vector<8x8xf32>, vector<8x8xf32>, vector<8x8xf32> -> vector<8x8xf32>
    %c1_68 = arith.constant 1 : index
    %c0_69 = arith.constant 0 : index
    %c0_70 = arith.constant 0 : index
    %103 = vector.load %arg10[%c1_68, %c0_69, %c0_70] : memref<8x8x32xf32, #tpu.memory_space<vmem>>, vector<1x8x32xf32>
    %104 = vector.shape_cast %103 : vector<1x8x32xf32> to vector<8x32xf32>
    %cst_71 = arith.constant dense<0.000000e+00> : vector<8x32xf32>
    %105 = tpu.matmul %102, %104, %cst_71 {dimension_numbers = #tpu.dot_dimension_numbers<[1], [0], [0], [1], [0, 0, 1, 1], [], []>} : vector<8x8xf32>, vector<8x32xf32>, vector<8x32xf32> -> vector<8x32xf32>
    %106 = arith.addf %66, %105 : vector<8x32xf32>
    %c2 = arith.constant 2 : index
    %c0_72 = arith.constant 0 : index
    %c0_73 = arith.constant 0 : index
    %107 = vector.load %arg4[%c2, %c0_72, %c0_73] : memref<8x32x8xf32, #tpu.memory_space<vmem>>, vector<1x32x8xf32>
    %108 = vector.shape_cast %107 : vector<1x32x8xf32> to vector<32x8xf32>
    %cst_74 = arith.constant dense<0.000000e+00> : vector<8x8xf32>
    %109 = tpu.matmul %23, %108, %cst_74 {dimension_numbers = #tpu.dot_dimension_numbers<[1], [0], [0], [1], [0, 0, 1, 1], [], []>} : vector<8x32xf32>, vector<32x8xf32>, vector<8x8xf32> -> vector<8x8xf32>
    %c2_75 = arith.constant 2 : index
    %c0_76 = arith.constant 0 : index
    %c0_77 = arith.constant 0 : index
    %110 = vector.load %arg5[%c2_75, %c0_76, %c0_77] : memref<8x1x8xf32, #tpu.memory_space<vmem>>, vector<1x1x8xf32>
    %111 = vector.shape_cast %110 : vector<1x1x8xf32> to vector<1x8xf32>
    %112 = vector.broadcast %111 : vector<1x8xf32> to vector<8x8xf32>
    %113 = arith.addf %109, %112 : vector<8x8xf32>
    %c2_78 = arith.constant 2 : index
    %c0_79 = arith.constant 0 : index
    %c0_80 = arith.constant 0 : index
    %114 = vector.load %arg6[%c2_78, %c0_79, %c0_80] : memref<8x32x8xf32, #tpu.memory_space<vmem>>, vector<1x32x8xf32>
    %115 = vector.shape_cast %114 : vector<1x32x8xf32> to vector<32x8xf32>
    %cst_81 = arith.constant dense<0.000000e+00> : vector<8x8xf32>
    %116 = tpu.matmul %23, %115, %cst_81 {dimension_numbers = #tpu.dot_dimension_numbers<[1], [0], [0], [1], [0, 0, 1, 1], [], []>} : vector<8x32xf32>, vector<32x8xf32>, vector<8x8xf32> -> vector<8x8xf32>
    %c2_82 = arith.constant 2 : index
    %c0_83 = arith.constant 0 : index
    %c0_84 = arith.constant 0 : index
    %117 = vector.load %arg7[%c2_82, %c0_83, %c0_84] : memref<8x1x8xf32, #tpu.memory_space<vmem>>, vector<1x1x8xf32>
    %118 = vector.shape_cast %117 : vector<1x1x8xf32> to vector<1x8xf32>
    %119 = vector.broadcast %118 : vector<1x8xf32> to vector<8x8xf32>
    %120 = arith.addf %116, %119 : vector<8x8xf32>
    %c2_85 = arith.constant 2 : index
    %c0_86 = arith.constant 0 : index
    %c0_87 = arith.constant 0 : index
    %121 = vector.load %arg8[%c2_85, %c0_86, %c0_87] : memref<8x32x8xf32, #tpu.memory_space<vmem>>, vector<1x32x8xf32>
    %122 = vector.shape_cast %121 : vector<1x32x8xf32> to vector<32x8xf32>
    %cst_88 = arith.constant dense<0.000000e+00> : vector<8x8xf32>
    %123 = tpu.matmul %23, %122, %cst_88 {dimension_numbers = #tpu.dot_dimension_numbers<[1], [0], [0], [1], [0, 0, 1, 1], [], []>} : vector<8x32xf32>, vector<32x8xf32>, vector<8x8xf32> -> vector<8x8xf32>
    %c2_89 = arith.constant 2 : index
    %c0_90 = arith.constant 0 : index
    %c0_91 = arith.constant 0 : index
    %124 = vector.load %arg9[%c2_89, %c0_90, %c0_91] : memref<8x1x8xf32, #tpu.memory_space<vmem>>, vector<1x1x8xf32>
    %125 = vector.shape_cast %124 : vector<1x1x8xf32> to vector<1x8xf32>
    %126 = vector.broadcast %125 : vector<1x8xf32> to vector<8x8xf32>
    %127 = arith.addf %123, %126 : vector<8x8xf32>
    %cst_92 = arith.constant dense<0.000000e+00> : vector<8x8xf32>
    %128 = tpu.matmul %113, %120, %cst_92 {dimension_numbers = #tpu.dot_dimension_numbers<[1], [1], [0], [0], [0, 0, 1, 0], [], []>} : vector<8x8xf32>, vector<8x8xf32>, vector<8x8xf32> -> vector<8x8xf32>
    %cst_93 = arith.constant 0.353553385 : f32
    %129 = vector.broadcast %cst_93 : f32 to vector<8x8xf32>
    %130 = arith.mulf %128, %129 : vector<8x8xf32>
    %131 = vector.broadcast %25 : vector<1x8xf32> to vector<8x8xf32>
    %132 = arith.addf %130, %131 : vector<8x8xf32>
    %cst_94 = arith.constant dense<0xFF800000> : vector<8xf32>
    %133 = vector.multi_reduction <maximumf>, %132, %cst_94 [1] : vector<8x8xf32> to vector<8xf32>
    %134 = vector.shape_cast %133 : vector<8xf32> to vector<8x1xf32>
    %135 = vector.broadcast %134 : vector<8x1xf32> to vector<8x8xf32>
    %136 = arith.subf %132, %135 : vector<8x8xf32>
    %137 = math.exp %136 : vector<8x8xf32>
    %cst_95 = arith.constant dense<0.000000e+00> : vector<8xf32>
    %138 = vector.multi_reduction <add>, %137, %cst_95 [1] : vector<8x8xf32> to vector<8xf32>
    %139 = vector.shape_cast %138 : vector<8xf32> to vector<8x1xf32>
    %140 = vector.broadcast %139 : vector<8x1xf32> to vector<8x8xf32>
    %141 = arith.divf %137, %140 : vector<8x8xf32>
    %cst_96 = arith.constant dense<0.000000e+00> : vector<8x8xf32>
    %142 = tpu.matmul %141, %127, %cst_96 {dimension_numbers = #tpu.dot_dimension_numbers<[1], [0], [0], [1], [0, 0, 1, 1], [], []>} : vector<8x8xf32>, vector<8x8xf32>, vector<8x8xf32> -> vector<8x8xf32>
    %c2_97 = arith.constant 2 : index
    %c0_98 = arith.constant 0 : index
    %c0_99 = arith.constant 0 : index
    %143 = vector.load %arg10[%c2_97, %c0_98, %c0_99] : memref<8x8x32xf32, #tpu.memory_space<vmem>>, vector<1x8x32xf32>
    %144 = vector.shape_cast %143 : vector<1x8x32xf32> to vector<8x32xf32>
    %cst_100 = arith.constant dense<0.000000e+00> : vector<8x32xf32>
    %145 = tpu.matmul %142, %144, %cst_100 {dimension_numbers = #tpu.dot_dimension_numbers<[1], [0], [0], [1], [0, 0, 1, 1], [], []>} : vector<8x8xf32>, vector<8x32xf32>, vector<8x32xf32> -> vector<8x32xf32>
    %146 = arith.addf %106, %145 : vector<8x32xf32>
    %c3 = arith.constant 3 : index
    %c0_101 = arith.constant 0 : index
    %c0_102 = arith.constant 0 : index
    %147 = vector.load %arg4[%c3, %c0_101, %c0_102] : memref<8x32x8xf32, #tpu.memory_space<vmem>>, vector<1x32x8xf32>
    %148 = vector.shape_cast %147 : vector<1x32x8xf32> to vector<32x8xf32>
    %cst_103 = arith.constant dense<0.000000e+00> : vector<8x8xf32>
    %149 = tpu.matmul %23, %148, %cst_103 {dimension_numbers = #tpu.dot_dimension_numbers<[1], [0], [0], [1], [0, 0, 1, 1], [], []>} : vector<8x32xf32>, vector<32x8xf32>, vector<8x8xf32> -> vector<8x8xf32>
    %c3_104 = arith.constant 3 : index
    %c0_105 = arith.constant 0 : index
    %c0_106 = arith.constant 0 : index
    %150 = vector.load %arg5[%c3_104, %c0_105, %c0_106] : memref<8x1x8xf32, #tpu.memory_space<vmem>>, vector<1x1x8xf32>
    %151 = vector.shape_cast %150 : vector<1x1x8xf32> to vector<1x8xf32>
    %152 = vector.broadcast %151 : vector<1x8xf32> to vector<8x8xf32>
    %153 = arith.addf %149, %152 : vector<8x8xf32>
    %c3_107 = arith.constant 3 : index
    %c0_108 = arith.constant 0 : index
    %c0_109 = arith.constant 0 : index
    %154 = vector.load %arg6[%c3_107, %c0_108, %c0_109] : memref<8x32x8xf32, #tpu.memory_space<vmem>>, vector<1x32x8xf32>
    %155 = vector.shape_cast %154 : vector<1x32x8xf32> to vector<32x8xf32>
    %cst_110 = arith.constant dense<0.000000e+00> : vector<8x8xf32>
    %156 = tpu.matmul %23, %155, %cst_110 {dimension_numbers = #tpu.dot_dimension_numbers<[1], [0], [0], [1], [0, 0, 1, 1], [], []>} : vector<8x32xf32>, vector<32x8xf32>, vector<8x8xf32> -> vector<8x8xf32>
    %c3_111 = arith.constant 3 : index
    %c0_112 = arith.constant 0 : index
    %c0_113 = arith.constant 0 : index
    %157 = vector.load %arg7[%c3_111, %c0_112, %c0_113] : memref<8x1x8xf32, #tpu.memory_space<vmem>>, vector<1x1x8xf32>
    %158 = vector.shape_cast %157 : vector<1x1x8xf32> to vector<1x8xf32>
    %159 = vector.broadcast %158 : vector<1x8xf32> to vector<8x8xf32>
    %160 = arith.addf %156, %159 : vector<8x8xf32>
    %c3_114 = arith.constant 3 : index
    %c0_115 = arith.constant 0 : index
    %c0_116 = arith.constant 0 : index
    %161 = vector.load %arg8[%c3_114, %c0_115, %c0_116] : memref<8x32x8xf32, #tpu.memory_space<vmem>>, vector<1x32x8xf32>
    %162 = vector.shape_cast %161 : vector<1x32x8xf32> to vector<32x8xf32>
    %cst_117 = arith.constant dense<0.000000e+00> : vector<8x8xf32>
    %163 = tpu.matmul %23, %162, %cst_117 {dimension_numbers = #tpu.dot_dimension_numbers<[1], [0], [0], [1], [0, 0, 1, 1], [], []>} : vector<8x32xf32>, vector<32x8xf32>, vector<8x8xf32> -> vector<8x8xf32>
    %c3_118 = arith.constant 3 : index
    %c0_119 = arith.constant 0 : index
    %c0_120 = arith.constant 0 : index
    %164 = vector.load %arg9[%c3_118, %c0_119, %c0_120] : memref<8x1x8xf32, #tpu.memory_space<vmem>>, vector<1x1x8xf32>
    %165 = vector.shape_cast %164 : vector<1x1x8xf32> to vector<1x8xf32>
    %166 = vector.broadcast %165 : vector<1x8xf32> to vector<8x8xf32>
    %167 = arith.addf %163, %166 : vector<8x8xf32>
    %cst_121 = arith.constant dense<0.000000e+00> : vector<8x8xf32>
    %168 = tpu.matmul %153, %160, %cst_121 {dimension_numbers = #tpu.dot_dimension_numbers<[1], [1], [0], [0], [0, 0, 1, 0], [], []>} : vector<8x8xf32>, vector<8x8xf32>, vector<8x8xf32> -> vector<8x8xf32>
    %cst_122 = arith.constant 0.353553385 : f32
    %169 = vector.broadcast %cst_122 : f32 to vector<8x8xf32>
    %170 = arith.mulf %168, %169 : vector<8x8xf32>
    %171 = vector.broadcast %25 : vector<1x8xf32> to vector<8x8xf32>
    %172 = arith.addf %170, %171 : vector<8x8xf32>
    %cst_123 = arith.constant dense<0xFF800000> : vector<8xf32>
    %173 = vector.multi_reduction <maximumf>, %172, %cst_123 [1] : vector<8x8xf32> to vector<8xf32>
    %174 = vector.shape_cast %173 : vector<8xf32> to vector<8x1xf32>
    %175 = vector.broadcast %174 : vector<8x1xf32> to vector<8x8xf32>
    %176 = arith.subf %172, %175 : vector<8x8xf32>
    %177 = math.exp %176 : vector<8x8xf32>
    %cst_124 = arith.constant dense<0.000000e+00> : vector<8xf32>
    %178 = vector.multi_reduction <add>, %177, %cst_124 [1] : vector<8x8xf32> to vector<8xf32>
    %179 = vector.shape_cast %178 : vector<8xf32> to vector<8x1xf32>
    %180 = vector.broadcast %179 : vector<8x1xf32> to vector<8x8xf32>
    %181 = arith.divf %177, %180 : vector<8x8xf32>
    %cst_125 = arith.constant dense<0.000000e+00> : vector<8x8xf32>
    %182 = tpu.matmul %181, %167, %cst_125 {dimension_numbers = #tpu.dot_dimension_numbers<[1], [0], [0], [1], [0, 0, 1, 1], [], []>} : vector<8x8xf32>, vector<8x8xf32>, vector<8x8xf32> -> vector<8x8xf32>
    %c3_126 = arith.constant 3 : index
    %c0_127 = arith.constant 0 : index
    %c0_128 = arith.constant 0 : index
    %183 = vector.load %arg10[%c3_126, %c0_127, %c0_128] : memref<8x8x32xf32, #tpu.memory_space<vmem>>, vector<1x8x32xf32>
    %184 = vector.shape_cast %183 : vector<1x8x32xf32> to vector<8x32xf32>
    %cst_129 = arith.constant dense<0.000000e+00> : vector<8x32xf32>
    %185 = tpu.matmul %182, %184, %cst_129 {dimension_numbers = #tpu.dot_dimension_numbers<[1], [0], [0], [1], [0, 0, 1, 1], [], []>} : vector<8x8xf32>, vector<8x32xf32>, vector<8x32xf32> -> vector<8x32xf32>
    %186 = arith.addf %146, %185 : vector<8x32xf32>
    %c0_130 = arith.constant 0 : index
    %c0_131 = arith.constant 0 : index
    %187 = vector.load %arg25[%c0_130, %c0_131] : memref<16x32xf32, #tpu.memory_space<vmem>>, vector<8x32xf32>
    tpu.vector_store %arg25[%c0_130, %c0_131], %186 {strides = array<i32>} : memref<16x32xf32, #tpu.memory_space<vmem>>, vector<8x32xf32>,
    %188 = vector.extract_strided_slice %22 {offsets = [8, 0], sizes = [8, 32], strides = [1, 1]} : vector<16x32xf32> to vector<8x32xf32>
    %c1_132 = arith.constant 1 : index
    %c0_133 = arith.constant 0 : index
    %c0_134 = arith.constant 0 : index
    %189 = vector.load %arg1[%c1_132, %c0_133, %c0_134] : memref<2x1x8xf32, #tpu.memory_space<vmem>>, vector<1x1x8xf32>
    %190 = vector.shape_cast %189 : vector<1x1x8xf32> to vector<1x8xf32>
    %cst_135 = arith.constant 0.000000e+00 : f32
    %191 = vector.broadcast %cst_135 : f32 to vector<8x32xf32>
    %c0_136 = arith.constant 0 : index
    %c0_137 = arith.constant 0 : index
    %c0_138 = arith.constant 0 : index
    %192 = vector.load %arg4[%c0_136, %c0_137, %c0_138] : memref<8x32x8xf32, #tpu.memory_space<vmem>>, vector<1x32x8xf32>
    %193 = vector.shape_cast %192 : vector<1x32x8xf32> to vector<32x8xf32>
    %cst_139 = arith.constant dense<0.000000e+00> : vector<8x8xf32>
    %194 = tpu.matmul %188, %193, %cst_139 {dimension_numbers = #tpu.dot_dimension_numbers<[1], [0], [0], [1], [0, 0, 1, 1], [], []>} : vector<8x32xf32>, vector<32x8xf32>, vector<8x8xf32> -> vector<8x8xf32>
    %c0_140 = arith.constant 0 : index
    %c0_141 = arith.constant 0 : index
    %c0_142 = arith.constant 0 : index
    %195 = vector.load %arg5[%c0_140, %c0_141, %c0_142] : memref<8x1x8xf32, #tpu.memory_space<vmem>>, vector<1x1x8xf32>
    %196 = vector.shape_cast %195 : vector<1x1x8xf32> to vector<1x8xf32>
    %197 = vector.broadcast %196 : vector<1x8xf32> to vector<8x8xf32>
    %198 = arith.addf %194, %197 : vector<8x8xf32>
    %c0_143 = arith.constant 0 : index
    %c0_144 = arith.constant 0 : index
    %c0_145 = arith.constant 0 : index
    %199 = vector.load %arg6[%c0_143, %c0_144, %c0_145] : memref<8x32x8xf32, #tpu.memory_space<vmem>>, vector<1x32x8xf32>
    %200 = vector.shape_cast %199 : vector<1x32x8xf32> to vector<32x8xf32>
    %cst_146 = arith.constant dense<0.000000e+00> : vector<8x8xf32>
    %201 = tpu.matmul %188, %200, %cst_146 {dimension_numbers = #tpu.dot_dimension_numbers<[1], [0], [0], [1], [0, 0, 1, 1], [], []>} : vector<8x32xf32>, vector<32x8xf32>, vector<8x8xf32> -> vector<8x8xf32>
    %c0_147 = arith.constant 0 : index
    %c0_148 = arith.constant 0 : index
    %c0_149 = arith.constant 0 : index
    %202 = vector.load %arg7[%c0_147, %c0_148, %c0_149] : memref<8x1x8xf32, #tpu.memory_space<vmem>>, vector<1x1x8xf32>
    %203 = vector.shape_cast %202 : vector<1x1x8xf32> to vector<1x8xf32>
    %204 = vector.broadcast %203 : vector<1x8xf32> to vector<8x8xf32>
    %205 = arith.addf %201, %204 : vector<8x8xf32>
    %c0_150 = arith.constant 0 : index
    %c0_151 = arith.constant 0 : index
    %c0_152 = arith.constant 0 : index
    %206 = vector.load %arg8[%c0_150, %c0_151, %c0_152] : memref<8x32x8xf32, #tpu.memory_space<vmem>>, vector<1x32x8xf32>
    %207 = vector.shape_cast %206 : vector<1x32x8xf32> to vector<32x8xf32>
    %cst_153 = arith.constant dense<0.000000e+00> : vector<8x8xf32>
    %208 = tpu.matmul %188, %207, %cst_153 {dimension_numbers = #tpu.dot_dimension_numbers<[1], [0], [0], [1], [0, 0, 1, 1], [], []>} : vector<8x32xf32>, vector<32x8xf32>, vector<8x8xf32> -> vector<8x8xf32>
    %c0_154 = arith.constant 0 : index
    %c0_155 = arith.constant 0 : index
    %c0_156 = arith.constant 0 : index
    %209 = vector.load %arg9[%c0_154, %c0_155, %c0_156] : memref<8x1x8xf32, #tpu.memory_space<vmem>>, vector<1x1x8xf32>
    %210 = vector.shape_cast %209 : vector<1x1x8xf32> to vector<1x8xf32>
    %211 = vector.broadcast %210 : vector<1x8xf32> to vector<8x8xf32>
    %212 = arith.addf %208, %211 : vector<8x8xf32>
    %cst_157 = arith.constant dense<0.000000e+00> : vector<8x8xf32>
    %213 = tpu.matmul %198, %205, %cst_157 {dimension_numbers = #tpu.dot_dimension_numbers<[1], [1], [0], [0], [0, 0, 1, 0], [], []>} : vector<8x8xf32>, vector<8x8xf32>, vector<8x8xf32> -> vector<8x8xf32>
    %cst_158 = arith.constant 0.353553385 : f32
    %214 = vector.broadcast %cst_158 : f32 to vector<8x8xf32>
    %215 = arith.mulf %213, %214 : vector<8x8xf32>
    %216 = vector.broadcast %190 : vector<1x8xf32> to vector<8x8xf32>
    %217 = arith.addf %215, %216 : vector<8x8xf32>
    %cst_159 = arith.constant dense<0xFF800000> : vector<8xf32>
    %218 = vector.multi_reduction <maximumf>, %217, %cst_159 [1] : vector<8x8xf32> to vector<8xf32>
    %219 = vector.shape_cast %218 : vector<8xf32> to vector<8x1xf32>
    %220 = vector.broadcast %219 : vector<8x1xf32> to vector<8x8xf32>
    %221 = arith.subf %217, %220 : vector<8x8xf32>
    %222 = math.exp %221 : vector<8x8xf32>
    %cst_160 = arith.constant dense<0.000000e+00> : vector<8xf32>
    %223 = vector.multi_reduction <add>, %222, %cst_160 [1] : vector<8x8xf32> to vector<8xf32>
    %224 = vector.shape_cast %223 : vector<8xf32> to vector<8x1xf32>
    %225 = vector.broadcast %224 : vector<8x1xf32> to vector<8x8xf32>
    %226 = arith.divf %222, %225 : vector<8x8xf32>
    %cst_161 = arith.constant dense<0.000000e+00> : vector<8x8xf32>
    %227 = tpu.matmul %226, %212, %cst_161 {dimension_numbers = #tpu.dot_dimension_numbers<[1], [0], [0], [1], [0, 0, 1, 1], [], []>} : vector<8x8xf32>, vector<8x8xf32>, vector<8x8xf32> -> vector<8x8xf32>
    %c0_162 = arith.constant 0 : index
    %c0_163 = arith.constant 0 : index
    %c0_164 = arith.constant 0 : index
    %228 = vector.load %arg10[%c0_162, %c0_163, %c0_164] : memref<8x8x32xf32, #tpu.memory_space<vmem>>, vector<1x8x32xf32>
    %229 = vector.shape_cast %228 : vector<1x8x32xf32> to vector<8x32xf32>
    %cst_165 = arith.constant dense<0.000000e+00> : vector<8x32xf32>
    %230 = tpu.matmul %227, %229, %cst_165 {dimension_numbers = #tpu.dot_dimension_numbers<[1], [0], [0], [1], [0, 0, 1, 1], [], []>} : vector<8x8xf32>, vector<8x32xf32>, vector<8x32xf32> -> vector<8x32xf32>
    %231 = arith.addf %191, %230 : vector<8x32xf32>
    %c1_166 = arith.constant 1 : index
    %c0_167 = arith.constant 0 : index
    %c0_168 = arith.constant 0 : index
    %232 = vector.load %arg4[%c1_166, %c0_167, %c0_168] : memref<8x32x8xf32, #tpu.memory_space<vmem>>, vector<1x32x8xf32>
    %233 = vector.shape_cast %232 : vector<1x32x8xf32> to vector<32x8xf32>
    %cst_169 = arith.constant dense<0.000000e+00> : vector<8x8xf32>
    %234 = tpu.matmul %188, %233, %cst_169 {dimension_numbers = #tpu.dot_dimension_numbers<[1], [0], [0], [1], [0, 0, 1, 1], [], []>} : vector<8x32xf32>, vector<32x8xf32>, vector<8x8xf32> -> vector<8x8xf32>
    %c1_170 = arith.constant 1 : index
    %c0_171 = arith.constant 0 : index
    %c0_172 = arith.constant 0 : index
    %235 = vector.load %arg5[%c1_170, %c0_171, %c0_172] : memref<8x1x8xf32, #tpu.memory_space<vmem>>, vector<1x1x8xf32>
    %236 = vector.shape_cast %235 : vector<1x1x8xf32> to vector<1x8xf32>
    %237 = vector.broadcast %236 : vector<1x8xf32> to vector<8x8xf32>
    %238 = arith.addf %234, %237 : vector<8x8xf32>
    %c1_173 = arith.constant 1 : index
    %c0_174 = arith.constant 0 : index
    %c0_175 = arith.constant 0 : index
    %239 = vector.load %arg6[%c1_173, %c0_174, %c0_175] : memref<8x32x8xf32, #tpu.memory_space<vmem>>, vector<1x32x8xf32>
    %240 = vector.shape_cast %239 : vector<1x32x8xf32> to vector<32x8xf32>
    %cst_176 = arith.constant dense<0.000000e+00> : vector<8x8xf32>
    %241 = tpu.matmul %188, %240, %cst_176 {dimension_numbers = #tpu.dot_dimension_numbers<[1], [0], [0], [1], [0, 0, 1, 1], [], []>} : vector<8x32xf32>, vector<32x8xf32>, vector<8x8xf32> -> vector<8x8xf32>
    %c1_177 = arith.constant 1 : index
    %c0_178 = arith.constant 0 : index
    %c0_179 = arith.constant 0 : index
    %242 = vector.load %arg7[%c1_177, %c0_178, %c0_179] : memref<8x1x8xf32, #tpu.memory_space<vmem>>, vector<1x1x8xf32>
    %243 = vector.shape_cast %242 : vector<1x1x8xf32> to vector<1x8xf32>
    %244 = vector.broadcast %243 : vector<1x8xf32> to vector<8x8xf32>
    %245 = arith.addf %241, %244 : vector<8x8xf32>
    %c1_180 = arith.constant 1 : index
    %c0_181 = arith.constant 0 : index
    %c0_182 = arith.constant 0 : index
    %246 = vector.load %arg8[%c1_180, %c0_181, %c0_182] : memref<8x32x8xf32, #tpu.memory_space<vmem>>, vector<1x32x8xf32>
    %247 = vector.shape_cast %246 : vector<1x32x8xf32> to vector<32x8xf32>
    %cst_183 = arith.constant dense<0.000000e+00> : vector<8x8xf32>
    %248 = tpu.matmul %188, %247, %cst_183 {dimension_numbers = #tpu.dot_dimension_numbers<[1], [0], [0], [1], [0, 0, 1, 1], [], []>} : vector<8x32xf32>, vector<32x8xf32>, vector<8x8xf32> -> vector<8x8xf32>
    %c1_184 = arith.constant 1 : index
    %c0_185 = arith.constant 0 : index
    %c0_186 = arith.constant 0 : index
    %249 = vector.load %arg9[%c1_184, %c0_185, %c0_186] : memref<8x1x8xf32, #tpu.memory_space<vmem>>, vector<1x1x8xf32>
    %250 = vector.shape_cast %249 : vector<1x1x8xf32> to vector<1x8xf32>
    %251 = vector.broadcast %250 : vector<1x8xf32> to vector<8x8xf32>
    %252 = arith.addf %248, %251 : vector<8x8xf32>
    %cst_187 = arith.constant dense<0.000000e+00> : vector<8x8xf32>
    %253 = tpu.matmul %238, %245, %cst_187 {dimension_numbers = #tpu.dot_dimension_numbers<[1], [1], [0], [0], [0, 0, 1, 0], [], []>} : vector<8x8xf32>, vector<8x8xf32>, vector<8x8xf32> -> vector<8x8xf32>
    %cst_188 = arith.constant 0.353553385 : f32
    %254 = vector.broadcast %cst_188 : f32 to vector<8x8xf32>
    %255 = arith.mulf %253, %254 : vector<8x8xf32>
    %256 = vector.broadcast %190 : vector<1x8xf32> to vector<8x8xf32>
    %257 = arith.addf %255, %256 : vector<8x8xf32>
    %cst_189 = arith.constant dense<0xFF800000> : vector<8xf32>
    %258 = vector.multi_reduction <maximumf>, %257, %cst_189 [1] : vector<8x8xf32> to vector<8xf32>
    %259 = vector.shape_cast %258 : vector<8xf32> to vector<8x1xf32>
    %260 = vector.broadcast %259 : vector<8x1xf32> to vector<8x8xf32>
    %261 = arith.subf %257, %260 : vector<8x8xf32>
    %262 = math.exp %261 : vector<8x8xf32>
    %cst_190 = arith.constant dense<0.000000e+00> : vector<8xf32>
    %263 = vector.multi_reduction <add>, %262, %cst_190 [1] : vector<8x8xf32> to vector<8xf32>
    %264 = vector.shape_cast %263 : vector<8xf32> to vector<8x1xf32>
    %265 = vector.broadcast %264 : vector<8x1xf32> to vector<8x8xf32>
    %266 = arith.divf %262, %265 : vector<8x8xf32>
    %cst_191 = arith.constant dense<0.000000e+00> : vector<8x8xf32>
    %267 = tpu.matmul %266, %252, %cst_191 {dimension_numbers = #tpu.dot_dimension_numbers<[1], [0], [0], [1], [0, 0, 1, 1], [], []>} : vector<8x8xf32>, vector<8x8xf32>, vector<8x8xf32> -> vector<8x8xf32>
    %c1_192 = arith.constant 1 : index
    %c0_193 = arith.constant 0 : index
    %c0_194 = arith.constant 0 : index
    %268 = vector.load %arg10[%c1_192, %c0_193, %c0_194] : memref<8x8x32xf32, #tpu.memory_space<vmem>>, vector<1x8x32xf32>
    %269 = vector.shape_cast %268 : vector<1x8x32xf32> to vector<8x32xf32>
    %cst_195 = arith.constant dense<0.000000e+00> : vector<8x32xf32>
    %270 = tpu.matmul %267, %269, %cst_195 {dimension_numbers = #tpu.dot_dimension_numbers<[1], [0], [0], [1], [0, 0, 1, 1], [], []>} : vector<8x8xf32>, vector<8x32xf32>, vector<8x32xf32> -> vector<8x32xf32>
    %271 = arith.addf %231, %270 : vector<8x32xf32>
    %c2_196 = arith.constant 2 : index
    %c0_197 = arith.constant 0 : index
    %c0_198 = arith.constant 0 : index
    %272 = vector.load %arg4[%c2_196, %c0_197, %c0_198] : memref<8x32x8xf32, #tpu.memory_space<vmem>>, vector<1x32x8xf32>
    %273 = vector.shape_cast %272 : vector<1x32x8xf32> to vector<32x8xf32>
    %cst_199 = arith.constant dense<0.000000e+00> : vector<8x8xf32>
    %274 = tpu.matmul %188, %273, %cst_199 {dimension_numbers = #tpu.dot_dimension_numbers<[1], [0], [0], [1], [0, 0, 1, 1], [], []>} : vector<8x32xf32>, vector<32x8xf32>, vector<8x8xf32> -> vector<8x8xf32>
    %c2_200 = arith.constant 2 : index
    %c0_201 = arith.constant 0 : index
    %c0_202 = arith.constant 0 : index
    %275 = vector.load %arg5[%c2_200, %c0_201, %c0_202] : memref<8x1x8xf32, #tpu.memory_space<vmem>>, vector<1x1x8xf32>
    %276 = vector.shape_cast %275 : vector<1x1x8xf32> to vector<1x8xf32>
    %277 = vector.broadcast %276 : vector<1x8xf32> to vector<8x8xf32>
    %278 = arith.addf %274, %277 : vector<8x8xf32>
    %c2_203 = arith.constant 2 : index
    %c0_204 = arith.constant 0 : index
    %c0_205 = arith.constant 0 : index
    %279 = vector.load %arg6[%c2_203, %c0_204, %c0_205] : memref<8x32x8xf32, #tpu.memory_space<vmem>>, vector<1x32x8xf32>
    %280 = vector.shape_cast %279 : vector<1x32x8xf32> to vector<32x8xf32>
    %cst_206 = arith.constant dense<0.000000e+00> : vector<8x8xf32>
    %281 = tpu.matmul %188, %280, %cst_206 {dimension_numbers = #tpu.dot_dimension_numbers<[1], [0], [0], [1], [0, 0, 1, 1], [], []>} : vector<8x32xf32>, vector<32x8xf32>, vector<8x8xf32> -> vector<8x8xf32>
    %c2_207 = arith.constant 2 : index
    %c0_208 = arith.constant 0 : index
    %c0_209 = arith.constant 0 : index
    %282 = vector.load %arg7[%c2_207, %c0_208, %c0_209] : memref<8x1x8xf32, #tpu.memory_space<vmem>>, vector<1x1x8xf32>
    %283 = vector.shape_cast %282 : vector<1x1x8xf32> to vector<1x8xf32>
    %284 = vector.broadcast %283 : vector<1x8xf32> to vector<8x8xf32>
    %285 = arith.addf %281, %284 : vector<8x8xf32>
    %c2_210 = arith.constant 2 : index
    %c0_211 = arith.constant 0 : index
    %c0_212 = arith.constant 0 : index
    %286 = vector.load %arg8[%c2_210, %c0_211, %c0_212] : memref<8x32x8xf32, #tpu.memory_space<vmem>>, vector<1x32x8xf32>
    %287 = vector.shape_cast %286 : vector<1x32x8xf32> to vector<32x8xf32>
    %cst_213 = arith.constant dense<0.000000e+00> : vector<8x8xf32>
    %288 = tpu.matmul %188, %287, %cst_213 {dimension_numbers = #tpu.dot_dimension_numbers<[1], [0], [0], [1], [0, 0, 1, 1], [], []>} : vector<8x32xf32>, vector<32x8xf32>, vector<8x8xf32> -> vector<8x8xf32>
    %c2_214 = arith.constant 2 : index
    %c0_215 = arith.constant 0 : index
    %c0_216 = arith.constant 0 : index
    %289 = vector.load %arg9[%c2_214, %c0_215, %c0_216] : memref<8x1x8xf32, #tpu.memory_space<vmem>>, vector<1x1x8xf32>
    %290 = vector.shape_cast %289 : vector<1x1x8xf32> to vector<1x8xf32>
    %291 = vector.broadcast %290 : vector<1x8xf32> to vector<8x8xf32>
    %292 = arith.addf %288, %291 : vector<8x8xf32>
    %cst_217 = arith.constant dense<0.000000e+00> : vector<8x8xf32>
    %293 = tpu.matmul %278, %285, %cst_217 {dimension_numbers = #tpu.dot_dimension_numbers<[1], [1], [0], [0], [0, 0, 1, 0], [], []>} : vector<8x8xf32>, vector<8x8xf32>, vector<8x8xf32> -> vector<8x8xf32>
    %cst_218 = arith.constant 0.353553385 : f32
    %294 = vector.broadcast %cst_218 : f32 to vector<8x8xf32>
    %295 = arith.mulf %293, %294 : vector<8x8xf32>
    %296 = vector.broadcast %190 : vector<1x8xf32> to vector<8x8xf32>
    %297 = arith.addf %295, %296 : vector<8x8xf32>
    %cst_219 = arith.constant dense<0xFF800000> : vector<8xf32>
    %298 = vector.multi_reduction <maximumf>, %297, %cst_219 [1] : vector<8x8xf32> to vector<8xf32>
    %299 = vector.shape_cast %298 : vector<8xf32> to vector<8x1xf32>
    %300 = vector.broadcast %299 : vector<8x1xf32> to vector<8x8xf32>
    %301 = arith.subf %297, %300 : vector<8x8xf32>
    %302 = math.exp %301 : vector<8x8xf32>
    %cst_220 = arith.constant dense<0.000000e+00> : vector<8xf32>
    %303 = vector.multi_reduction <add>, %302, %cst_220 [1] : vector<8x8xf32> to vector<8xf32>
    %304 = vector.shape_cast %303 : vector<8xf32> to vector<8x1xf32>
    %305 = vector.broadcast %304 : vector<8x1xf32> to vector<8x8xf32>
    %306 = arith.divf %302, %305 : vector<8x8xf32>
    %cst_221 = arith.constant dense<0.000000e+00> : vector<8x8xf32>
    %307 = tpu.matmul %306, %292, %cst_221 {dimension_numbers = #tpu.dot_dimension_numbers<[1], [0], [0], [1], [0, 0, 1, 1], [], []>} : vector<8x8xf32>, vector<8x8xf32>, vector<8x8xf32> -> vector<8x8xf32>
    %c2_222 = arith.constant 2 : index
    %c0_223 = arith.constant 0 : index
    %c0_224 = arith.constant 0 : index
    %308 = vector.load %arg10[%c2_222, %c0_223, %c0_224] : memref<8x8x32xf32, #tpu.memory_space<vmem>>, vector<1x8x32xf32>
    %309 = vector.shape_cast %308 : vector<1x8x32xf32> to vector<8x32xf32>
    %cst_225 = arith.constant dense<0.000000e+00> : vector<8x32xf32>
    %310 = tpu.matmul %307, %309, %cst_225 {dimension_numbers = #tpu.dot_dimension_numbers<[1], [0], [0], [1], [0, 0, 1, 1], [], []>} : vector<8x8xf32>, vector<8x32xf32>, vector<8x32xf32> -> vector<8x32xf32>
    %311 = arith.addf %271, %310 : vector<8x32xf32>
    %c3_226 = arith.constant 3 : index
    %c0_227 = arith.constant 0 : index
    %c0_228 = arith.constant 0 : index
    %312 = vector.load %arg4[%c3_226, %c0_227, %c0_228] : memref<8x32x8xf32, #tpu.memory_space<vmem>>, vector<1x32x8xf32>
    %313 = vector.shape_cast %312 : vector<1x32x8xf32> to vector<32x8xf32>
    %cst_229 = arith.constant dense<0.000000e+00> : vector<8x8xf32>
    %314 = tpu.matmul %188, %313, %cst_229 {dimension_numbers = #tpu.dot_dimension_numbers<[1], [0], [0], [1], [0, 0, 1, 1], [], []>} : vector<8x32xf32>, vector<32x8xf32>, vector<8x8xf32> -> vector<8x8xf32>
    %c3_230 = arith.constant 3 : index
    %c0_231 = arith.constant 0 : index
    %c0_232 = arith.constant 0 : index
    %315 = vector.load %arg5[%c3_230, %c0_231, %c0_232] : memref<8x1x8xf32, #tpu.memory_space<vmem>>, vector<1x1x8xf32>
    %316 = vector.shape_cast %315 : vector<1x1x8xf32> to vector<1x8xf32>
    %317 = vector.broadcast %316 : vector<1x8xf32> to vector<8x8xf32>
    %318 = arith.addf %314, %317 : vector<8x8xf32>
    %c3_233 = arith.constant 3 : index
    %c0_234 = arith.constant 0 : index
    %c0_235 = arith.constant 0 : index
    %319 = vector.load %arg6[%c3_233, %c0_234, %c0_235] : memref<8x32x8xf32, #tpu.memory_space<vmem>>, vector<1x32x8xf32>
    %320 = vector.shape_cast %319 : vector<1x32x8xf32> to vector<32x8xf32>
    %cst_236 = arith.constant dense<0.000000e+00> : vector<8x8xf32>
    %321 = tpu.matmul %188, %320, %cst_236 {dimension_numbers = #tpu.dot_dimension_numbers<[1], [0], [0], [1], [0, 0, 1, 1], [], []>} : vector<8x32xf32>, vector<32x8xf32>, vector<8x8xf32> -> vector<8x8xf32>
    %c3_237 = arith.constant 3 : index
    %c0_238 = arith.constant 0 : index
    %c0_239 = arith.constant 0 : index
    %322 = vector.load %arg7[%c3_237, %c0_238, %c0_239] : memref<8x1x8xf32, #tpu.memory_space<vmem>>, vector<1x1x8xf32>
    %323 = vector.shape_cast %322 : vector<1x1x8xf32> to vector<1x8xf32>
    %324 = vector.broadcast %323 : vector<1x8xf32> to vector<8x8xf32>
    %325 = arith.addf %321, %324 : vector<8x8xf32>
    %c3_240 = arith.constant 3 : index
    %c0_241 = arith.constant 0 : index
    %c0_242 = arith.constant 0 : index
    %326 = vector.load %arg8[%c3_240, %c0_241, %c0_242] : memref<8x32x8xf32, #tpu.memory_space<vmem>>, vector<1x32x8xf32>
    %327 = vector.shape_cast %326 : vector<1x32x8xf32> to vector<32x8xf32>
    %cst_243 = arith.constant dense<0.000000e+00> : vector<8x8xf32>
    %328 = tpu.matmul %188, %327, %cst_243 {dimension_numbers = #tpu.dot_dimension_numbers<[1], [0], [0], [1], [0, 0, 1, 1], [], []>} : vector<8x32xf32>, vector<32x8xf32>, vector<8x8xf32> -> vector<8x8xf32>
    %c3_244 = arith.constant 3 : index
    %c0_245 = arith.constant 0 : index
    %c0_246 = arith.constant 0 : index
    %329 = vector.load %arg9[%c3_244, %c0_245, %c0_246] : memref<8x1x8xf32, #tpu.memory_space<vmem>>, vector<1x1x8xf32>
    %330 = vector.shape_cast %329 : vector<1x1x8xf32> to vector<1x8xf32>
    %331 = vector.broadcast %330 : vector<1x8xf32> to vector<8x8xf32>
    %332 = arith.addf %328, %331 : vector<8x8xf32>
    %cst_247 = arith.constant dense<0.000000e+00> : vector<8x8xf32>
    %333 = tpu.matmul %318, %325, %cst_247 {dimension_numbers = #tpu.dot_dimension_numbers<[1], [1], [0], [0], [0, 0, 1, 0], [], []>} : vector<8x8xf32>, vector<8x8xf32>, vector<8x8xf32> -> vector<8x8xf32>
    %cst_248 = arith.constant 0.353553385 : f32
    %334 = vector.broadcast %cst_248 : f32 to vector<8x8xf32>
    %335 = arith.mulf %333, %334 : vector<8x8xf32>
    %336 = vector.broadcast %190 : vector<1x8xf32> to vector<8x8xf32>
    %337 = arith.addf %335, %336 : vector<8x8xf32>
    %cst_249 = arith.constant dense<0xFF800000> : vector<8xf32>
    %338 = vector.multi_reduction <maximumf>, %337, %cst_249 [1] : vector<8x8xf32> to vector<8xf32>
    %339 = vector.shape_cast %338 : vector<8xf32> to vector<8x1xf32>
    %340 = vector.broadcast %339 : vector<8x1xf32> to vector<8x8xf32>
    %341 = arith.subf %337, %340 : vector<8x8xf32>
    %342 = math.exp %341 : vector<8x8xf32>
    %cst_250 = arith.constant dense<0.000000e+00> : vector<8xf32>
    %343 = vector.multi_reduction <add>, %342, %cst_250 [1] : vector<8x8xf32> to vector<8xf32>
    %344 = vector.shape_cast %343 : vector<8xf32> to vector<8x1xf32>
    %345 = vector.broadcast %344 : vector<8x1xf32> to vector<8x8xf32>
    %346 = arith.divf %342, %345 : vector<8x8xf32>
    %cst_251 = arith.constant dense<0.000000e+00> : vector<8x8xf32>
    %347 = tpu.matmul %346, %332, %cst_251 {dimension_numbers = #tpu.dot_dimension_numbers<[1], [0], [0], [1], [0, 0, 1, 1], [], []>} : vector<8x8xf32>, vector<8x8xf32>, vector<8x8xf32> -> vector<8x8xf32>
    %c3_252 = arith.constant 3 : index
    %c0_253 = arith.constant 0 : index
    %c0_254 = arith.constant 0 : index
    %348 = vector.load %arg10[%c3_252, %c0_253, %c0_254] : memref<8x8x32xf32, #tpu.memory_space<vmem>>, vector<1x8x32xf32>
    %349 = vector.shape_cast %348 : vector<1x8x32xf32> to vector<8x32xf32>
    %cst_255 = arith.constant dense<0.000000e+00> : vector<8x32xf32>
    %350 = tpu.matmul %347, %349, %cst_255 {dimension_numbers = #tpu.dot_dimension_numbers<[1], [0], [0], [1], [0, 0, 1, 1], [], []>} : vector<8x8xf32>, vector<8x32xf32>, vector<8x32xf32> -> vector<8x32xf32>
    %351 = arith.addf %311, %350 : vector<8x32xf32>
    %c8 = arith.constant 8 : index
    %c0_256 = arith.constant 0 : index
    %352 = vector.load %arg25[%c8, %c0_256] : memref<16x32xf32, #tpu.memory_space<vmem>>, vector<8x32xf32>
    tpu.vector_store %arg25[%c8, %c0_256], %351 {strides = array<i32>} : memref<16x32xf32, #tpu.memory_space<vmem>>, vector<8x32xf32>,
    %c0_257 = arith.constant 0 : index
    %c0_258 = arith.constant 0 : index
    %353 = vector.load %arg25[%c0_257, %c0_258] : memref<16x32xf32, #tpu.memory_space<vmem>>, vector<16x32xf32>
    %c0_259 = arith.constant 0 : index
    %c0_260 = arith.constant 0 : index
    %c0_261 = arith.constant 0 : index
    %354 = vector.load %arg11[%c0_259, %c0_260, %c0_261] : memref<2x1x32xf32, #tpu.memory_space<vmem>>, vector<1x1x32xf32>
    %355 = vector.shape_cast %354 : vector<1x1x32xf32> to vector<1x32xf32>
    %356 = vector.broadcast %355 : vector<1x32xf32> to vector<16x32xf32>
    %357 = arith.addf %353, %356 : vector<16x32xf32>
    %358 = arith.addf %357, %22 : vector<16x32xf32>
    %c0_262 = arith.constant 0 : index
    %c0_263 = arith.constant 0 : index
    %c0_264 = arith.constant 0 : index
    %359 = vector.load %arg12[%c0_262, %c0_263, %c0_264] : memref<2x1x32xf32, #tpu.memory_space<vmem>>, vector<1x1x32xf32>
    %360 = vector.shape_cast %359 : vector<1x1x32xf32> to vector<1x32xf32>
    %c0_265 = arith.constant 0 : index
    %c0_266 = arith.constant 0 : index
    %c0_267 = arith.constant 0 : index
    %361 = vector.load %arg13[%c0_265, %c0_266, %c0_267] : memref<2x1x32xf32, #tpu.memory_space<vmem>>, vector<1x1x32xf32>
    %362 = vector.shape_cast %361 : vector<1x1x32xf32> to vector<1x32xf32>
    %cst_268 = arith.constant dense<0.000000e+00> : vector<16xf32>
    %363 = vector.multi_reduction <add>, %358, %cst_268 [1] : vector<16x32xf32> to vector<16xf32>
    %364 = vector.shape_cast %363 : vector<16xf32> to vector<16x1xf32>
    %cst_269 = arith.constant 3.200000e+01 : f32
    %365 = vector.broadcast %cst_269 : f32 to vector<16x1xf32>
    %366 = arith.divf %364, %365 : vector<16x1xf32>
    %367 = vector.broadcast %366 : vector<16x1xf32> to vector<16x32xf32>
    %368 = arith.subf %358, %367 : vector<16x32xf32>
    %369 = arith.mulf %368, %368 : vector<16x32xf32>
    %cst_270 = arith.constant dense<0.000000e+00> : vector<16xf32>
    %370 = vector.multi_reduction <add>, %369, %cst_270 [1] : vector<16x32xf32> to vector<16xf32>
    %371 = vector.shape_cast %370 : vector<16xf32> to vector<16x1xf32>
    %cst_271 = arith.constant 3.200000e+01 : f32
    %372 = vector.broadcast %cst_271 : f32 to vector<16x1xf32>
    %373 = arith.divf %371, %372 : vector<16x1xf32>
    %cst_272 = arith.constant 9.99999996E-13 : f32
    %374 = vector.broadcast %cst_272 : f32 to vector<16x1xf32>
    %375 = arith.addf %373, %374 : vector<16x1xf32>
    %376 = math.rsqrt %375 : vector<16x1xf32>
    %377 = vector.broadcast %376 : vector<16x1xf32> to vector<16x32xf32>
    %378 = arith.mulf %368, %377 : vector<16x32xf32>
    %379 = vector.broadcast %360 : vector<1x32xf32> to vector<16x32xf32>
    %380 = arith.mulf %378, %379 : vector<16x32xf32>
    %381 = vector.broadcast %362 : vector<1x32xf32> to vector<16x32xf32>
    %382 = arith.addf %380, %381 : vector<16x32xf32>
    %c0_273 = arith.constant 0 : index
    %c0_274 = arith.constant 0 : index
    %c0_275 = arith.constant 0 : index
    %383 = vector.load %arg14[%c0_273, %c0_274, %c0_275] : memref<2x32x64xf32, #tpu.memory_space<vmem>>, vector<1x32x64xf32>
    %384 = vector.shape_cast %383 : vector<1x32x64xf32> to vector<32x64xf32>
    %cst_276 = arith.constant dense<0.000000e+00> : vector<16x64xf32>
    %385 = tpu.matmul %382, %384, %cst_276 {dimension_numbers = #tpu.dot_dimension_numbers<[1], [0], [0], [1], [0, 0, 1, 1], [], []>} : vector<16x32xf32>, vector<32x64xf32>, vector<16x64xf32> -> vector<16x64xf32>
    %c0_277 = arith.constant 0 : index
    %c0_278 = arith.constant 0 : index
    %c0_279 = arith.constant 0 : index
    %386 = vector.load %arg15[%c0_277, %c0_278, %c0_279] : memref<2x1x64xf32, #tpu.memory_space<vmem>>, vector<1x1x64xf32>
    %387 = vector.shape_cast %386 : vector<1x1x64xf32> to vector<1x64xf32>
    %388 = vector.broadcast %387 : vector<1x64xf32> to vector<16x64xf32>
    %389 = arith.addf %385, %388 : vector<16x64xf32>
    %cst_280 = arith.constant 5.000000e-01 : f32
    %390 = vector.broadcast %cst_280 : f32 to vector<16x64xf32>
    %391 = arith.mulf %390, %389 : vector<16x64xf32>
    %cst_281 = arith.constant 4.471500e-02 : f32
    %392 = vector.broadcast %cst_281 : f32 to vector<16x64xf32>
    %393 = arith.mulf %392, %389 : vector<16x64xf32>
    %394 = arith.mulf %393, %389 : vector<16x64xf32>
    %395 = arith.mulf %394, %389 : vector<16x64xf32>
    %396 = arith.addf %389, %395 : vector<16x64xf32>
    %cst_282 = arith.constant 0.797884583 : f32
    %397 = vector.broadcast %cst_282 : f32 to vector<16x64xf32>
    %398 = arith.mulf %397, %396 : vector<16x64xf32>
    %399 = math.tanh %398 : vector<16x64xf32>
    %cst_283 = arith.constant 1.000000e+00 : f32
    %400 = vector.broadcast %cst_283 : f32 to vector<16x64xf32>
    %401 = arith.addf %400, %399 : vector<16x64xf32>
    %402 = arith.mulf %391, %401 : vector<16x64xf32>
    %c0_284 = arith.constant 0 : index
    %c0_285 = arith.constant 0 : index
    %c0_286 = arith.constant 0 : index
    %403 = vector.load %arg16[%c0_284, %c0_285, %c0_286] : memref<2x64x32xf32, #tpu.memory_space<vmem>>, vector<1x64x32xf32>
    %404 = vector.shape_cast %403 : vector<1x64x32xf32> to vector<64x32xf32>
    %cst_287 = arith.constant dense<0.000000e+00> : vector<16x32xf32>
    %405 = tpu.matmul %402, %404, %cst_287 {dimension_numbers = #tpu.dot_dimension_numbers<[1], [0], [0], [1], [0, 0, 1, 1], [], []>} : vector<16x64xf32>, vector<64x32xf32>, vector<16x32xf32> -> vector<16x32xf32>
    %c0_288 = arith.constant 0 : index
    %c0_289 = arith.constant 0 : index
    %c0_290 = arith.constant 0 : index
    %406 = vector.load %arg17[%c0_288, %c0_289, %c0_290] : memref<2x1x32xf32, #tpu.memory_space<vmem>>, vector<1x1x32xf32>
    %407 = vector.shape_cast %406 : vector<1x1x32xf32> to vector<1x32xf32>
    %408 = vector.broadcast %407 : vector<1x32xf32> to vector<16x32xf32>
    %409 = arith.addf %405, %408 : vector<16x32xf32>
    %410 = arith.addf %409, %382 : vector<16x32xf32>
    %c0_291 = arith.constant 0 : index
    %c0_292 = arith.constant 0 : index
    %c0_293 = arith.constant 0 : index
    %411 = vector.load %arg18[%c0_291, %c0_292, %c0_293] : memref<2x1x32xf32, #tpu.memory_space<vmem>>, vector<1x1x32xf32>
    %412 = vector.shape_cast %411 : vector<1x1x32xf32> to vector<1x32xf32>
    %c0_294 = arith.constant 0 : index
    %c0_295 = arith.constant 0 : index
    %c0_296 = arith.constant 0 : index
    %413 = vector.load %arg19[%c0_294, %c0_295, %c0_296] : memref<2x1x32xf32, #tpu.memory_space<vmem>>, vector<1x1x32xf32>
    %414 = vector.shape_cast %413 : vector<1x1x32xf32> to vector<1x32xf32>
    %cst_297 = arith.constant dense<0.000000e+00> : vector<16xf32>
    %415 = vector.multi_reduction <add>, %410, %cst_297 [1] : vector<16x32xf32> to vector<16xf32>
    %416 = vector.shape_cast %415 : vector<16xf32> to vector<16x1xf32>
    %cst_298 = arith.constant 3.200000e+01 : f32
    %417 = vector.broadcast %cst_298 : f32 to vector<16x1xf32>
    %418 = arith.divf %416, %417 : vector<16x1xf32>
    %419 = vector.broadcast %418 : vector<16x1xf32> to vector<16x32xf32>
    %420 = arith.subf %410, %419 : vector<16x32xf32>
    %421 = arith.mulf %420, %420 : vector<16x32xf32>
    %cst_299 = arith.constant dense<0.000000e+00> : vector<16xf32>
    %422 = vector.multi_reduction <add>, %421, %cst_299 [1] : vector<16x32xf32> to vector<16xf32>
    %423 = vector.shape_cast %422 : vector<16xf32> to vector<16x1xf32>
    %cst_300 = arith.constant 3.200000e+01 : f32
    %424 = vector.broadcast %cst_300 : f32 to vector<16x1xf32>
    %425 = arith.divf %423, %424 : vector<16x1xf32>
    %cst_301 = arith.constant 9.99999996E-13 : f32
    %426 = vector.broadcast %cst_301 : f32 to vector<16x1xf32>
    %427 = arith.addf %425, %426 : vector<16x1xf32>
    %428 = math.rsqrt %427 : vector<16x1xf32>
    %429 = vector.broadcast %428 : vector<16x1xf32> to vector<16x32xf32>
    %430 = arith.mulf %420, %429 : vector<16x32xf32>
    %431 = vector.broadcast %412 : vector<1x32xf32> to vector<16x32xf32>
    %432 = arith.mulf %430, %431 : vector<16x32xf32>
    %433 = vector.broadcast %414 : vector<1x32xf32> to vector<16x32xf32>
    %434 = arith.addf %432, %433 : vector<16x32xf32>
    %435 = vector.extract_strided_slice %434 {offsets = [0, 0], sizes = [8, 32], strides = [1, 1]} : vector<16x32xf32> to vector<8x32xf32>
    %c0_302 = arith.constant 0 : index
    %c0_303 = arith.constant 0 : index
    %c0_304 = arith.constant 0 : index
    %436 = vector.load %arg1[%c0_302, %c0_303, %c0_304] : memref<2x1x8xf32, #tpu.memory_space<vmem>>, vector<1x1x8xf32>
    %437 = vector.shape_cast %436 : vector<1x1x8xf32> to vector<1x8xf32>
    %cst_305 = arith.constant 0.000000e+00 : f32
    %438 = vector.broadcast %cst_305 : f32 to vector<8x32xf32>
    %c4 = arith.constant 4 : index
    %c0_306 = arith.constant 0 : index
    %c0_307 = arith.constant 0 : index
    %439 = vector.load %arg4[%c4, %c0_306, %c0_307] : memref<8x32x8xf32, #tpu.memory_space<vmem>>, vector<1x32x8xf32>
    %440 = vector.shape_cast %439 : vector<1x32x8xf32> to vector<32x8xf32>
    %cst_308 = arith.constant dense<0.000000e+00> : vector<8x8xf32>
    %441 = tpu.matmul %435, %440, %cst_308 {dimension_numbers = #tpu.dot_dimension_numbers<[1], [0], [0], [1], [0, 0, 1, 1], [], []>} : vector<8x32xf32>, vector<32x8xf32>, vector<8x8xf32> -> vector<8x8xf32>
    %c4_309 = arith.constant 4 : index
    %c0_310 = arith.constant 0 : index
    %c0_311 = arith.constant 0 : index
    %442 = vector.load %arg5[%c4_309, %c0_310, %c0_311] : memref<8x1x8xf32, #tpu.memory_space<vmem>>, vector<1x1x8xf32>
    %443 = vector.shape_cast %442 : vector<1x1x8xf32> to vector<1x8xf32>
    %444 = vector.broadcast %443 : vector<1x8xf32> to vector<8x8xf32>
    %445 = arith.addf %441, %444 : vector<8x8xf32>
    %c4_312 = arith.constant 4 : index
    %c0_313 = arith.constant 0 : index
    %c0_314 = arith.constant 0 : index
    %446 = vector.load %arg6[%c4_312, %c0_313, %c0_314] : memref<8x32x8xf32, #tpu.memory_space<vmem>>, vector<1x32x8xf32>
    %447 = vector.shape_cast %446 : vector<1x32x8xf32> to vector<32x8xf32>
    %cst_315 = arith.constant dense<0.000000e+00> : vector<8x8xf32>
    %448 = tpu.matmul %435, %447, %cst_315 {dimension_numbers = #tpu.dot_dimension_numbers<[1], [0], [0], [1], [0, 0, 1, 1], [], []>} : vector<8x32xf32>, vector<32x8xf32>, vector<8x8xf32> -> vector<8x8xf32>
    %c4_316 = arith.constant 4 : index
    %c0_317 = arith.constant 0 : index
    %c0_318 = arith.constant 0 : index
    %449 = vector.load %arg7[%c4_316, %c0_317, %c0_318] : memref<8x1x8xf32, #tpu.memory_space<vmem>>, vector<1x1x8xf32>
    %450 = vector.shape_cast %449 : vector<1x1x8xf32> to vector<1x8xf32>
    %451 = vector.broadcast %450 : vector<1x8xf32> to vector<8x8xf32>
    %452 = arith.addf %448, %451 : vector<8x8xf32>
    %c4_319 = arith.constant 4 : index
    %c0_320 = arith.constant 0 : index
    %c0_321 = arith.constant 0 : index
    %453 = vector.load %arg8[%c4_319, %c0_320, %c0_321] : memref<8x32x8xf32, #tpu.memory_space<vmem>>, vector<1x32x8xf32>
    %454 = vector.shape_cast %453 : vector<1x32x8xf32> to vector<32x8xf32>
    %cst_322 = arith.constant dense<0.000000e+00> : vector<8x8xf32>
    %455 = tpu.matmul %435, %454, %cst_322 {dimension_numbers = #tpu.dot_dimension_numbers<[1], [0], [0], [1], [0, 0, 1, 1], [], []>} : vector<8x32xf32>, vector<32x8xf32>, vector<8x8xf32> -> vector<8x8xf32>
    %c4_323 = arith.constant 4 : index
    %c0_324 = arith.constant 0 : index
    %c0_325 = arith.constant 0 : index
    %456 = vector.load %arg9[%c4_323, %c0_324, %c0_325] : memref<8x1x8xf32, #tpu.memory_space<vmem>>, vector<1x1x8xf32>
    %457 = vector.shape_cast %456 : vector<1x1x8xf32> to vector<1x8xf32>
    %458 = vector.broadcast %457 : vector<1x8xf32> to vector<8x8xf32>
    %459 = arith.addf %455, %458 : vector<8x8xf32>
    %cst_326 = arith.constant dense<0.000000e+00> : vector<8x8xf32>
    %460 = tpu.matmul %445, %452, %cst_326 {dimension_numbers = #tpu.dot_dimension_numbers<[1], [1], [0], [0], [0, 0, 1, 0], [], []>} : vector<8x8xf32>, vector<8x8xf32>, vector<8x8xf32> -> vector<8x8xf32>
    %cst_327 = arith.constant 0.353553385 : f32
    %461 = vector.broadcast %cst_327 : f32 to vector<8x8xf32>
    %462 = arith.mulf %460, %461 : vector<8x8xf32>
    %463 = vector.broadcast %437 : vector<1x8xf32> to vector<8x8xf32>
    %464 = arith.addf %462, %463 : vector<8x8xf32>
    %cst_328 = arith.constant dense<0xFF800000> : vector<8xf32>
    %465 = vector.multi_reduction <maximumf>, %464, %cst_328 [1] : vector<8x8xf32> to vector<8xf32>
    %466 = vector.shape_cast %465 : vector<8xf32> to vector<8x1xf32>
    %467 = vector.broadcast %466 : vector<8x1xf32> to vector<8x8xf32>
    %468 = arith.subf %464, %467 : vector<8x8xf32>
    %469 = math.exp %468 : vector<8x8xf32>
    %cst_329 = arith.constant dense<0.000000e+00> : vector<8xf32>
    %470 = vector.multi_reduction <add>, %469, %cst_329 [1] : vector<8x8xf32> to vector<8xf32>
    %471 = vector.shape_cast %470 : vector<8xf32> to vector<8x1xf32>
    %472 = vector.broadcast %471 : vector<8x1xf32> to vector<8x8xf32>
    %473 = arith.divf %469, %472 : vector<8x8xf32>
    %cst_330 = arith.constant dense<0.000000e+00> : vector<8x8xf32>
    %474 = tpu.matmul %473, %459, %cst_330 {dimension_numbers = #tpu.dot_dimension_numbers<[1], [0], [0], [1], [0, 0, 1, 1], [], []>} : vector<8x8xf32>, vector<8x8xf32>, vector<8x8xf32> -> vector<8x8xf32>
    %c4_331 = arith.constant 4 : index
    %c0_332 = arith.constant 0 : index
    %c0_333 = arith.constant 0 : index
    %475 = vector.load %arg10[%c4_331, %c0_332, %c0_333] : memref<8x8x32xf32, #tpu.memory_space<vmem>>, vector<1x8x32xf32>
    %476 = vector.shape_cast %475 : vector<1x8x32xf32> to vector<8x32xf32>
    %cst_334 = arith.constant dense<0.000000e+00> : vector<8x32xf32>
    %477 = tpu.matmul %474, %476, %cst_334 {dimension_numbers = #tpu.dot_dimension_numbers<[1], [0], [0], [1], [0, 0, 1, 1], [], []>} : vector<8x8xf32>, vector<8x32xf32>, vector<8x32xf32> -> vector<8x32xf32>
    %478 = arith.addf %438, %477 : vector<8x32xf32>
    %c5 = arith.constant 5 : index
    %c0_335 = arith.constant 0 : index
    %c0_336 = arith.constant 0 : index
    %479 = vector.load %arg4[%c5, %c0_335, %c0_336] : memref<8x32x8xf32, #tpu.memory_space<vmem>>, vector<1x32x8xf32>
    %480 = vector.shape_cast %479 : vector<1x32x8xf32> to vector<32x8xf32>
    %cst_337 = arith.constant dense<0.000000e+00> : vector<8x8xf32>
    %481 = tpu.matmul %435, %480, %cst_337 {dimension_numbers = #tpu.dot_dimension_numbers<[1], [0], [0], [1], [0, 0, 1, 1], [], []>} : vector<8x32xf32>, vector<32x8xf32>, vector<8x8xf32> -> vector<8x8xf32>
    %c5_338 = arith.constant 5 : index
    %c0_339 = arith.constant 0 : index
    %c0_340 = arith.constant 0 : index
    %482 = vector.load %arg5[%c5_338, %c0_339, %c0_340] : memref<8x1x8xf32, #tpu.memory_space<vmem>>, vector<1x1x8xf32>
    %483 = vector.shape_cast %482 : vector<1x1x8xf32> to vector<1x8xf32>
    %484 = vector.broadcast %483 : vector<1x8xf32> to vector<8x8xf32>
    %485 = arith.addf %481, %484 : vector<8x8xf32>
    %c5_341 = arith.constant 5 : index
    %c0_342 = arith.constant 0 : index
    %c0_343 = arith.constant 0 : index
    %486 = vector.load %arg6[%c5_341, %c0_342, %c0_343] : memref<8x32x8xf32, #tpu.memory_space<vmem>>, vector<1x32x8xf32>
    %487 = vector.shape_cast %486 : vector<1x32x8xf32> to vector<32x8xf32>
    %cst_344 = arith.constant dense<0.000000e+00> : vector<8x8xf32>
    %488 = tpu.matmul %435, %487, %cst_344 {dimension_numbers = #tpu.dot_dimension_numbers<[1], [0], [0], [1], [0, 0, 1, 1], [], []>} : vector<8x32xf32>, vector<32x8xf32>, vector<8x8xf32> -> vector<8x8xf32>
    %c5_345 = arith.constant 5 : index
    %c0_346 = arith.constant 0 : index
    %c0_347 = arith.constant 0 : index
    %489 = vector.load %arg7[%c5_345, %c0_346, %c0_347] : memref<8x1x8xf32, #tpu.memory_space<vmem>>, vector<1x1x8xf32>
    %490 = vector.shape_cast %489 : vector<1x1x8xf32> to vector<1x8xf32>
    %491 = vector.broadcast %490 : vector<1x8xf32> to vector<8x8xf32>
    %492 = arith.addf %488, %491 : vector<8x8xf32>
    %c5_348 = arith.constant 5 : index
    %c0_349 = arith.constant 0 : index
    %c0_350 = arith.constant 0 : index
    %493 = vector.load %arg8[%c5_348, %c0_349, %c0_350] : memref<8x32x8xf32, #tpu.memory_space<vmem>>, vector<1x32x8xf32>
    %494 = vector.shape_cast %493 : vector<1x32x8xf32> to vector<32x8xf32>
    %cst_351 = arith.constant dense<0.000000e+00> : vector<8x8xf32>
    %495 = tpu.matmul %435, %494, %cst_351 {dimension_numbers = #tpu.dot_dimension_numbers<[1], [0], [0], [1], [0, 0, 1, 1], [], []>} : vector<8x32xf32>, vector<32x8xf32>, vector<8x8xf32> -> vector<8x8xf32>
    %c5_352 = arith.constant 5 : index
    %c0_353 = arith.constant 0 : index
    %c0_354 = arith.constant 0 : index
    %496 = vector.load %arg9[%c5_352, %c0_353, %c0_354] : memref<8x1x8xf32, #tpu.memory_space<vmem>>, vector<1x1x8xf32>
    %497 = vector.shape_cast %496 : vector<1x1x8xf32> to vector<1x8xf32>
    %498 = vector.broadcast %497 : vector<1x8xf32> to vector<8x8xf32>
    %499 = arith.addf %495, %498 : vector<8x8xf32>
    %cst_355 = arith.constant dense<0.000000e+00> : vector<8x8xf32>
    %500 = tpu.matmul %485, %492, %cst_355 {dimension_numbers = #tpu.dot_dimension_numbers<[1], [1], [0], [0], [0, 0, 1, 0], [], []>} : vector<8x8xf32>, vector<8x8xf32>, vector<8x8xf32> -> vector<8x8xf32>
    %cst_356 = arith.constant 0.353553385 : f32
    %501 = vector.broadcast %cst_356 : f32 to vector<8x8xf32>
    %502 = arith.mulf %500, %501 : vector<8x8xf32>
    %503 = vector.broadcast %437 : vector<1x8xf32> to vector<8x8xf32>
    %504 = arith.addf %502, %503 : vector<8x8xf32>
    %cst_357 = arith.constant dense<0xFF800000> : vector<8xf32>
    %505 = vector.multi_reduction <maximumf>, %504, %cst_357 [1] : vector<8x8xf32> to vector<8xf32>
    %506 = vector.shape_cast %505 : vector<8xf32> to vector<8x1xf32>
    %507 = vector.broadcast %506 : vector<8x1xf32> to vector<8x8xf32>
    %508 = arith.subf %504, %507 : vector<8x8xf32>
    %509 = math.exp %508 : vector<8x8xf32>
    %cst_358 = arith.constant dense<0.000000e+00> : vector<8xf32>
    %510 = vector.multi_reduction <add>, %509, %cst_358 [1] : vector<8x8xf32> to vector<8xf32>
    %511 = vector.shape_cast %510 : vector<8xf32> to vector<8x1xf32>
    %512 = vector.broadcast %511 : vector<8x1xf32> to vector<8x8xf32>
    %513 = arith.divf %509, %512 : vector<8x8xf32>
    %cst_359 = arith.constant dense<0.000000e+00> : vector<8x8xf32>
    %514 = tpu.matmul %513, %499, %cst_359 {dimension_numbers = #tpu.dot_dimension_numbers<[1], [0], [0], [1], [0, 0, 1, 1], [], []>} : vector<8x8xf32>, vector<8x8xf32>, vector<8x8xf32> -> vector<8x8xf32>
    %c5_360 = arith.constant 5 : index
    %c0_361 = arith.constant 0 : index
    %c0_362 = arith.constant 0 : index
    %515 = vector.load %arg10[%c5_360, %c0_361, %c0_362] : memref<8x8x32xf32, #tpu.memory_space<vmem>>, vector<1x8x32xf32>
    %516 = vector.shape_cast %515 : vector<1x8x32xf32> to vector<8x32xf32>
    %cst_363 = arith.constant dense<0.000000e+00> : vector<8x32xf32>
    %517 = tpu.matmul %514, %516, %cst_363 {dimension_numbers = #tpu.dot_dimension_numbers<[1], [0], [0], [1], [0, 0, 1, 1], [], []>} : vector<8x8xf32>, vector<8x32xf32>, vector<8x32xf32> -> vector<8x32xf32>
    %518 = arith.addf %478, %517 : vector<8x32xf32>
    %c6 = arith.constant 6 : index
    %c0_364 = arith.constant 0 : index
    %c0_365 = arith.constant 0 : index
    %519 = vector.load %arg4[%c6, %c0_364, %c0_365] : memref<8x32x8xf32, #tpu.memory_space<vmem>>, vector<1x32x8xf32>
    %520 = vector.shape_cast %519 : vector<1x32x8xf32> to vector<32x8xf32>
    %cst_366 = arith.constant dense<0.000000e+00> : vector<8x8xf32>
    %521 = tpu.matmul %435, %520, %cst_366 {dimension_numbers = #tpu.dot_dimension_numbers<[1], [0], [0], [1], [0, 0, 1, 1], [], []>} : vector<8x32xf32>, vector<32x8xf32>, vector<8x8xf32> -> vector<8x8xf32>
    %c6_367 = arith.constant 6 : index
    %c0_368 = arith.constant 0 : index
    %c0_369 = arith.constant 0 : index
    %522 = vector.load %arg5[%c6_367, %c0_368, %c0_369] : memref<8x1x8xf32, #tpu.memory_space<vmem>>, vector<1x1x8xf32>
    %523 = vector.shape_cast %522 : vector<1x1x8xf32> to vector<1x8xf32>
    %524 = vector.broadcast %523 : vector<1x8xf32> to vector<8x8xf32>
    %525 = arith.addf %521, %524 : vector<8x8xf32>
    %c6_370 = arith.constant 6 : index
    %c0_371 = arith.constant 0 : index
    %c0_372 = arith.constant 0 : index
    %526 = vector.load %arg6[%c6_370, %c0_371, %c0_372] : memref<8x32x8xf32, #tpu.memory_space<vmem>>, vector<1x32x8xf32>
    %527 = vector.shape_cast %526 : vector<1x32x8xf32> to vector<32x8xf32>
    %cst_373 = arith.constant dense<0.000000e+00> : vector<8x8xf32>
    %528 = tpu.matmul %435, %527, %cst_373 {dimension_numbers = #tpu.dot_dimension_numbers<[1], [0], [0], [1], [0, 0, 1, 1], [], []>} : vector<8x32xf32>, vector<32x8xf32>, vector<8x8xf32> -> vector<8x8xf32>
    %c6_374 = arith.constant 6 : index
    %c0_375 = arith.constant 0 : index
    %c0_376 = arith.constant 0 : index
    %529 = vector.load %arg7[%c6_374, %c0_375, %c0_376] : memref<8x1x8xf32, #tpu.memory_space<vmem>>, vector<1x1x8xf32>
    %530 = vector.shape_cast %529 : vector<1x1x8xf32> to vector<1x8xf32>
    %531 = vector.broadcast %530 : vector<1x8xf32> to vector<8x8xf32>
    %532 = arith.addf %528, %531 : vector<8x8xf32>
    %c6_377 = arith.constant 6 : index
    %c0_378 = arith.constant 0 : index
    %c0_379 = arith.constant 0 : index
    %533 = vector.load %arg8[%c6_377, %c0_378, %c0_379] : memref<8x32x8xf32, #tpu.memory_space<vmem>>, vector<1x32x8xf32>
    %534 = vector.shape_cast %533 : vector<1x32x8xf32> to vector<32x8xf32>
    %cst_380 = arith.constant dense<0.000000e+00> : vector<8x8xf32>
    %535 = tpu.matmul %435, %534, %cst_380 {dimension_numbers = #tpu.dot_dimension_numbers<[1], [0], [0], [1], [0, 0, 1, 1], [], []>} : vector<8x32xf32>, vector<32x8xf32>, vector<8x8xf32> -> vector<8x8xf32>
    %c6_381 = arith.constant 6 : index
    %c0_382 = arith.constant 0 : index
    %c0_383 = arith.constant 0 : index
    %536 = vector.load %arg9[%c6_381, %c0_382, %c0_383] : memref<8x1x8xf32, #tpu.memory_space<vmem>>, vector<1x1x8xf32>
    %537 = vector.shape_cast %536 : vector<1x1x8xf32> to vector<1x8xf32>
    %538 = vector.broadcast %537 : vector<1x8xf32> to vector<8x8xf32>
    %539 = arith.addf %535, %538 : vector<8x8xf32>
    %cst_384 = arith.constant dense<0.000000e+00> : vector<8x8xf32>
    %540 = tpu.matmul %525, %532, %cst_384 {dimension_numbers = #tpu.dot_dimension_numbers<[1], [1], [0], [0], [0, 0, 1, 0], [], []>} : vector<8x8xf32>, vector<8x8xf32>, vector<8x8xf32> -> vector<8x8xf32>
    %cst_385 = arith.constant 0.353553385 : f32
    %541 = vector.broadcast %cst_385 : f32 to vector<8x8xf32>
    %542 = arith.mulf %540, %541 : vector<8x8xf32>
    %543 = vector.broadcast %437 : vector<1x8xf32> to vector<8x8xf32>
    %544 = arith.addf %542, %543 : vector<8x8xf32>
    %cst_386 = arith.constant dense<0xFF800000> : vector<8xf32>
    %545 = vector.multi_reduction <maximumf>, %544, %cst_386 [1] : vector<8x8xf32> to vector<8xf32>
    %546 = vector.shape_cast %545 : vector<8xf32> to vector<8x1xf32>
    %547 = vector.broadcast %546 : vector<8x1xf32> to vector<8x8xf32>
    %548 = arith.subf %544, %547 : vector<8x8xf32>
    %549 = math.exp %548 : vector<8x8xf32>
    %cst_387 = arith.constant dense<0.000000e+00> : vector<8xf32>
    %550 = vector.multi_reduction <add>, %549, %cst_387 [1] : vector<8x8xf32> to vector<8xf32>
    %551 = vector.shape_cast %550 : vector<8xf32> to vector<8x1xf32>
    %552 = vector.broadcast %551 : vector<8x1xf32> to vector<8x8xf32>
    %553 = arith.divf %549, %552 : vector<8x8xf32>
    %cst_388 = arith.constant dense<0.000000e+00> : vector<8x8xf32>
    %554 = tpu.matmul %553, %539, %cst_388 {dimension_numbers = #tpu.dot_dimension_numbers<[1], [0], [0], [1], [0, 0, 1, 1], [], []>} : vector<8x8xf32>, vector<8x8xf32>, vector<8x8xf32> -> vector<8x8xf32>
    %c6_389 = arith.constant 6 : index
    %c0_390 = arith.constant 0 : index
    %c0_391 = arith.constant 0 : index
    %555 = vector.load %arg10[%c6_389, %c0_390, %c0_391] : memref<8x8x32xf32, #tpu.memory_space<vmem>>, vector<1x8x32xf32>
    %556 = vector.shape_cast %555 : vector<1x8x32xf32> to vector<8x32xf32>
    %cst_392 = arith.constant dense<0.000000e+00> : vector<8x32xf32>
    %557 = tpu.matmul %554, %556, %cst_392 {dimension_numbers = #tpu.dot_dimension_numbers<[1], [0], [0], [1], [0, 0, 1, 1], [], []>} : vector<8x8xf32>, vector<8x32xf32>, vector<8x32xf32> -> vector<8x32xf32>
    %558 = arith.addf %518, %557 : vector<8x32xf32>
    %c7 = arith.constant 7 : index
    %c0_393 = arith.constant 0 : index
    %c0_394 = arith.constant 0 : index
    %559 = vector.load %arg4[%c7, %c0_393, %c0_394] : memref<8x32x8xf32, #tpu.memory_space<vmem>>, vector<1x32x8xf32>
    %560 = vector.shape_cast %559 : vector<1x32x8xf32> to vector<32x8xf32>
    %cst_395 = arith.constant dense<0.000000e+00> : vector<8x8xf32>
    %561 = tpu.matmul %435, %560, %cst_395 {dimension_numbers = #tpu.dot_dimension_numbers<[1], [0], [0], [1], [0, 0, 1, 1], [], []>} : vector<8x32xf32>, vector<32x8xf32>, vector<8x8xf32> -> vector<8x8xf32>
    %c7_396 = arith.constant 7 : index
    %c0_397 = arith.constant 0 : index
    %c0_398 = arith.constant 0 : index
    %562 = vector.load %arg5[%c7_396, %c0_397, %c0_398] : memref<8x1x8xf32, #tpu.memory_space<vmem>>, vector<1x1x8xf32>
    %563 = vector.shape_cast %562 : vector<1x1x8xf32> to vector<1x8xf32>
    %564 = vector.broadcast %563 : vector<1x8xf32> to vector<8x8xf32>
    %565 = arith.addf %561, %564 : vector<8x8xf32>
    %c7_399 = arith.constant 7 : index
    %c0_400 = arith.constant 0 : index
    %c0_401 = arith.constant 0 : index
    %566 = vector.load %arg6[%c7_399, %c0_400, %c0_401] : memref<8x32x8xf32, #tpu.memory_space<vmem>>, vector<1x32x8xf32>
    %567 = vector.shape_cast %566 : vector<1x32x8xf32> to vector<32x8xf32>
    %cst_402 = arith.constant dense<0.000000e+00> : vector<8x8xf32>
    %568 = tpu.matmul %435, %567, %cst_402 {dimension_numbers = #tpu.dot_dimension_numbers<[1], [0], [0], [1], [0, 0, 1, 1], [], []>} : vector<8x32xf32>, vector<32x8xf32>, vector<8x8xf32> -> vector<8x8xf32>
    %c7_403 = arith.constant 7 : index
    %c0_404 = arith.constant 0 : index
    %c0_405 = arith.constant 0 : index
    %569 = vector.load %arg7[%c7_403, %c0_404, %c0_405] : memref<8x1x8xf32, #tpu.memory_space<vmem>>, vector<1x1x8xf32>
    %570 = vector.shape_cast %569 : vector<1x1x8xf32> to vector<1x8xf32>
    %571 = vector.broadcast %570 : vector<1x8xf32> to vector<8x8xf32>
    %572 = arith.addf %568, %571 : vector<8x8xf32>
    %c7_406 = arith.constant 7 : index
    %c0_407 = arith.constant 0 : index
    %c0_408 = arith.constant 0 : index
    %573 = vector.load %arg8[%c7_406, %c0_407, %c0_408] : memref<8x32x8xf32, #tpu.memory_space<vmem>>, vector<1x32x8xf32>
    %574 = vector.shape_cast %573 : vector<1x32x8xf32> to vector<32x8xf32>
    %cst_409 = arith.constant dense<0.000000e+00> : vector<8x8xf32>
    %575 = tpu.matmul %435, %574, %cst_409 {dimension_numbers = #tpu.dot_dimension_numbers<[1], [0], [0], [1], [0, 0, 1, 1], [], []>} : vector<8x32xf32>, vector<32x8xf32>, vector<8x8xf32> -> vector<8x8xf32>
    %c7_410 = arith.constant 7 : index
    %c0_411 = arith.constant 0 : index
    %c0_412 = arith.constant 0 : index
    %576 = vector.load %arg9[%c7_410, %c0_411, %c0_412] : memref<8x1x8xf32, #tpu.memory_space<vmem>>, vector<1x1x8xf32>
    %577 = vector.shape_cast %576 : vector<1x1x8xf32> to vector<1x8xf32>
    %578 = vector.broadcast %577 : vector<1x8xf32> to vector<8x8xf32>
    %579 = arith.addf %575, %578 : vector<8x8xf32>
    %cst_413 = arith.constant dense<0.000000e+00> : vector<8x8xf32>
    %580 = tpu.matmul %565, %572, %cst_413 {dimension_numbers = #tpu.dot_dimension_numbers<[1], [1], [0], [0], [0, 0, 1, 0], [], []>} : vector<8x8xf32>, vector<8x8xf32>, vector<8x8xf32> -> vector<8x8xf32>
    %cst_414 = arith.constant 0.353553385 : f32
    %581 = vector.broadcast %cst_414 : f32 to vector<8x8xf32>
    %582 = arith.mulf %580, %581 : vector<8x8xf32>
    %583 = vector.broadcast %437 : vector<1x8xf32> to vector<8x8xf32>
    %584 = arith.addf %582, %583 : vector<8x8xf32>
    %cst_415 = arith.constant dense<0xFF800000> : vector<8xf32>
    %585 = vector.multi_reduction <maximumf>, %584, %cst_415 [1] : vector<8x8xf32> to vector<8xf32>
    %586 = vector.shape_cast %585 : vector<8xf32> to vector<8x1xf32>
    %587 = vector.broadcast %586 : vector<8x1xf32> to vector<8x8xf32>
    %588 = arith.subf %584, %587 : vector<8x8xf32>
    %589 = math.exp %588 : vector<8x8xf32>
    %cst_416 = arith.constant dense<0.000000e+00> : vector<8xf32>
    %590 = vector.multi_reduction <add>, %589, %cst_416 [1] : vector<8x8xf32> to vector<8xf32>
    %591 = vector.shape_cast %590 : vector<8xf32> to vector<8x1xf32>
    %592 = vector.broadcast %591 : vector<8x1xf32> to vector<8x8xf32>
    %593 = arith.divf %589, %592 : vector<8x8xf32>
    %cst_417 = arith.constant dense<0.000000e+00> : vector<8x8xf32>
    %594 = tpu.matmul %593, %579, %cst_417 {dimension_numbers = #tpu.dot_dimension_numbers<[1], [0], [0], [1], [0, 0, 1, 1], [], []>} : vector<8x8xf32>, vector<8x8xf32>, vector<8x8xf32> -> vector<8x8xf32>
    %c7_418 = arith.constant 7 : index
    %c0_419 = arith.constant 0 : index
    %c0_420 = arith.constant 0 : index
    %595 = vector.load %arg10[%c7_418, %c0_419, %c0_420] : memref<8x8x32xf32, #tpu.memory_space<vmem>>, vector<1x8x32xf32>
    %596 = vector.shape_cast %595 : vector<1x8x32xf32> to vector<8x32xf32>
    %cst_421 = arith.constant dense<0.000000e+00> : vector<8x32xf32>
    %597 = tpu.matmul %594, %596, %cst_421 {dimension_numbers = #tpu.dot_dimension_numbers<[1], [0], [0], [1], [0, 0, 1, 1], [], []>} : vector<8x8xf32>, vector<8x32xf32>, vector<8x32xf32> -> vector<8x32xf32>
    %598 = arith.addf %558, %597 : vector<8x32xf32>
    %c0_422 = arith.constant 0 : index
    %c0_423 = arith.constant 0 : index
    %599 = vector.load %arg25[%c0_422, %c0_423] : memref<16x32xf32, #tpu.memory_space<vmem>>, vector<8x32xf32>
    tpu.vector_store %arg25[%c0_422, %c0_423], %598 {strides = array<i32>} : memref<16x32xf32, #tpu.memory_space<vmem>>, vector<8x32xf32>,
    %600 = vector.extract_strided_slice %434 {offsets = [8, 0], sizes = [8, 32], strides = [1, 1]} : vector<16x32xf32> to vector<8x32xf32>
    %c1_424 = arith.constant 1 : index
    %c0_425 = arith.constant 0 : index
    %c0_426 = arith.constant 0 : index
    %601 = vector.load %arg1[%c1_424, %c0_425, %c0_426] : memref<2x1x8xf32, #tpu.memory_space<vmem>>, vector<1x1x8xf32>
    %602 = vector.shape_cast %601 : vector<1x1x8xf32> to vector<1x8xf32>
    %cst_427 = arith.constant 0.000000e+00 : f32
    %603 = vector.broadcast %cst_427 : f32 to vector<8x32xf32>
    %c4_428 = arith.constant 4 : index
    %c0_429 = arith.constant 0 : index
    %c0_430 = arith.constant 0 : index
    %604 = vector.load %arg4[%c4_428, %c0_429, %c0_430] : memref<8x32x8xf32, #tpu.memory_space<vmem>>, vector<1x32x8xf32>
    %605 = vector.shape_cast %604 : vector<1x32x8xf32> to vector<32x8xf32>
    %cst_431 = arith.constant dense<0.000000e+00> : vector<8x8xf32>
    %606 = tpu.matmul %600, %605, %cst_431 {dimension_numbers = #tpu.dot_dimension_numbers<[1], [0], [0], [1], [0, 0, 1, 1], [], []>} : vector<8x32xf32>, vector<32x8xf32>, vector<8x8xf32> -> vector<8x8xf32>
    %c4_432 = arith.constant 4 : index
    %c0_433 = arith.constant 0 : index
    %c0_434 = arith.constant 0 : index
    %607 = vector.load %arg5[%c4_432, %c0_433, %c0_434] : memref<8x1x8xf32, #tpu.memory_space<vmem>>, vector<1x1x8xf32>
    %608 = vector.shape_cast %607 : vector<1x1x8xf32> to vector<1x8xf32>
    %609 = vector.broadcast %608 : vector<1x8xf32> to vector<8x8xf32>
    %610 = arith.addf %606, %609 : vector<8x8xf32>
    %c4_435 = arith.constant 4 : index
    %c0_436 = arith.constant 0 : index
    %c0_437 = arith.constant 0 : index
    %611 = vector.load %arg6[%c4_435, %c0_436, %c0_437] : memref<8x32x8xf32, #tpu.memory_space<vmem>>, vector<1x32x8xf32>
    %612 = vector.shape_cast %611 : vector<1x32x8xf32> to vector<32x8xf32>
    %cst_438 = arith.constant dense<0.000000e+00> : vector<8x8xf32>
    %613 = tpu.matmul %600, %612, %cst_438 {dimension_numbers = #tpu.dot_dimension_numbers<[1], [0], [0], [1], [0, 0, 1, 1], [], []>} : vector<8x32xf32>, vector<32x8xf32>, vector<8x8xf32> -> vector<8x8xf32>
    %c4_439 = arith.constant 4 : index
    %c0_440 = arith.constant 0 : index
    %c0_441 = arith.constant 0 : index
    %614 = vector.load %arg7[%c4_439, %c0_440, %c0_441] : memref<8x1x8xf32, #tpu.memory_space<vmem>>, vector<1x1x8xf32>
    %615 = vector.shape_cast %614 : vector<1x1x8xf32> to vector<1x8xf32>
    %616 = vector.broadcast %615 : vector<1x8xf32> to vector<8x8xf32>
    %617 = arith.addf %613, %616 : vector<8x8xf32>
    %c4_442 = arith.constant 4 : index
    %c0_443 = arith.constant 0 : index
    %c0_444 = arith.constant 0 : index
    %618 = vector.load %arg8[%c4_442, %c0_443, %c0_444] : memref<8x32x8xf32, #tpu.memory_space<vmem>>, vector<1x32x8xf32>
    %619 = vector.shape_cast %618 : vector<1x32x8xf32> to vector<32x8xf32>
    %cst_445 = arith.constant dense<0.000000e+00> : vector<8x8xf32>
    %620 = tpu.matmul %600, %619, %cst_445 {dimension_numbers = #tpu.dot_dimension_numbers<[1], [0], [0], [1], [0, 0, 1, 1], [], []>} : vector<8x32xf32>, vector<32x8xf32>, vector<8x8xf32> -> vector<8x8xf32>
    %c4_446 = arith.constant 4 : index
    %c0_447 = arith.constant 0 : index
    %c0_448 = arith.constant 0 : index
    %621 = vector.load %arg9[%c4_446, %c0_447, %c0_448] : memref<8x1x8xf32, #tpu.memory_space<vmem>>, vector<1x1x8xf32>
    %622 = vector.shape_cast %621 : vector<1x1x8xf32> to vector<1x8xf32>
    %623 = vector.broadcast %622 : vector<1x8xf32> to vector<8x8xf32>
    %624 = arith.addf %620, %623 : vector<8x8xf32>
    %cst_449 = arith.constant dense<0.000000e+00> : vector<8x8xf32>
    %625 = tpu.matmul %610, %617, %cst_449 {dimension_numbers = #tpu.dot_dimension_numbers<[1], [1], [0], [0], [0, 0, 1, 0], [], []>} : vector<8x8xf32>, vector<8x8xf32>, vector<8x8xf32> -> vector<8x8xf32>
    %cst_450 = arith.constant 0.353553385 : f32
    %626 = vector.broadcast %cst_450 : f32 to vector<8x8xf32>
    %627 = arith.mulf %625, %626 : vector<8x8xf32>
    %628 = vector.broadcast %602 : vector<1x8xf32> to vector<8x8xf32>
    %629 = arith.addf %627, %628 : vector<8x8xf32>
    %cst_451 = arith.constant dense<0xFF800000> : vector<8xf32>
    %630 = vector.multi_reduction <maximumf>, %629, %cst_451 [1] : vector<8x8xf32> to vector<8xf32>
    %631 = vector.shape_cast %630 : vector<8xf32> to vector<8x1xf32>
    %632 = vector.broadcast %631 : vector<8x1xf32> to vector<8x8xf32>
    %633 = arith.subf %629, %632 : vector<8x8xf32>
    %634 = math.exp %633 : vector<8x8xf32>
    %cst_452 = arith.constant dense<0.000000e+00> : vector<8xf32>
    %635 = vector.multi_reduction <add>, %634, %cst_452 [1] : vector<8x8xf32> to vector<8xf32>
    %636 = vector.shape_cast %635 : vector<8xf32> to vector<8x1xf32>
    %637 = vector.broadcast %636 : vector<8x1xf32> to vector<8x8xf32>
    %638 = arith.divf %634, %637 : vector<8x8xf32>
    %cst_453 = arith.constant dense<0.000000e+00> : vector<8x8xf32>
    %639 = tpu.matmul %638, %624, %cst_453 {dimension_numbers = #tpu.dot_dimension_numbers<[1], [0], [0], [1], [0, 0, 1, 1], [], []>} : vector<8x8xf32>, vector<8x8xf32>, vector<8x8xf32> -> vector<8x8xf32>
    %c4_454 = arith.constant 4 : index
    %c0_455 = arith.constant 0 : index
    %c0_456 = arith.constant 0 : index
    %640 = vector.load %arg10[%c4_454, %c0_455, %c0_456] : memref<8x8x32xf32, #tpu.memory_space<vmem>>, vector<1x8x32xf32>
    %641 = vector.shape_cast %640 : vector<1x8x32xf32> to vector<8x32xf32>
    %cst_457 = arith.constant dense<0.000000e+00> : vector<8x32xf32>
    %642 = tpu.matmul %639, %641, %cst_457 {dimension_numbers = #tpu.dot_dimension_numbers<[1], [0], [0], [1], [0, 0, 1, 1], [], []>} : vector<8x8xf32>, vector<8x32xf32>, vector<8x32xf32> -> vector<8x32xf32>
    %643 = arith.addf %603, %642 : vector<8x32xf32>
    %c5_458 = arith.constant 5 : index
    %c0_459 = arith.constant 0 : index
    %c0_460 = arith.constant 0 : index
    %644 = vector.load %arg4[%c5_458, %c0_459, %c0_460] : memref<8x32x8xf32, #tpu.memory_space<vmem>>, vector<1x32x8xf32>
    %645 = vector.shape_cast %644 : vector<1x32x8xf32> to vector<32x8xf32>
    %cst_461 = arith.constant dense<0.000000e+00> : vector<8x8xf32>
    %646 = tpu.matmul %600, %645, %cst_461 {dimension_numbers = #tpu.dot_dimension_numbers<[1], [0], [0], [1], [0, 0, 1, 1], [], []>} : vector<8x32xf32>, vector<32x8xf32>, vector<8x8xf32> -> vector<8x8xf32>
    %c5_462 = arith.constant 5 : index
    %c0_463 = arith.constant 0 : index
    %c0_464 = arith.constant 0 : index
    %647 = vector.load %arg5[%c5_462, %c0_463, %c0_464] : memref<8x1x8xf32, #tpu.memory_space<vmem>>, vector<1x1x8xf32>
    %648 = vector.shape_cast %647 : vector<1x1x8xf32> to vector<1x8xf32>
    %649 = vector.broadcast %648 : vector<1x8xf32> to vector<8x8xf32>
    %650 = arith.addf %646, %649 : vector<8x8xf32>
    %c5_465 = arith.constant 5 : index
    %c0_466 = arith.constant 0 : index
    %c0_467 = arith.constant 0 : index
    %651 = vector.load %arg6[%c5_465, %c0_466, %c0_467] : memref<8x32x8xf32, #tpu.memory_space<vmem>>, vector<1x32x8xf32>
    %652 = vector.shape_cast %651 : vector<1x32x8xf32> to vector<32x8xf32>
    %cst_468 = arith.constant dense<0.000000e+00> : vector<8x8xf32>
    %653 = tpu.matmul %600, %652, %cst_468 {dimension_numbers = #tpu.dot_dimension_numbers<[1], [0], [0], [1], [0, 0, 1, 1], [], []>} : vector<8x32xf32>, vector<32x8xf32>, vector<8x8xf32> -> vector<8x8xf32>
    %c5_469 = arith.constant 5 : index
    %c0_470 = arith.constant 0 : index
    %c0_471 = arith.constant 0 : index
    %654 = vector.load %arg7[%c5_469, %c0_470, %c0_471] : memref<8x1x8xf32, #tpu.memory_space<vmem>>, vector<1x1x8xf32>
    %655 = vector.shape_cast %654 : vector<1x1x8xf32> to vector<1x8xf32>
    %656 = vector.broadcast %655 : vector<1x8xf32> to vector<8x8xf32>
    %657 = arith.addf %653, %656 : vector<8x8xf32>
    %c5_472 = arith.constant 5 : index
    %c0_473 = arith.constant 0 : index
    %c0_474 = arith.constant 0 : index
    %658 = vector.load %arg8[%c5_472, %c0_473, %c0_474] : memref<8x32x8xf32, #tpu.memory_space<vmem>>, vector<1x32x8xf32>
    %659 = vector.shape_cast %658 : vector<1x32x8xf32> to vector<32x8xf32>
    %cst_475 = arith.constant dense<0.000000e+00> : vector<8x8xf32>
    %660 = tpu.matmul %600, %659, %cst_475 {dimension_numbers = #tpu.dot_dimension_numbers<[1], [0], [0], [1], [0, 0, 1, 1], [], []>} : vector<8x32xf32>, vector<32x8xf32>, vector<8x8xf32> -> vector<8x8xf32>
    %c5_476 = arith.constant 5 : index
    %c0_477 = arith.constant 0 : index
    %c0_478 = arith.constant 0 : index
    %661 = vector.load %arg9[%c5_476, %c0_477, %c0_478] : memref<8x1x8xf32, #tpu.memory_space<vmem>>, vector<1x1x8xf32>
    %662 = vector.shape_cast %661 : vector<1x1x8xf32> to vector<1x8xf32>
    %663 = vector.broadcast %662 : vector<1x8xf32> to vector<8x8xf32>
    %664 = arith.addf %660, %663 : vector<8x8xf32>
    %cst_479 = arith.constant dense<0.000000e+00> : vector<8x8xf32>
    %665 = tpu.matmul %650, %657, %cst_479 {dimension_numbers = #tpu.dot_dimension_numbers<[1], [1], [0], [0], [0, 0, 1, 0], [], []>} : vector<8x8xf32>, vector<8x8xf32>, vector<8x8xf32> -> vector<8x8xf32>
    %cst_480 = arith.constant 0.353553385 : f32
    %666 = vector.broadcast %cst_480 : f32 to vector<8x8xf32>
    %667 = arith.mulf %665, %666 : vector<8x8xf32>
    %668 = vector.broadcast %602 : vector<1x8xf32> to vector<8x8xf32>
    %669 = arith.addf %667, %668 : vector<8x8xf32>
    %cst_481 = arith.constant dense<0xFF800000> : vector<8xf32>
    %670 = vector.multi_reduction <maximumf>, %669, %cst_481 [1] : vector<8x8xf32> to vector<8xf32>
    %671 = vector.shape_cast %670 : vector<8xf32> to vector<8x1xf32>
    %672 = vector.broadcast %671 : vector<8x1xf32> to vector<8x8xf32>
    %673 = arith.subf %669, %672 : vector<8x8xf32>
    %674 = math.exp %673 : vector<8x8xf32>
    %cst_482 = arith.constant dense<0.000000e+00> : vector<8xf32>
    %675 = vector.multi_reduction <add>, %674, %cst_482 [1] : vector<8x8xf32> to vector<8xf32>
    %676 = vector.shape_cast %675 : vector<8xf32> to vector<8x1xf32>
    %677 = vector.broadcast %676 : vector<8x1xf32> to vector<8x8xf32>
    %678 = arith.divf %674, %677 : vector<8x8xf32>
    %cst_483 = arith.constant dense<0.000000e+00> : vector<8x8xf32>
    %679 = tpu.matmul %678, %664, %cst_483 {dimension_numbers = #tpu.dot_dimension_numbers<[1], [0], [0], [1], [0, 0, 1, 1], [], []>} : vector<8x8xf32>, vector<8x8xf32>, vector<8x8xf32> -> vector<8x8xf32>
    %c5_484 = arith.constant 5 : index
    %c0_485 = arith.constant 0 : index
    %c0_486 = arith.constant 0 : index
    %680 = vector.load %arg10[%c5_484, %c0_485, %c0_486] : memref<8x8x32xf32, #tpu.memory_space<vmem>>, vector<1x8x32xf32>
    %681 = vector.shape_cast %680 : vector<1x8x32xf32> to vector<8x32xf32>
    %cst_487 = arith.constant dense<0.000000e+00> : vector<8x32xf32>
    %682 = tpu.matmul %679, %681, %cst_487 {dimension_numbers = #tpu.dot_dimension_numbers<[1], [0], [0], [1], [0, 0, 1, 1], [], []>} : vector<8x8xf32>, vector<8x32xf32>, vector<8x32xf32> -> vector<8x32xf32>
    %683 = arith.addf %643, %682 : vector<8x32xf32>
    %c6_488 = arith.constant 6 : index
    %c0_489 = arith.constant 0 : index
    %c0_490 = arith.constant 0 : index
    %684 = vector.load %arg4[%c6_488, %c0_489, %c0_490] : memref<8x32x8xf32, #tpu.memory_space<vmem>>, vector<1x32x8xf32>
    %685 = vector.shape_cast %684 : vector<1x32x8xf32> to vector<32x8xf32>
    %cst_491 = arith.constant dense<0.000000e+00> : vector<8x8xf32>
    %686 = tpu.matmul %600, %685, %cst_491 {dimension_numbers = #tpu.dot_dimension_numbers<[1], [0], [0], [1], [0, 0, 1, 1], [], []>} : vector<8x32xf32>, vector<32x8xf32>, vector<8x8xf32> -> vector<8x8xf32>
    %c6_492 = arith.constant 6 : index
    %c0_493 = arith.constant 0 : index
    %c0_494 = arith.constant 0 : index
    %687 = vector.load %arg5[%c6_492, %c0_493, %c0_494] : memref<8x1x8xf32, #tpu.memory_space<vmem>>, vector<1x1x8xf32>
    %688 = vector.shape_cast %687 : vector<1x1x8xf32> to vector<1x8xf32>
    %689 = vector.broadcast %688 : vector<1x8xf32> to vector<8x8xf32>
    %690 = arith.addf %686, %689 : vector<8x8xf32>
    %c6_495 = arith.constant 6 : index
    %c0_496 = arith.constant 0 : index
    %c0_497 = arith.constant 0 : index
    %691 = vector.load %arg6[%c6_495, %c0_496, %c0_497] : memref<8x32x8xf32, #tpu.memory_space<vmem>>, vector<1x32x8xf32>
    %692 = vector.shape_cast %691 : vector<1x32x8xf32> to vector<32x8xf32>
    %cst_498 = arith.constant dense<0.000000e+00> : vector<8x8xf32>
    %693 = tpu.matmul %600, %692, %cst_498 {dimension_numbers = #tpu.dot_dimension_numbers<[1], [0], [0], [1], [0, 0, 1, 1], [], []>} : vector<8x32xf32>, vector<32x8xf32>, vector<8x8xf32> -> vector<8x8xf32>
    %c6_499 = arith.constant 6 : index
    %c0_500 = arith.constant 0 : index
    %c0_501 = arith.constant 0 : index
    %694 = vector.load %arg7[%c6_499, %c0_500, %c0_501] : memref<8x1x8xf32, #tpu.memory_space<vmem>>, vector<1x1x8xf32>
    %695 = vector.shape_cast %694 : vector<1x1x8xf32> to vector<1x8xf32>
    %696 = vector.broadcast %695 : vector<1x8xf32> to vector<8x8xf32>
    %697 = arith.addf %693, %696 : vector<8x8xf32>
    %c6_502 = arith.constant 6 : index
    %c0_503 = arith.constant 0 : index
    %c0_504 = arith.constant 0 : index
    %698 = vector.load %arg8[%c6_502, %c0_503, %c0_504] : memref<8x32x8xf32, #tpu.memory_space<vmem>>, vector<1x32x8xf32>
    %699 = vector.shape_cast %698 : vector<1x32x8xf32> to vector<32x8xf32>
    %cst_505 = arith.constant dense<0.000000e+00> : vector<8x8xf32>
    %700 = tpu.matmul %600, %699, %cst_505 {dimension_numbers = #tpu.dot_dimension_numbers<[1], [0], [0], [1], [0, 0, 1, 1], [], []>} : vector<8x32xf32>, vector<32x8xf32>, vector<8x8xf32> -> vector<8x8xf32>
    %c6_506 = arith.constant 6 : index
    %c0_507 = arith.constant 0 : index
    %c0_508 = arith.constant 0 : index
    %701 = vector.load %arg9[%c6_506, %c0_507, %c0_508] : memref<8x1x8xf32, #tpu.memory_space<vmem>>, vector<1x1x8xf32>
    %702 = vector.shape_cast %701 : vector<1x1x8xf32> to vector<1x8xf32>
    %703 = vector.broadcast %702 : vector<1x8xf32> to vector<8x8xf32>
    %704 = arith.addf %700, %703 : vector<8x8xf32>
    %cst_509 = arith.constant dense<0.000000e+00> : vector<8x8xf32>
    %705 = tpu.matmul %690, %697, %cst_509 {dimension_numbers = #tpu.dot_dimension_numbers<[1], [1], [0], [0], [0, 0, 1, 0], [], []>} : vector<8x8xf32>, vector<8x8xf32>, vector<8x8xf32> -> vector<8x8xf32>
    %cst_510 = arith.constant 0.353553385 : f32
    %706 = vector.broadcast %cst_510 : f32 to vector<8x8xf32>
    %707 = arith.mulf %705, %706 : vector<8x8xf32>
    %708 = vector.broadcast %602 : vector<1x8xf32> to vector<8x8xf32>
    %709 = arith.addf %707, %708 : vector<8x8xf32>
    %cst_511 = arith.constant dense<0xFF800000> : vector<8xf32>
    %710 = vector.multi_reduction <maximumf>, %709, %cst_511 [1] : vector<8x8xf32> to vector<8xf32>
    %711 = vector.shape_cast %710 : vector<8xf32> to vector<8x1xf32>
    %712 = vector.broadcast %711 : vector<8x1xf32> to vector<8x8xf32>
    %713 = arith.subf %709, %712 : vector<8x8xf32>
    %714 = math.exp %713 : vector<8x8xf32>
    %cst_512 = arith.constant dense<0.000000e+00> : vector<8xf32>
    %715 = vector.multi_reduction <add>, %714, %cst_512 [1] : vector<8x8xf32> to vector<8xf32>
    %716 = vector.shape_cast %715 : vector<8xf32> to vector<8x1xf32>
    %717 = vector.broadcast %716 : vector<8x1xf32> to vector<8x8xf32>
    %718 = arith.divf %714, %717 : vector<8x8xf32>
    %cst_513 = arith.constant dense<0.000000e+00> : vector<8x8xf32>
    %719 = tpu.matmul %718, %704, %cst_513 {dimension_numbers = #tpu.dot_dimension_numbers<[1], [0], [0], [1], [0, 0, 1, 1], [], []>} : vector<8x8xf32>, vector<8x8xf32>, vector<8x8xf32> -> vector<8x8xf32>
    %c6_514 = arith.constant 6 : index
    %c0_515 = arith.constant 0 : index
    %c0_516 = arith.constant 0 : index
    %720 = vector.load %arg10[%c6_514, %c0_515, %c0_516] : memref<8x8x32xf32, #tpu.memory_space<vmem>>, vector<1x8x32xf32>
    %721 = vector.shape_cast %720 : vector<1x8x32xf32> to vector<8x32xf32>
    %cst_517 = arith.constant dense<0.000000e+00> : vector<8x32xf32>
    %722 = tpu.matmul %719, %721, %cst_517 {dimension_numbers = #tpu.dot_dimension_numbers<[1], [0], [0], [1], [0, 0, 1, 1], [], []>} : vector<8x8xf32>, vector<8x32xf32>, vector<8x32xf32> -> vector<8x32xf32>
    %723 = arith.addf %683, %722 : vector<8x32xf32>
    %c7_518 = arith.constant 7 : index
    %c0_519 = arith.constant 0 : index
    %c0_520 = arith.constant 0 : index
    %724 = vector.load %arg4[%c7_518, %c0_519, %c0_520] : memref<8x32x8xf32, #tpu.memory_space<vmem>>, vector<1x32x8xf32>
    %725 = vector.shape_cast %724 : vector<1x32x8xf32> to vector<32x8xf32>
    %cst_521 = arith.constant dense<0.000000e+00> : vector<8x8xf32>
    %726 = tpu.matmul %600, %725, %cst_521 {dimension_numbers = #tpu.dot_dimension_numbers<[1], [0], [0], [1], [0, 0, 1, 1], [], []>} : vector<8x32xf32>, vector<32x8xf32>, vector<8x8xf32> -> vector<8x8xf32>
    %c7_522 = arith.constant 7 : index
    %c0_523 = arith.constant 0 : index
    %c0_524 = arith.constant 0 : index
    %727 = vector.load %arg5[%c7_522, %c0_523, %c0_524] : memref<8x1x8xf32, #tpu.memory_space<vmem>>, vector<1x1x8xf32>
    %728 = vector.shape_cast %727 : vector<1x1x8xf32> to vector<1x8xf32>
    %729 = vector.broadcast %728 : vector<1x8xf32> to vector<8x8xf32>
    %730 = arith.addf %726, %729 : vector<8x8xf32>
    %c7_525 = arith.constant 7 : index
    %c0_526 = arith.constant 0 : index
    %c0_527 = arith.constant 0 : index
    %731 = vector.load %arg6[%c7_525, %c0_526, %c0_527] : memref<8x32x8xf32, #tpu.memory_space<vmem>>, vector<1x32x8xf32>
    %732 = vector.shape_cast %731 : vector<1x32x8xf32> to vector<32x8xf32>
    %cst_528 = arith.constant dense<0.000000e+00> : vector<8x8xf32>
    %733 = tpu.matmul %600, %732, %cst_528 {dimension_numbers = #tpu.dot_dimension_numbers<[1], [0], [0], [1], [0, 0, 1, 1], [], []>} : vector<8x32xf32>, vector<32x8xf32>, vector<8x8xf32> -> vector<8x8xf32>
    %c7_529 = arith.constant 7 : index
    %c0_530 = arith.constant 0 : index
    %c0_531 = arith.constant 0 : index
    %734 = vector.load %arg7[%c7_529, %c0_530, %c0_531] : memref<8x1x8xf32, #tpu.memory_space<vmem>>, vector<1x1x8xf32>
    %735 = vector.shape_cast %734 : vector<1x1x8xf32> to vector<1x8xf32>
    %736 = vector.broadcast %735 : vector<1x8xf32> to vector<8x8xf32>
    %737 = arith.addf %733, %736 : vector<8x8xf32>
    %c7_532 = arith.constant 7 : index
    %c0_533 = arith.constant 0 : index
    %c0_534 = arith.constant 0 : index
    %738 = vector.load %arg8[%c7_532, %c0_533, %c0_534] : memref<8x32x8xf32, #tpu.memory_space<vmem>>, vector<1x32x8xf32>
    %739 = vector.shape_cast %738 : vector<1x32x8xf32> to vector<32x8xf32>
    %cst_535 = arith.constant dense<0.000000e+00> : vector<8x8xf32>
    %740 = tpu.matmul %600, %739, %cst_535 {dimension_numbers = #tpu.dot_dimension_numbers<[1], [0], [0], [1], [0, 0, 1, 1], [], []>} : vector<8x32xf32>, vector<32x8xf32>, vector<8x8xf32> -> vector<8x8xf32>
    %c7_536 = arith.constant 7 : index
    %c0_537 = arith.constant 0 : index
    %c0_538 = arith.constant 0 : index
    %741 = vector.load %arg9[%c7_536, %c0_537, %c0_538] : memref<8x1x8xf32, #tpu.memory_space<vmem>>, vector<1x1x8xf32>
    %742 = vector.shape_cast %741 : vector<1x1x8xf32> to vector<1x8xf32>
    %743 = vector.broadcast %742 : vector<1x8xf32> to vector<8x8xf32>
    %744 = arith.addf %740, %743 : vector<8x8xf32>
    %cst_539 = arith.constant dense<0.000000e+00> : vector<8x8xf32>
    %745 = tpu.matmul %730, %737, %cst_539 {dimension_numbers = #tpu.dot_dimension_numbers<[1], [1], [0], [0], [0, 0, 1, 0], [], []>} : vector<8x8xf32>, vector<8x8xf32>, vector<8x8xf32> -> vector<8x8xf32>
    %cst_540 = arith.constant 0.353553385 : f32
    %746 = vector.broadcast %cst_540 : f32 to vector<8x8xf32>
    %747 = arith.mulf %745, %746 : vector<8x8xf32>
    %748 = vector.broadcast %602 : vector<1x8xf32> to vector<8x8xf32>
    %749 = arith.addf %747, %748 : vector<8x8xf32>
    %cst_541 = arith.constant dense<0xFF800000> : vector<8xf32>
    %750 = vector.multi_reduction <maximumf>, %749, %cst_541 [1] : vector<8x8xf32> to vector<8xf32>
    %751 = vector.shape_cast %750 : vector<8xf32> to vector<8x1xf32>
    %752 = vector.broadcast %751 : vector<8x1xf32> to vector<8x8xf32>
    %753 = arith.subf %749, %752 : vector<8x8xf32>
    %754 = math.exp %753 : vector<8x8xf32>
    %cst_542 = arith.constant dense<0.000000e+00> : vector<8xf32>
    %755 = vector.multi_reduction <add>, %754, %cst_542 [1] : vector<8x8xf32> to vector<8xf32>
    %756 = vector.shape_cast %755 : vector<8xf32> to vector<8x1xf32>
    %757 = vector.broadcast %756 : vector<8x1xf32> to vector<8x8xf32>
    %758 = arith.divf %754, %757 : vector<8x8xf32>
    %cst_543 = arith.constant dense<0.000000e+00> : vector<8x8xf32>
    %759 = tpu.matmul %758, %744, %cst_543 {dimension_numbers = #tpu.dot_dimension_numbers<[1], [0], [0], [1], [0, 0, 1, 1], [], []>} : vector<8x8xf32>, vector<8x8xf32>, vector<8x8xf32> -> vector<8x8xf32>
    %c7_544 = arith.constant 7 : index
    %c0_545 = arith.constant 0 : index
    %c0_546 = arith.constant 0 : index
    %760 = vector.load %arg10[%c7_544, %c0_545, %c0_546] : memref<8x8x32xf32, #tpu.memory_space<vmem>>, vector<1x8x32xf32>
    %761 = vector.shape_cast %760 : vector<1x8x32xf32> to vector<8x32xf32>
    %cst_547 = arith.constant dense<0.000000e+00> : vector<8x32xf32>
    %762 = tpu.matmul %759, %761, %cst_547 {dimension_numbers = #tpu.dot_dimension_numbers<[1], [0], [0], [1], [0, 0, 1, 1], [], []>} : vector<8x8xf32>, vector<8x32xf32>, vector<8x32xf32> -> vector<8x32xf32>
    %763 = arith.addf %723, %762 : vector<8x32xf32>
    %c8_548 = arith.constant 8 : index
    %c0_549 = arith.constant 0 : index
    %764 = vector.load %arg25[%c8_548, %c0_549] : memref<16x32xf32, #tpu.memory_space<vmem>>, vector<8x32xf32>
    tpu.vector_store %arg25[%c8_548, %c0_549], %763 {strides = array<i32>} : memref<16x32xf32, #tpu.memory_space<vmem>>, vector<8x32xf32>,
    %c0_550 = arith.constant 0 : index
    %c0_551 = arith.constant 0 : index
    %765 = vector.load %arg25[%c0_550, %c0_551] : memref<16x32xf32, #tpu.memory_space<vmem>>, vector<16x32xf32>
    %c1_552 = arith.constant 1 : index
    %c0_553 = arith.constant 0 : index
    %c0_554 = arith.constant 0 : index
    %766 = vector.load %arg11[%c1_552, %c0_553, %c0_554] : memref<2x1x32xf32, #tpu.memory_space<vmem>>, vector<1x1x32xf32>
    %767 = vector.shape_cast %766 : vector<1x1x32xf32> to vector<1x32xf32>
    %768 = vector.broadcast %767 : vector<1x32xf32> to vector<16x32xf32>
    %769 = arith.addf %765, %768 : vector<16x32xf32>
    %770 = arith.addf %769, %434 : vector<16x32xf32>
    %c1_555 = arith.constant 1 : index
    %c0_556 = arith.constant 0 : index
    %c0_557 = arith.constant 0 : index
    %771 = vector.load %arg12[%c1_555, %c0_556, %c0_557] : memref<2x1x32xf32, #tpu.memory_space<vmem>>, vector<1x1x32xf32>
    %772 = vector.shape_cast %771 : vector<1x1x32xf32> to vector<1x32xf32>
    %c1_558 = arith.constant 1 : index
    %c0_559 = arith.constant 0 : index
    %c0_560 = arith.constant 0 : index
    %773 = vector.load %arg13[%c1_558, %c0_559, %c0_560] : memref<2x1x32xf32, #tpu.memory_space<vmem>>, vector<1x1x32xf32>
    %774 = vector.shape_cast %773 : vector<1x1x32xf32> to vector<1x32xf32>
    %cst_561 = arith.constant dense<0.000000e+00> : vector<16xf32>
    %775 = vector.multi_reduction <add>, %770, %cst_561 [1] : vector<16x32xf32> to vector<16xf32>
    %776 = vector.shape_cast %775 : vector<16xf32> to vector<16x1xf32>
    %cst_562 = arith.constant 3.200000e+01 : f32
    %777 = vector.broadcast %cst_562 : f32 to vector<16x1xf32>
    %778 = arith.divf %776, %777 : vector<16x1xf32>
    %779 = vector.broadcast %778 : vector<16x1xf32> to vector<16x32xf32>
    %780 = arith.subf %770, %779 : vector<16x32xf32>
    %781 = arith.mulf %780, %780 : vector<16x32xf32>
    %cst_563 = arith.constant dense<0.000000e+00> : vector<16xf32>
    %782 = vector.multi_reduction <add>, %781, %cst_563 [1] : vector<16x32xf32> to vector<16xf32>
    %783 = vector.shape_cast %782 : vector<16xf32> to vector<16x1xf32>
    %cst_564 = arith.constant 3.200000e+01 : f32
    %784 = vector.broadcast %cst_564 : f32 to vector<16x1xf32>
    %785 = arith.divf %783, %784 : vector<16x1xf32>
    %cst_565 = arith.constant 9.99999996E-13 : f32
    %786 = vector.broadcast %cst_565 : f32 to vector<16x1xf32>
    %787 = arith.addf %785, %786 : vector<16x1xf32>
    %788 = math.rsqrt %787 : vector<16x1xf32>
    %789 = vector.broadcast %788 : vector<16x1xf32> to vector<16x32xf32>
    %790 = arith.mulf %780, %789 : vector<16x32xf32>
    %791 = vector.broadcast %772 : vector<1x32xf32> to vector<16x32xf32>
    %792 = arith.mulf %790, %791 : vector<16x32xf32>
    %793 = vector.broadcast %774 : vector<1x32xf32> to vector<16x32xf32>
    %794 = arith.addf %792, %793 : vector<16x32xf32>
    %c1_566 = arith.constant 1 : index
    %c0_567 = arith.constant 0 : index
    %c0_568 = arith.constant 0 : index
    %795 = vector.load %arg14[%c1_566, %c0_567, %c0_568] : memref<2x32x64xf32, #tpu.memory_space<vmem>>, vector<1x32x64xf32>
    %796 = vector.shape_cast %795 : vector<1x32x64xf32> to vector<32x64xf32>
    %cst_569 = arith.constant dense<0.000000e+00> : vector<16x64xf32>
    %797 = tpu.matmul %794, %796, %cst_569 {dimension_numbers = #tpu.dot_dimension_numbers<[1], [0], [0], [1], [0, 0, 1, 1], [], []>} : vector<16x32xf32>, vector<32x64xf32>, vector<16x64xf32> -> vector<16x64xf32>
    %c1_570 = arith.constant 1 : index
    %c0_571 = arith.constant 0 : index
    %c0_572 = arith.constant 0 : index
    %798 = vector.load %arg15[%c1_570, %c0_571, %c0_572] : memref<2x1x64xf32, #tpu.memory_space<vmem>>, vector<1x1x64xf32>
    %799 = vector.shape_cast %798 : vector<1x1x64xf32> to vector<1x64xf32>
    %800 = vector.broadcast %799 : vector<1x64xf32> to vector<16x64xf32>
    %801 = arith.addf %797, %800 : vector<16x64xf32>
    %cst_573 = arith.constant 5.000000e-01 : f32
    %802 = vector.broadcast %cst_573 : f32 to vector<16x64xf32>
    %803 = arith.mulf %802, %801 : vector<16x64xf32>
    %cst_574 = arith.constant 4.471500e-02 : f32
    %804 = vector.broadcast %cst_574 : f32 to vector<16x64xf32>
    %805 = arith.mulf %804, %801 : vector<16x64xf32>
    %806 = arith.mulf %805, %801 : vector<16x64xf32>
    %807 = arith.mulf %806, %801 : vector<16x64xf32>
    %808 = arith.addf %801, %807 : vector<16x64xf32>
    %cst_575 = arith.constant 0.797884583 : f32
    %809 = vector.broadcast %cst_575 : f32 to vector<16x64xf32>
    %810 = arith.mulf %809, %808 : vector<16x64xf32>
    %811 = math.tanh %810 : vector<16x64xf32>
    %cst_576 = arith.constant 1.000000e+00 : f32
    %812 = vector.broadcast %cst_576 : f32 to vector<16x64xf32>
    %813 = arith.addf %812, %811 : vector<16x64xf32>
    %814 = arith.mulf %803, %813 : vector<16x64xf32>
    %c1_577 = arith.constant 1 : index
    %c0_578 = arith.constant 0 : index
    %c0_579 = arith.constant 0 : index
    %815 = vector.load %arg16[%c1_577, %c0_578, %c0_579] : memref<2x64x32xf32, #tpu.memory_space<vmem>>, vector<1x64x32xf32>
    %816 = vector.shape_cast %815 : vector<1x64x32xf32> to vector<64x32xf32>
    %cst_580 = arith.constant dense<0.000000e+00> : vector<16x32xf32>
    %817 = tpu.matmul %814, %816, %cst_580 {dimension_numbers = #tpu.dot_dimension_numbers<[1], [0], [0], [1], [0, 0, 1, 1], [], []>} : vector<16x64xf32>, vector<64x32xf32>, vector<16x32xf32> -> vector<16x32xf32>
    %c1_581 = arith.constant 1 : index
    %c0_582 = arith.constant 0 : index
    %c0_583 = arith.constant 0 : index
    %818 = vector.load %arg17[%c1_581, %c0_582, %c0_583] : memref<2x1x32xf32, #tpu.memory_space<vmem>>, vector<1x1x32xf32>
    %819 = vector.shape_cast %818 : vector<1x1x32xf32> to vector<1x32xf32>
    %820 = vector.broadcast %819 : vector<1x32xf32> to vector<16x32xf32>
    %821 = arith.addf %817, %820 : vector<16x32xf32>
    %822 = arith.addf %821, %794 : vector<16x32xf32>
    %c1_584 = arith.constant 1 : index
    %c0_585 = arith.constant 0 : index
    %c0_586 = arith.constant 0 : index
    %823 = vector.load %arg18[%c1_584, %c0_585, %c0_586] : memref<2x1x32xf32, #tpu.memory_space<vmem>>, vector<1x1x32xf32>
    %824 = vector.shape_cast %823 : vector<1x1x32xf32> to vector<1x32xf32>
    %c1_587 = arith.constant 1 : index
    %c0_588 = arith.constant 0 : index
    %c0_589 = arith.constant 0 : index
    %825 = vector.load %arg19[%c1_587, %c0_588, %c0_589] : memref<2x1x32xf32, #tpu.memory_space<vmem>>, vector<1x1x32xf32>
    %826 = vector.shape_cast %825 : vector<1x1x32xf32> to vector<1x32xf32>
    %cst_590 = arith.constant dense<0.000000e+00> : vector<16xf32>
    %827 = vector.multi_reduction <add>, %822, %cst_590 [1] : vector<16x32xf32> to vector<16xf32>
    %828 = vector.shape_cast %827 : vector<16xf32> to vector<16x1xf32>
    %cst_591 = arith.constant 3.200000e+01 : f32
    %829 = vector.broadcast %cst_591 : f32 to vector<16x1xf32>
    %830 = arith.divf %828, %829 : vector<16x1xf32>
    %831 = vector.broadcast %830 : vector<16x1xf32> to vector<16x32xf32>
    %832 = arith.subf %822, %831 : vector<16x32xf32>
    %833 = arith.mulf %832, %832 : vector<16x32xf32>
    %cst_592 = arith.constant dense<0.000000e+00> : vector<16xf32>
    %834 = vector.multi_reduction <add>, %833, %cst_592 [1] : vector<16x32xf32> to vector<16xf32>
    %835 = vector.shape_cast %834 : vector<16xf32> to vector<16x1xf32>
    %cst_593 = arith.constant 3.200000e+01 : f32
    %836 = vector.broadcast %cst_593 : f32 to vector<16x1xf32>
    %837 = arith.divf %835, %836 : vector<16x1xf32>
    %cst_594 = arith.constant 9.99999996E-13 : f32
    %838 = vector.broadcast %cst_594 : f32 to vector<16x1xf32>
    %839 = arith.addf %837, %838 : vector<16x1xf32>
    %840 = math.rsqrt %839 : vector<16x1xf32>
    %841 = vector.broadcast %840 : vector<16x1xf32> to vector<16x32xf32>
    %842 = arith.mulf %832, %841 : vector<16x32xf32>
    %843 = vector.broadcast %824 : vector<1x32xf32> to vector<16x32xf32>
    %844 = arith.mulf %842, %843 : vector<16x32xf32>
    %845 = vector.broadcast %826 : vector<1x32xf32> to vector<16x32xf32>
    %846 = arith.addf %844, %845 : vector<16x32xf32>
    %c0_595 = arith.constant 0 : index
    %c0_596 = arith.constant 0 : index
    %847 = vector.load %arg20[%c0_595, %c0_596] : memref<32x32xf32, #tpu.memory_space<vmem>>, vector<32x32xf32>
    %cst_597 = arith.constant dense<0.000000e+00> : vector<16x32xf32>
    %848 = tpu.matmul %846, %847, %cst_597 {dimension_numbers = #tpu.dot_dimension_numbers<[1], [0], [0], [1], [0, 0, 1, 1], [], []>} : vector<16x32xf32>, vector<32x32xf32>, vector<16x32xf32> -> vector<16x32xf32>
    %c0_598 = arith.constant 0 : index
    %c0_599 = arith.constant 0 : index
    %849 = vector.load %arg21[%c0_598, %c0_599] : memref<1x32xf32, #tpu.memory_space<vmem>>, vector<1x32xf32>
    %850 = vector.broadcast %849 : vector<1x32xf32> to vector<16x32xf32>
    %851 = arith.addf %848, %850 : vector<16x32xf32>
    %852 = math.tanh %851 : vector<16x32xf32>
    %c0_600 = arith.constant 0 : index
    %c0_601 = arith.constant 0 : index
    %853 = vector.load %arg22[%c0_600, %c0_601] : memref<32x128xf32, #tpu.memory_space<vmem>>, vector<32x128xf32>
    %cst_602 = arith.constant dense<0.000000e+00> : vector<16x128xf32>
    %854 = tpu.matmul %852, %853, %cst_602 {dimension_numbers = #tpu.dot_dimension_numbers<[1], [0], [0], [1], [0, 0, 1, 1], [], []>} : vector<16x32xf32>, vector<32x128xf32>, vector<16x128xf32> -> vector<16x128xf32>
    %c0_603 = arith.constant 0 : index
    %c0_604 = arith.constant 0 : index
    %855 = vector.load %arg23[%c0_603, %c0_604] : memref<1x128xf32, #tpu.memory_space<vmem>>, vector<1x128xf32>
    %856 = vector.broadcast %855 : vector<1x128xf32> to vector<16x128xf32>
    %857 = arith.addf %854, %856 : vector<16x128xf32>
    %c0_605 = arith.constant 0 : index
    %c0_606 = arith.constant 0 : index
    %858 = vector.load %arg24[%c0_605, %c0_606] : memref<16x128xf32, #tpu.memory_space<vmem>>, vector<16x128xf32>
    tpu.vector_store %arg24[%c0_605, %c0_606], %857 {strides = array<i32>} : memref<16x128xf32, #tpu.memory_space<vmem>>, vector<16x128xf32>,
    return
  }
}

</mosaic_0001>

<bundles_post_ra>
// kernel: sentiment_classifier_forward.1
= control target key start
LH: loop header
LB: loop body
LE: loop exit
PB: predicated region body
PF: predicated region fallthrough
CT: control target
= control target key end

     0   :  { %vm81_vm0 = vcmask 261120   ;;  %v12479_v7 = vmov 0.0   ;;  %vm10480_vm1 = vmmov 0   ;;  %vm372_vm2 = vcmask 64512   ;;  %s12436_s0 = inlined_call_operand.vmem [shape: f32[16,32], index: 0, kind: input, shape index: {}]   ;;  %s12437_s4 = inlined_call_operand.vmem [shape: f32[8,32,8], index: 4, kind: input, shape index: {}]   ;;  %s12438_s6 = inlined_call_operand.vmem [shape: f32[8,32,8], index: 6, kind: input, shape index: {}]   ;;  %s12439_s2 = inlined_call_operand.vmem [shape: f32[1,32], index: 2, kind: input, shape index: {}]   ;;  %s12440_s3 = inlined_call_operand.vmem [shape: f32[1,32], index: 3, kind: input, shape index: {}]   ;;  %s12441_s8 = inlined_call_operand.vmem [shape: f32[8,32,8], index: 8, kind: input, shape index: {}]   ;;  %s12442_s7 = inlined_call_operand.vmem [shape: f32[8,1,8], index: 7, kind: input, shape index: {}]   ;;  %s12443_s5 = inlined_call_operand.vmem [shape: f32[8,1,8], index: 5, kind: input, shape index: {}]   ;;  %s12444_s9 = inlined_call_operand.vmem [shape: f32[8,1,8], index: 9, kind: input, shape index: {}]   ;;  %s12445_s1 = inlined_call_operand.vmem [shape: f32[2,1,8], index: 1, kind: input, shape index: {}]   ;;  %s12446_s10 = inlined_call_operand.vmem [shape: f32[8,8,32], index: 10, kind: input, shape index: {}]   ;;  %s12447_s11 = inlined_call_operand.vmem [shape: f32[2,1,32], index: 11, kind: input, shape index: {}]   ;;  %s12448_s12 = inlined_call_operand.vmem [shape: f32[2,1,32], index: 12, kind: input, shape index: {}]   ;;  %s12449_s13 = inlined_call_operand.vmem [shape: f32[2,1,32], index: 13, kind: input, shape index: {}]   ;;  %s12450_s14 = inlined_call_operand.vmem [shape: f32[2,32,64], index: 14, kind: input, shape index: {}]   ;;  %s12451_s16 = inlined_call_operand.vmem [shape: f32[2,64,32], index: 16, kind: input, shape index: {}]   ;;  %s12452_s15 = inlined_call_operand.vmem [shape: f32[2,1,64], index: 15, kind: input, shape index: {}]   ;;  %s12453_s17 = inlined_call_operand.vmem [shape: f32[2,1,32], index: 17, kind: input, shape index: {}]   ;;  %s12454_s18 = inlined_call_operand.vmem [shape: f32[2,1,32], index: 18, kind: input, shape index: {}]   ;;  %s12455_s19 = inlined_call_operand.vmem [shape: f32[2,1,32], index: 19, kind: input, shape index: {}]   ;;  %s12456_s20 = inlined_call_operand.vmem [shape: f32[32,32], index: 20, kind: input, shape index: {}]   ;;  %s12457_s22 = inlined_call_operand.vmem [shape: f32[32,128], index: 22, kind: input, shape index: {}]   ;;  %s12458_s21 = inlined_call_operand.vmem [shape: f32[1,32], index: 21, kind: input, shape index: {}]   ;;  %s12459_s23 = inlined_call_operand.vmem [shape: f32[1,128], index: 23, kind: input, shape index: {}]   ;;  %s12460_s24 = inlined_call_operand.vmem [shape: f32[16,128], index: 24, kind: output, shape index: {}]  }
   0x1   :  { %12508 = sst [smem:[#allocation23_spill]] %s12436_s0  ;;  %9531 = vmatprep.subr.mxu0 %v12479_v7  ;;  %9542 = vmatprep.subr.mxu1 %v12479_v7  ;;  %vm4188_vm3 = vcmask 523264  }
   0x2   :  { %12509 = sst [smem:[#allocation24_spill]] %s12437_s4  ;;  %9539 = vmatprep.mubr.msk.f32.mxu0 %vm10480_vm1, %v12479_v7  ;;  %9550 = vmatprep.mubr.msk.f32.mxu1 %vm10480_vm1, %v12479_v7 }
   0x3   :  { %12510 = sst [smem:[#allocation25_spill]] %s12438_s6 }
   0x4   :  { %12511 = sst [smem:[#allocation26_spill]] %s12439_s2 }
   0x5   :  { %12512 = sst [smem:[#allocation27_spill]] %s12440_s3 }
   0x6   :  { %12513 = sst [smem:[#allocation28_spill]] %s12441_s8 }
   0x7   :  { %12514 = sst [smem:[#allocation29_spill]] %s12442_s7 }
   0x8   :  { %12515 = sst [smem:[#allocation30_spill]] %s12443_s5 }
   0x9   :  { %12516 = sst [smem:[#allocation31_spill]] %s12444_s9 }
   0xa   :  { %s12517_s27 = sld [smem:[#allocation23_spill]] }
   0xb   :  { %s12518_s6 = sld [smem:[#allocation24_spill]] }
   0xc   :  { %s12519_s5 = sld [smem:[#allocation25_spill]] }
   0xd   :  { %s12520_s25 = sld [smem:[#allocation26_spill]] }
   0xe   :  { %s12521_s4 = sld [smem:[#allocation27_spill]] }
   0xf   :  { %s12523_s28 = sld [smem:[#allocation28_spill]] }
  0x10   :  { %v77_v0 = vld [vmem:[%s12517_s27] sm:$0xff]  ;;  %s12524_s3 = sld [smem:[#allocation29_spill]] }
  0x11   :  { %v82_v1 = vsel %vm81_vm0, %v77_v0, 0.0  ;;  %v10615_v8 = vld [vmem:[%s12518_s6 + $0x18] sm:$0xff]  ;;  %v10629_v10 = vld [vmem:[%s12518_s6 + $0x10] sm:$0xff]  ;;  %v10643_v12 = vld [vmem:[%s12518_s6 + $0x8] sm:$0xff]  ;;  %s12525_s26 = sld [smem:[#allocation30_spill]] }
  0x12   :  { %83 = vadd.xlane.f32.xlu0 %v82_v1  ;;  %9532 = vmatpush3.msra.mxu0 %v10615_v8  ;;  %v10622_v9 = vld [vmem:[%s12519_s5 + $0x18] sm:$0xff]  ;;  %v10636_v11 = vld [vmem:[%s12519_s5 + $0x10] sm:$0xff]  ;;  %v10650_v13 = vld [vmem:[%s12519_s5 + $0x8] sm:$0xff]  ;;  %s12526_s0 = sld [smem:[#allocation31_spill]] }
  0x13   :  { %9533 = vmatprep.subr.mxu0 %v12479_v7  ;;  %9543 = vmatpush3.msra.mxu1 %v10622_v9  ;;  %v10657_v14 = vld [vmem:[%s12518_s6] sm:$0xff]  ;;  %v10724_v29 = vld [vmem:[%s12518_s6 + $0x38] sm:$0xff]  ;;  %v10733_v30 = vld [vmem:[%s12518_s6 + $0x30] sm:$0xff] }
  0x14   :  { %9534 = vmatpush3.msra.mxu0 %v10629_v10  ;;  %9544 = vmatprep.subr.mxu1 %v12479_v7  ;;  %v10664_v15 = vld [vmem:[%s12519_s5] sm:$0xff]  ;;  %v10742_v31 = vld [vmem:[%s12518_s6 + $0x28] sm:$0xff]  ;;  %v10788_v37 = vld [vmem:[%s12518_s6 + $0x58] sm:$0xff] }
  0x15   :  { %9535 = vmatprep.subr.mxu0 %v12479_v7  ;;  %9545 = vmatpush3.msra.mxu1 %v10636_v11  ;;  %v10676_v20 = vld [vmem:[%s12520_s25] ss:$0 sm:$0xff]  ;;  %v10690_v25 = vld [vmem:[%s12523_s28 + $0x18] sm:$0xff]  ;;  %v10699_v26 = vld [vmem:[%s12523_s28 + $0x10] sm:$0xff] }
  0x16   :  { %9536 = vmatpush3.msra.mxu0 %v10643_v12  ;;  %9546 = vmatprep.subr.mxu1 %v12479_v7  ;;  %v10681_v22 = vld [vmem:[%s12521_s4] ss:$0 sm:$0xff]  ;;  %v10708_v27 = vld [vmem:[%s12523_s28 + $0x8] sm:$0xff]  ;;  %v10756_v33 = vld [vmem:[%s12523_s28 + $0x38] sm:$0xff] }
  0x17   :  { %9537 = vmatprep.subr.mxu0 %v12479_v7  ;;  %9547 = vmatpush3.msra.mxu1 %v10650_v13  ;;  %v10717_v28 = vld [vmem:[%s12523_s28] sm:$0xff]  ;;  %v10765_v34 = vld [vmem:[%s12523_s28 + $0x30] sm:$0xff]  ;;  %v10774_v35 = vld [vmem:[%s12523_s28 + $0x28] sm:$0xff] }
  0x18   :  { %9538 = vmatpush3.msra.mxu0 %v10657_v14  ;;  %9548 = vmatprep.subr.mxu1 %v12479_v7  ;;  %v10749_v32 = vld [vmem:[%s12518_s6 + $0x20] sm:$0xff]  ;;  %v10797_v38 = vld [vmem:[%s12518_s6 + $0x50] sm:$0xff]  ;;  %v10806_v39 = vld [vmem:[%s12518_s6 + $0x48] sm:$0xff] }
  0x19   :  { %9549 = vmatpush3.msra.mxu1 %v10664_v15  ;;  %9553 = vmatprep.subr.mxu0 %v12479_v7  ;;  %v10781_v36 = vld [vmem:[%s12523_s28 + $0x20] sm:$0xff]  ;;  %v10820_v41 = vld [vmem:[%s12523_s28 + $0x58] sm:$0xff]  ;;  %v10829_v42 = vld [vmem:[%s12523_s28 + $0x50] sm:$0xff] }
  0x1a   :  { %9564 = vmatprep.subr.mxu1 %v12479_v7  ;;  %v10813_v40 = vld [vmem:[%s12518_s6 + $0x40] sm:$0xff]  ;;  %v10838_v43 = vld [vmem:[%s12523_s28 + $0x48] sm:$0xff] }
  0x1b   :  { %v10845_v44 = vld [vmem:[%s12523_s28 + $0x40] sm:$0xff] }
  0x1c   :  { %v10858_v45 = vld [vmem:[%s12524_s3] ss:$0 sm:$0xff] }
  0x1d   :  { %v10863_v48 = vld [vmem:[%s12525_s26] ss:$0 sm:$0xff] }
  0x1e   :  { %v10873_v53 = vld [vmem:[%s12526_s0] ss:$0 sm:$0xff] }
  0x9b   :  { %v84_v2 = vpop.xlane.xlu0 %83 }
  0x9c   :  { %v89_v3 = vmul.f32 0.03125, %v84_v2  ;;  %v10886_v2 = vld [vmem:[%s12445_s1] ss:$0 sm:$0xff] }
  0x9e   :  { %v91_v4 = vsub.f32 %v77_v0, %v89_v3 }
  0xa0   :  { %v93_v5 = vmul.f32 %v91_v4, %v91_v4 }
  0xa2   :  { %v95_v6 = vsel %vm81_vm0, %v93_v5, 0.0 }
  0xa3   :  { %96 = vadd.xlane.f32.xlu0 %v95_v6 }
 0x12c   :  { %v97_v16 = vpop.xlane.xlu0 %96 }
 0x12d   :  { %v101_v17 = vmul.f32 0.03125, %v97_v16 }
 0x12f   :  { %v103_v18 = vadd.f32 1e-12, %v101_v17 }
 0x131   :  { %10383 = vrsqrt.f32 %v103_v18 }
 0x13e   :  { %v10384_v19 = vpop.eup %10383 }
 0x13f   :  { %v107_v21 = vmul.f32 %v10384_v19, %v91_v4 }
 0x141   :  { %v115_v23 = vmul.f32 %v10676_v20, %v107_v21 }
 0x143   :  { %v10685_v24 = vadd.f32 %v10681_v22, %v115_v23 }
 0x145   :  { %12522 = vst [vmem:[#allocation3_spill] sm:$0xff] %v10685_v24  ;;  %9540 = vmatmul.mubr.msk.f32.vlgmr.msra.gmra.mxu0 %vm81_vm0, %v10685_v24  ;;  %9551 = vmatmul.mubr.msk.f32.vlgmr.msra.gmra.mxu1 %vm81_vm0, %v10685_v24 }
 0x146   :  { %9554 = vmatpush3.msra.mxu0 %v10690_v25  ;;  %9561 = vmatprep.mubr.msk.f32.mxu0 %vm10480_vm1, %v12479_v7 }
 0x147   :  { %9555 = vmatprep.subr.mxu0 %v12479_v7  ;;  %9566 = vmatprep.mubr.msk.f32.mxu1 %vm10480_vm1, %v12479_v7 }
 0x148   :  { %9556 = vmatpush3.msra.mxu0 %v10699_v26 }
 0x149   :  { %9557 = vmatprep.subr.mxu0 %v12479_v7 }
 0x14a   :  { %9558 = vmatpush3.msra.mxu0 %v10708_v27 }
 0x14b   :  { %9559 = vmatprep.subr.mxu0 %v12479_v7 }
 0x14c   :  { %9560 = vmatpush3.msra.mxu0 %v10717_v28 }
 0x14d   :  { %9562 = vmatmul.mubr.msk.f32.vlgmr.msra.gmra.mxu0 %vm81_vm0, %v10685_v24  ;;  %9574 = vmatprep.subr.mxu0 %v12479_v7 }
 0x14e   :  { %9575 = vmatpush3.msra.mxu0 %v10724_v29  ;;  %9582 = vmatprep.mubr.msk.f32.mxu0 %vm10480_vm1, %v12479_v7 }
 0x14f   :  { %9576 = vmatprep.subr.mxu0 %v12479_v7 }
 0x150   :  { %9577 = vmatpush3.msra.mxu0 %v10733_v30 }
 0x151   :  { %9578 = vmatprep.subr.mxu0 %v12479_v7 }
 0x152   :  { %9579 = vmatpush3.msra.mxu0 %v10742_v31 }
 0x153   :  { %9580 = vmatprep.subr.mxu0 %v12479_v7 }
 0x154   :  { %9581 = vmatpush3.msra.mxu0 %v10749_v32 }
 0x155   :  { %9583 = vmatmul.mubr.msk.f32.vlgmr.msra.gmra.mxu0 %vm81_vm0, %v10685_v24  ;;  %9596 = vmatprep.subr.mxu0 %v12479_v7 }
 0x156   :  { %9597 = vmatpush3.msra.mxu0 %v10756_v33  ;;  %9604 = vmatprep.mubr.msk.f32.mxu0 %vm10480_vm1, %v12479_v7 }
 0x157   :  { %9598 = vmatprep.subr.mxu0 %v12479_v7 }
 0x158   :  { %9599 = vmatpush3.msra.mxu0 %v10765_v34 }
 0x159   :  { %9600 = vmatprep.subr.mxu0 %v12479_v7 }
 0x15a   :  { %9601 = vmatpush3.msra.mxu0 %v10774_v35 }
 0x15b   :  { %9602 = vmatprep.subr.mxu0 %v12479_v7 }
 0x15c   :  { %9603 = vmatpush3.msra.mxu0 %v10781_v36 }
 0x15d   :  { %9605 = vmatmul.mubr.msk.f32.vlgmr.msra.gmra.mxu0 %vm81_vm0, %v10685_v24  ;;  %9627 = vmatprep.subr.mxu0 %v12479_v7 }
 0x15e   :  { %9628 = vmatpush3.msra.mxu0 %v10788_v37  ;;  %9635 = vmatprep.mubr.msk.f32.mxu0 %vm10480_vm1, %v12479_v7 }
 0x15f   :  { %9629 = vmatprep.subr.mxu0 %v12479_v7 }
 0x160   :  { %9630 = vmatpush3.msra.mxu0 %v10797_v38 }
 0x161   :  { %9631 = vmatprep.subr.mxu0 %v12479_v7 }
 0x162   :  { %9632 = vmatpush3.msra.mxu0 %v10806_v39 }
 0x163   :  { %9633 = vmatprep.subr.mxu0 %v12479_v7 }
 0x164   :  { %9634 = vmatpush3.msra.mxu0 %v10813_v40 }
 0x165   :  { %9636 = vmatmul.mubr.msk.f32.vlgmr.msra.gmra.mxu0 %vm81_vm0, %v10685_v24  ;;  %9649 = vmatprep.subr.mxu0 %v12479_v7 }
 0x166   :  { %9650 = vmatpush3.msra.mxu0 %v10820_v41  ;;  %9657 = vmatprep.mubr.msk.f32.mxu0 %vm10480_vm1, %v12479_v7 }
 0x167   :  { %9651 = vmatprep.subr.mxu0 %v12479_v7 }
 0x168   :  { %9652 = vmatpush3.msra.mxu0 %v10829_v42 }
 0x169   :  { %9653 = vmatprep.subr.mxu0 %v12479_v7 }
 0x16a   :  { %9654 = vmatpush3.msra.mxu0 %v10838_v43 }
 0x16b   :  { %9655 = vmatprep.subr.mxu0 %v12479_v7 }
 0x16c   :  { %9656 = vmatpush3.msra.mxu0 %v10845_v44 }
 0x16d   :  { %9658 = vmatmul.mubr.msk.f32.vlgmr.msra.gmra.mxu0 %vm81_vm0, %v10685_v24  ;;  %9670 = vmatprep.subr.mxu0 %v12479_v7 }
 0x16e   :  { %9672 = vmatprep.mubr.msk.f32.mxu0 %vm10480_vm1, %v12479_v7 }
 0x205   :  { %v206_v46 = vpop.f32.mrf.mxu0  ;;  %v287_v47 = vpop.f32.mrf.mxu1 }
 0x206   :  { %v288_v49 = vadd.f32 %v10858_v45, %v287_v47  ;;  %v207_v52 = vadd.f32 %v10863_v48, %v206_v46 }
 0x207   :  { %v9541_v50 = vpop.f32.mrf.mxu0  ;;  %v9552_v51 = vpop.f32.mrf.mxu1 }
 0x208   :  { %9565 = vmatpush3.xpose.msk.msra.mxu1 %vm372_vm2, %v288_v49  ;;  %v10894_v49 = vld [vmem:[%s12519_s5 + $0x38] sm:$0xff]  ;;  %v10900_v50 = vld [vmem:[%s12519_s5 + $0x30] sm:$0xff]  ;;  %v10909_v51 = vld [vmem:[%s12519_s5 + $0x28] sm:$0xff] }
 0x209   :  { %9569 = vmatprep.subr.mxu1 %v12479_v7 }
 0x20b   :  { %9567 = vmatmul.mubr.msk.f32.vlgmr.msra.gmra.mxu1 %vm372_vm2, %v207_v52  ;;  %v10916_v52 = vld [vmem:[%s12519_s5 + $0x20] sm:$0xff] }
 0x20c   :  { %9571 = vmatprep.mubr.msk.f32.mxu1 %vm10480_vm1, %v12479_v7 }
 0x20d   :  { %v368_v54 = vpop.f32.mrf.mxu0 }
 0x20e   :  { %v369_v55 = vadd.f32 %v10873_v53, %v368_v54 }
 0x20f   :  { %v9563_v56 = vpop.f32.mrf.mxu0 }
 0x210   :  { %9570 = vmatpush3.msra.mxu1 %v369_v55  ;;  %v10929_v56 = vld [vmem:[%s12524_s3 + $0x1] ss:$0 sm:$0xff] }
 0x211   :  { %9585 = vmatprep.subr.mxu1 %v12479_v7 }
 0x215   :  { %v621_v57 = vpop.f32.mrf.mxu0 }
 0x217   :  { %v9584_v58 = vpop.f32.mrf.mxu0 }
 0x21d   :  { %v787_v59 = vpop.f32.mrf.mxu0 }
 0x21f   :  { %v9606_v60 = vpop.f32.mrf.mxu0 }
 0x220   :  { %v10934_v60 = vld [vmem:[%s12525_s26 + $0x1] ss:$0 sm:$0xff] }
 0x225   :  { %v10879_v61 = vpop.f32.mrf.mxu0 }
 0x227   :  { %v9637_v62 = vpop.f32.mrf.mxu0 }
 0x22d   :  { %v10881_v63 = vpop.f32.mrf.mxu0 }
 0x22f   :  { %v9659_v0 = vpop.f32.mrf.mxu0 }
 0x230   :  { %v10940_v0 = vld [vmem:[%s12526_s0 + $0x1] ss:$0 sm:$0xff] }
 0x2cb   :  { %v445_v1 = vpop.f32.mrf.mxu1 }
 0x2cc   :  { %v449_v3 = vmul.f32 0.35355338, %v445_v1 }
 0x2cd   :  { %v9568_v4 = vpop.f32.mrf.mxu1 }
 0x2ce   :  { %v456_v5 = vadd.f32 %v10886_v2, %v449_v3  ;;  %v622_v3 = vadd.f32 %v10934_v60, %v621_v57  ;;  %v788_v4 = vadd.f32 %v10940_v0, %v787_v59 }
 0x2d0   :  { %v457_v6 = vsel %vm372_vm2, %v456_v5, -inf }
 0x2d1   :  { %458 = vmax.xlane.f32.xlu1 %v457_v6 }
 0x35a   :  { %v459_v16 = vpop.xlane.xlu1 %458 }
 0x35b   :  { %v460_v17 = vsub.f32 %v456_v5, %v459_v16 }
 0x35d   :  { %v461_v18 = vmul.f32 1.442695, %v460_v17 }
 0x35f   :  { %10385 = vpow2.f32 %v461_v18 }
 0x36c   :  { %v10386_v19 = vpop.eup %10385 }
 0x36d   :  { %v463_v21 = vsel %vm372_vm2, %v10386_v19, 0.0 }
 0x36e   :  { %464 = vadd.xlane.f32.xlu1 %v463_v21 }
 0x3f7   :  { %v465_v23 = vpop.xlane.xlu1 %464 }
 0x3f8   :  { %10387 = vrcp.f32 %v465_v23 }
 0x405   :  { %v10388_v46 = vpop.eup %10387 }
 0x406   :  { %v467_v47 = vmul.f32 %v10388_v46, %v10386_v19 }
 0x408   :  { %9572 = vmatmul.mubr.msk.f32.vlgmr.msra.gmra.mxu1 %vm372_vm2, %v467_v47 }
 0x409   :  { %9586 = vmatpush3.msra.mxu1 %v10894_v49  ;;  %9593 = vmatprep.mubr.msk.f32.mxu1 %vm10480_vm1, %v12479_v7 }
 0x40a   :  { %9587 = vmatprep.subr.mxu1 %v12479_v7 }
 0x40b   :  { %9588 = vmatpush3.msra.mxu1 %v10900_v50 }
 0x40c   :  { %9589 = vmatprep.subr.mxu1 %v12479_v7 }
 0x40d   :  { %9590 = vmatpush3.msra.mxu1 %v10909_v51 }
 0x40e   :  { %9591 = vmatprep.subr.mxu1 %v12479_v7 }
 0x40f   :  { %9592 = vmatpush3.msra.mxu1 %v10916_v52 }
 0x410   :  { %9594 = vmatmul.mubr.msk.f32.vlgmr.msra.gmra.mxu1 %vm81_vm0, %v10685_v24  ;;  %9607 = vmatprep.subr.mxu1 %v12479_v7 }
 0x411   :  { %9609 = vmatprep.mubr.msk.f32.mxu1 %vm10480_vm1, %v12479_v7 }
 0x4c8   :  { %v537_v54 = vpop.f32.mrf.mxu1 }
 0x4ca   :  { %v9573_v55 = vpop.f32.mrf.mxu1 }
 0x4d0   :  { %v704_v58 = vpop.f32.mrf.mxu1 }
 0x4d1   :  { %v705_v62 = vadd.f32 %v10929_v56, %v704_v58  ;;  %v10956_v58 = vld [vmem:[%s12446_s10 + $0x8] sm:$0xff] }
 0x4d2   :  { %v9595_v1 = vpop.f32.mrf.mxu1 }
 0x4d3   :  { %9608 = vmatpush3.xpose.msk.msra.mxu1 %vm372_vm2, %v705_v62  ;;  %v10966_v62 = vld [vmem:[%s12446_s10] sm:$0xff] }
 0x4d4   :  { %9612 = vmatprep.subr.mxu1 %v12479_v7 }
 0x4d6   :  { %9610 = vmatmul.mubr.msk.f32.vlgmr.msra.gmra.mxu1 %vm372_vm2, %v622_v3 }
 0x4d7   :  { %9613 = vmatpush3.msra.mxu1 %v788_v4  ;;  %9614 = vmatprep.mubr.msk.f32.mxu1 %vm10480_vm1, %v12479_v7  ;;  %v10976_v4 = vld [vmem:[%s12519_s5 + $0x58] sm:$0xff] }
 0x4d8   :  { %9617 = vmatprep.subr.mxu1 %v12479_v7 }
 0x596   :  { %v863_v5 = vpop.f32.mrf.mxu1 }
 0x597   :  { %v867_v6 = vmul.f32 0.35355338, %v863_v5  ;;  %v10982_v5 = vld [vmem:[%s12519_s5 + $0x50] sm:$0xff] }
 0x598   :  { %v9611_v16 = vpop.f32.mrf.mxu1 }
 0x599   :  { %v868_v17 = vadd.f32 %v10886_v2, %v867_v6  ;;  %v10991_v6 = vld [vmem:[%s12519_s5 + $0x48] sm:$0xff] }
 0x59b   :  { %v869_v18 = vsel %vm372_vm2, %v868_v17, -inf }
 0x59c   :  { %870 = vmax.xlane.f32.xlu0 %v869_v18 }
 0x625   :  { %v871_v57 = vpop.xlane.xlu0 %870 }
 0x626   :  { %v872_v19 = vsub.f32 %v868_v17, %v871_v57 }
 0x628   :  { %v873_v21 = vmul.f32 1.442695, %v872_v19 }
 0x62a   :  { %10389 = vpow2.f32 %v873_v21  ;;  %v11013_v21 = vld [vmem:[%s12524_s3 + $0x2] ss:$0 sm:$0xff] }
 0x637   :  { %v10390_v59 = vpop.eup %10389 }
 0x638   :  { %v875_v23 = vsel %vm372_vm2, %v10390_v59, 0.0 }
 0x639   :  { %876 = vadd.xlane.f32.xlu1 %v875_v23  ;;  %v11018_v23 = vld [vmem:[%s12525_s26 + $0x2] ss:$0 sm:$0xff] }
 0x63a   :  { %12527 = vst [vmem:[#allocation4_spill] sm:$0xff] %v11018_v23 }
 0x6c2   :  { %v877_v46 = vpop.xlane.xlu1 %876 }
 0x6c3   :  { %10391 = vrcp.f32 %v877_v46 }
 0x6d0   :  { %v10392_v47 = vpop.eup %10391 }
 0x6d1   :  { %v879_v55 = vmul.f32 %v10392_v47, %v10390_v59  ;;  %v11024_v47 = vld [vmem:[%s12526_s0 + $0x2] ss:$0 sm:$0xff] }
 0x6d2   :  { %12528 = vst [vmem:[#allocation5_spill] sm:$0xff] %v11024_v47 }
 0x6d3   :  { %9615 = vmatmul.mubr.msk.f32.vlgmr.msra.gmra.mxu1 %vm372_vm2, %v879_v55 }
 0x6d4   :  { %9618 = vmatpush3.msra.mxu1 %v10956_v58  ;;  %9619 = vmatprep.mubr.msk.f32.mxu1 %vm10480_vm1, %v12479_v7 }
 0x6d5   :  { %9622 = vmatprep.subr.mxu1 %v12479_v7 }
 0x793   :  { %v949_v1 = vpop.f32.mrf.mxu1 }
 0x794   :  { %9620 = vmatmul.mubr.msk.f32.vlgmr.msra.gmra.mxu1 %vm372_vm2, %v949_v1  ;;  %v1181_v1 = vadd.f32 %v11018_v23, %v10879_v61 }
 0x795   :  { %v9616_v3 = vpop.f32.mrf.mxu1  ;;  %9623 = vmatpush3.msra.mxu1 %v10966_v62  ;;  %9624 = vmatprep.mubr.msk.f32.mxu1 %vm10480_vm1, %v12479_v7 }
 0x796   :  { %9638 = vmatprep.subr.mxu1 %v12479_v7  ;;  %v1347_v3 = vadd.f32 %v11024_v47, %v10881_v63 }
 0x798   :  { %9625 = vmatmul.mubr.msk.f32.vlgmr.msra.gmra.mxu1 %vm372_vm2, %v537_v54  ;;  %v10998_v54 = vld [vmem:[%s12519_s5 + $0x40] sm:$0xff] }
 0x799   :  { %9639 = vmatpush3.msra.mxu1 %v10976_v4  ;;  %9646 = vmatprep.mubr.msk.f32.mxu1 %vm10480_vm1, %v12479_v7 }
 0x79a   :  { %9640 = vmatprep.subr.mxu1 %v12479_v7 }
 0x79b   :  { %9641 = vmatpush3.msra.mxu1 %v10982_v5 }
 0x79c   :  { %9642 = vmatprep.subr.mxu1 %v12479_v7 }
 0x79d   :  { %9643 = vmatpush3.msra.mxu1 %v10991_v6 }
 0x79e   :  { %9644 = vmatprep.subr.mxu1 %v12479_v7 }
 0x79f   :  { %9645 = vmatpush3.msra.mxu1 %v10998_v54 }
 0x7a0   :  { %9647 = vmatmul.mubr.msk.f32.vlgmr.msra.gmra.mxu1 %vm81_vm0, %v10685_v24  ;;  %9660 = vmatprep.subr.mxu1 %v12479_v7 }
 0x7a1   :  { %9662 = vmatprep.mubr.msk.f32.mxu1 %vm10480_vm1, %v12479_v7 }
 0x854   :  { %v1024_v16 = vpop.f32.mrf.mxu1 }
 0x856   :  { %v9621_v17 = vpop.f32.mrf.mxu1 }
 0x858   :  { %v1097_v18 = vpop.f32.mrf.mxu1 }
 0x859   :  { %v11008_v57 = vadd.f32 %v1097_v18, %v1024_v16 }
 0x85a   :  { %v9626_v19 = vpop.f32.mrf.mxu1 }
 0x860   :  { %v1263_v59 = vpop.f32.mrf.mxu1 }
 0x861   :  { %v1264_v46 = vadd.f32 %v11013_v21, %v1263_v59 }
 0x862   :  { %v9648_v55 = vpop.f32.mrf.mxu1 }
 0x863   :  { %9661 = vmatpush3.xpose.msk.msra.mxu1 %vm372_vm2, %v1264_v46 }
 0x864   :  { %9665 = vmatprep.subr.mxu1 %v12479_v7 }
 0x866   :  { %9663 = vmatmul.mubr.msk.f32.vlgmr.msra.gmra.mxu1 %vm372_vm2, %v1181_v1 }
 0x867   :  { %9666 = vmatpush3.msra.mxu1 %v1347_v3  ;;  %9667 = vmatprep.mubr.msk.f32.mxu1 %vm10480_vm1, %v12479_v7  ;;  %v11042_v3 = vld [vmem:[%s12446_s10 + $0x10] sm:$0xff] }
 0x868   :  { %9675 = vmatprep.subr.mxu1 %v12479_v7  ;;  %9671 = vmatpush3.msra.mxu0 %v11042_v3 }
 0x869   :  { %9686 = vmatprep.subr.mxu0 %v12479_v7 }
 0x926   :  { %v1422_v16 = vpop.f32.mrf.mxu1 }
 0x927   :  { %v1426_v17 = vmul.f32 0.35355338, %v1422_v16 }
 0x928   :  { %v9664_v18 = vpop.f32.mrf.mxu1 }
 0x929   :  { %v1427_v19 = vadd.f32 %v10886_v2, %v1426_v17 }
 0x92b   :  { %v1428_v61 = vsel %vm372_vm2, %v1427_v19, -inf }
 0x92c   :  { %1429 = vmax.xlane.f32.xlu0 %v1428_v61  ;;  %v11055_v61 = vld [vmem:[%s12518_s6 + $0x70] sm:$0xff] }
 0x92d   :  { %12530 = vst [vmem:[#allocation7_spill] sm:$0xff] %v11055_v61 }
 0x9b5   :  { %v1430_v59 = vpop.xlane.xlu0 %1429 }
 0x9b6   :  { %v1431_v46 = vsub.f32 %v1427_v19, %v1430_v59  ;;  %v11049_v19 = vld [vmem:[%s12518_s6 + $0x78] sm:$0xff]  ;;  %v11064_v59 = vld [vmem:[%s12518_s6 + $0x68] sm:$0xff] }
 0x9b7   :  { %12529 = vst [vmem:[#allocation6_spill] sm:$0xff] %v11049_v19  ;;  %12531 = vst [vmem:[#allocation8_spill] sm:$0xff] %v11064_v59 }
 0x9b8   :  { %v1432_v55 = vmul.f32 1.442695, %v1431_v46  ;;  %v11071_v46 = vld [vmem:[%s12518_s6 + $0x60] sm:$0xff] }
 0x9b9   :  { %12532 = vst [vmem:[#allocation9_spill] sm:$0xff] %v11071_v46 }
 0x9ba   :  { %10393 = vpow2.f32 %v1432_v55  ;;  %v11078_v55 = vld [vmem:[%s12523_s28 + $0x78] sm:$0xff] }
 0x9bb   :  { %12533 = vst [vmem:[#allocation10_spill] sm:$0xff] %v11078_v55 }
 0x9c7   :  { %v10394_v63 = vpop.eup %10393 }
 0x9c8   :  { %v1434_v1 = vsel %vm372_vm2, %v10394_v63, 0.0 }
 0x9c9   :  { %1435 = vadd.xlane.f32.xlu1 %v1434_v1  ;;  %v11096_v1 = vld [vmem:[%s12523_s28 + $0x68] sm:$0xff] }
 0x9ca   :  { %12535 = vst [vmem:[#allocation12_spill] sm:$0xff] %v11096_v1 }
 0xa52   :  { %v1436_v16 = vpop.xlane.xlu1 %1435 }
 0xa53   :  { %10395 = vrcp.f32 %v1436_v16  ;;  %v11103_v16 = vld [vmem:[%s12523_s28 + $0x60] sm:$0xff] }
 0xa54   :  { %12536 = vst [vmem:[#allocation13_spill] sm:$0xff] %v11103_v16 }
 0xa60   :  { %v10396_v17 = vpop.eup %10395 }
 0xa61   :  { %v1438_v18 = vmul.f32 %v10396_v17, %v10394_v63  ;;  %v11087_v63 = vld [vmem:[%s12523_s28 + $0x70] sm:$0xff]  ;;  %v11116_v17 = vld [vmem:[%s12519_s5 + $0x78] sm:$0xff] }
 0xa62   :  { %12534 = vst [vmem:[#allocation11_spill] sm:$0xff] %v11087_v63  ;;  %12537 = vst [vmem:[#allocation14_spill] sm:$0xff] %v11116_v17 }
 0xa63   :  { %9668 = vmatmul.mubr.msk.f32.vlgmr.msra.gmra.mxu1 %vm372_vm2, %v1438_v18 }
 0xa64   :  { %9676 = vmatpush3.msra.mxu1 %v11049_v19  ;;  %9683 = vmatprep.mubr.msk.f32.mxu1 %vm10480_vm1, %v12479_v7 }
 0xa65   :  { %9677 = vmatprep.subr.mxu1 %v12479_v7 }
 0xa66   :  { %9678 = vmatpush3.msra.mxu1 %v11055_v61 }
 0xa67   :  { %9679 = vmatprep.subr.mxu1 %v12479_v7 }
 0xa68   :  { %9680 = vmatpush3.msra.mxu1 %v11064_v59 }
 0xa69   :  { %9681 = vmatprep.subr.mxu1 %v12479_v7 }
 0xa6a   :  { %9682 = vmatpush3.msra.mxu1 %v11071_v46 }
 0xa6b   :  { %9684 = vmatmul.mubr.msk.f32.vlgmr.msra.gmra.mxu1 %vm81_vm0, %v10685_v24  ;;  %9697 = vmatprep.subr.mxu1 %v12479_v7 }
 0xa6c   :  { %9698 = vmatpush3.msra.mxu1 %v11078_v55  ;;  %9705 = vmatprep.mubr.msk.f32.mxu1 %vm10480_vm1, %v12479_v7 }
 0xa6d   :  { %9699 = vmatprep.subr.mxu1 %v12479_v7 }
 0xa6e   :  { %9700 = vmatpush3.msra.mxu1 %v11087_v63  ;;  %v11131_v63 = vld [vmem:[%s12519_s5 + $0x68] sm:$0xff] }
 0xa6f   :  { %9701 = vmatprep.subr.mxu1 %v12479_v7  ;;  %12539 = vst [vmem:[#allocation16_spill] sm:$0xff] %v11131_v63 }
 0xa70   :  { %9702 = vmatpush3.msra.mxu1 %v11096_v1 }
 0xa71   :  { %9703 = vmatprep.subr.mxu1 %v12479_v7 }
 0xa72   :  { %9704 = vmatpush3.msra.mxu1 %v11103_v16  ;;  %v11122_v16 = vld [vmem:[%s12519_s5 + $0x70] sm:$0xff] }
 0xa73   :  { %9706 = vmatmul.mubr.msk.f32.vlgmr.msra.gmra.mxu1 %vm81_vm0, %v10685_v24  ;;  %9718 = vmatprep.subr.mxu1 %v12479_v7  ;;  %12538 = vst [vmem:[#allocation15_spill] sm:$0xff] %v11122_v16 }
 0xa74   :  { %9720 = vmatprep.mubr.msk.f32.mxu1 %vm10480_vm1, %v12479_v7 }
 0xb23   :  { %v1508_v18 = vpop.f32.mrf.mxu1 }
 0xb24   :  { %9673 = vmatmul.mubr.msk.f32.vlgmr.msra.gmra.mxu0 %vm372_vm2, %v1508_v18  ;;  %v11138_v18 = vld [vmem:[%s12519_s5 + $0x60] sm:$0xff] }
 0xb25   :  { %9687 = vmatpush3.msra.mxu0 %v11116_v17  ;;  %v9669_v1 = vpop.f32.mrf.mxu1  ;;  %9694 = vmatprep.mubr.msk.f32.mxu0 %vm10480_vm1, %v12479_v7  ;;  %12540 = vst [vmem:[#allocation17_spill] sm:$0xff] %v11138_v18 }
 0xb26   :  { %9688 = vmatprep.subr.mxu0 %v12479_v7 }
 0xb27   :  { %9689 = vmatpush3.msra.mxu0 %v11122_v16 }
 0xb28   :  { %9690 = vmatprep.subr.mxu0 %v12479_v7 }
 0xb29   :  { %9691 = vmatpush3.msra.mxu0 %v11131_v63 }
 0xb2a   :  { %9692 = vmatprep.subr.mxu0 %v12479_v7 }
 0xb2b   :  { %v1667_v1 = vpop.f32.mrf.mxu1  ;;  %9693 = vmatpush3.msra.mxu0 %v11138_v18  ;;  %v11154_v18 = vld [vmem:[%s12524_s3 + $0x3] ss:$0 sm:$0xff] }
 0xb2c   :  { %9695 = vmatmul.mubr.msk.f32.vlgmr.msra.gmra.mxu0 %vm81_vm0, %v10685_v24  ;;  %9708 = vmatprep.subr.mxu0 %v12479_v7  ;;  %12541 = vst [vmem:[#allocation18_spill] sm:$0xff] %v11154_v18 }
 0xb2d   :  { %v9685_v16 = vpop.f32.mrf.mxu1  ;;  %9710 = vmatprep.mubr.msk.f32.mxu0 %vm10480_vm1, %v12479_v7 }
 0xb2e   :  { %v11159_v16 = vld [vmem:[%s12525_s26 + $0x3] ss:$0 sm:$0xff] }
 0xb2f   :  { %12542 = vst [vmem:[#allocation19_spill] sm:$0xff] %v11159_v16 }
 0xb33   :  { %v1833_v17 = vpop.f32.mrf.mxu1 }
 0xb35   :  { %v9707_v55 = vpop.f32.mrf.mxu1 }
 0xb36   :  { %v11165_v55 = vld [vmem:[%s12526_s0 + $0x3] ss:$0 sm:$0xff] }
 0xb37   :  { %12543 = vst [vmem:[#allocation20_spill] sm:$0xff] %v11165_v55  ;;  %v1834_v24 = vadd.f32 %v11165_v55, %v1833_v17 }
 0xbe4   :  { %v1583_v46 = vpop.f32.mrf.mxu0 }
 0xbe5   :  { %v11149_v59 = vadd.f32 %v1583_v46, %v11008_v57  ;;  %v1668_v46 = vadd.f32 %v11159_v16, %v1667_v1 }
 0xbe6   :  { %v9674_v63 = vpop.f32.mrf.mxu0 }
 0xbe7   :  { %v12544_v63 = vmov 0.0  }
 0xbec   :  { %v1750_v61 = vpop.f32.mrf.mxu0 }
 0xbed   :  { %v1751_v7 = vadd.f32 %v11154_v18, %v1750_v61 }
 0xbee   :  { %v9696_v57 = vpop.f32.mrf.mxu0 }
 0xbef   :  { %9709 = vmatpush3.xpose.msk.msra.mxu0 %vm372_vm2, %v1751_v7  ;;  %v78_v7 = vld [vmem:[%s12517_s27 + $0x8] sm:$0xff] }
 0xbf0   :  { %9713 = vmatprep.subr.mxu0 %v12544_v63  ;;  %v85_v17 = vsel %vm81_vm0, %v78_v7, 0.0 }
 0xbf2   :  { %9711 = vmatmul.mubr.msk.f32.vlgmr.msra.gmra.mxu0 %vm372_vm2, %v1668_v46 }
 0xbf3   :  { %9714 = vmatpush3.msra.mxu0 %v1834_v24  ;;  %9715 = vmatprep.mubr.msk.f32.mxu0 %vm10480_vm1, %v12544_v63 }
 0xbf4   :  { %9723 = vmatprep.subr.mxu0 %v12544_v63 }
 0xcb2   :  { %v1909_v61 = vpop.f32.mrf.mxu0 }
 0xcb3   :  { %v1913_v18 = vmul.f32 0.35355338, %v1909_v61 }
 0xcb4   :  { %v9712_v19 = vpop.f32.mrf.mxu0 }
 0xcb5   :  { %v1914_v57 = vadd.f32 %v10886_v2, %v1913_v18 }
 0xcb7   :  { %v1915_v1 = vsel %vm372_vm2, %v1914_v57, -inf }
 0xcb8   :  { %1916 = vmax.xlane.f32.xlu0 %v1915_v1  ;;  %v11186_v1 = vld [vmem:[%s12446_s10 + $0x18] sm:$0xff] }
 0xcb9   :  { %9719 = vmatpush3.msra.mxu1 %v11186_v1 }
 0xcba   :  { %9734 = vmatprep.subr.mxu1 %v12544_v63 }
 0xcbc   :  { %86 = vadd.xlane.f32.xlu0 %v85_v17 }
 0xd41   :  { %v1917_v24 = vpop.xlane.xlu0 %1916 }
 0xd42   :  { %v1918_v46 = vsub.f32 %v1914_v57, %v1917_v24 }
 0xd44   :  { %v1919_v55 = vmul.f32 1.442695, %v1918_v46 }
 0xd45   :  { %v87_v16 = vpop.xlane.xlu0 %86 }
 0xd46   :  { %10397 = vpow2.f32 %v1919_v55  ;;  %v90_v47 = vmul.f32 0.03125, %v87_v16 }
 0xd48   :  { %v92_v61 = vsub.f32 %v78_v7, %v90_v47 }
 0xd4a   :  { %v94_v19 = vmul.f32 %v92_v61, %v92_v61 }
 0xd4c   :  { %v98_v18 = vsel %vm81_vm0, %v94_v19, 0.0 }
 0xd53   :  { %v10398_v23 = vpop.eup %10397 }
 0xd54   :  { %v1921_v2 = vsel %vm372_vm2, %v10398_v23, 0.0 }
 0xd55   :  { %1922 = vadd.xlane.f32.xlu1 %v1921_v2 }
 0xd59   :  { %99 = vadd.xlane.f32.xlu1 %v98_v18 }
 0xdde   :  { %v1923_v55 = vpop.xlane.xlu1 %1922 }
 0xddf   :  { %10399 = vrcp.f32 %v1923_v55 }
 0xde2   :  { %v100_v47 = vpop.xlane.xlu1 %99 }
 0xde3   :  { %v102_v16 = vmul.f32 0.03125, %v100_v47 }
 0xde5   :  { %v104_v57 = vadd.f32 1e-12, %v102_v16 }
 0xde7   :  { %10401 = vrsqrt.f32 %v104_v57 }
 0xdec   :  { %v10400_v7 = vpop.eup %10399 }
 0xded   :  { %v1925_v17 = vmul.f32 %v10400_v7, %v10398_v23 }
 0xdef   :  { %9716 = vmatmul.mubr.msk.f32.vlgmr.msra.gmra.mxu0 %vm372_vm2, %v1925_v17 }
 0xdf0   :  { %9724 = vmatpush3.msra.mxu0 %v10615_v8  ;;  %9731 = vmatprep.mubr.msk.f32.mxu0 %vm10480_vm1, %v12544_v63 }
 0xdf1   :  { %9725 = vmatprep.subr.mxu0 %v12544_v63 }
 0xdf2   :  { %9726 = vmatpush3.msra.mxu0 %v10629_v10 }
 0xdf3   :  { %9727 = vmatprep.subr.mxu0 %v12544_v63 }
 0xdf4   :  { %v10402_v24 = vpop.eup %10401  ;;  %9728 = vmatpush3.msra.mxu0 %v10643_v12 }
 0xdf5   :  { %v108_v46 = vmul.f32 %v10402_v24, %v92_v61  ;;  %9729 = vmatprep.subr.mxu0 %v12544_v63 }
 0xdf6   :  { %9730 = vmatpush3.msra.mxu0 %v10657_v14 }
 0xdf7   :  { %v116_v23 = vmul.f32 %v10676_v20, %v108_v46  ;;  %9745 = vmatprep.subr.mxu0 %v12544_v63 }
 0xdf9   :  { %v11203_v8 = vadd.f32 %v10681_v22, %v116_v23 }
 0xdfb   :  { %9732 = vmatmul.mubr.msk.f32.vlgmr.msra.gmra.mxu0 %vm81_vm0, %v11203_v8 }
 0xdfc   :  { %9746 = vmatpush3.msra.mxu0 %v10690_v25  ;;  %9753 = vmatprep.mubr.msk.f32.mxu0 %vm10480_vm1, %v12544_v63 }
 0xdfd   :  { %9747 = vmatprep.subr.mxu0 %v12544_v63 }
 0xdfe   :  { %9748 = vmatpush3.msra.mxu0 %v10699_v26 }
 0xdff   :  { %9749 = vmatprep.subr.mxu0 %v12544_v63 }
 0xe00   :  { %9750 = vmatpush3.msra.mxu0 %v10708_v27 }
 0xe01   :  { %9751 = vmatprep.subr.mxu0 %v12544_v63 }
 0xe02   :  { %9752 = vmatpush3.msra.mxu0 %v10717_v28 }
 0xe03   :  { %9766 = vmatprep.subr.mxu0 %v12544_v63  ;;  %9754 = vmatmul.mubr.msk.f32.vlgmr.msra.gmra.mxu0 %vm81_vm0, %v11203_v8 }
 0xe04   :  { %9767 = vmatpush3.msra.mxu0 %v10724_v29  ;;  %9774 = vmatprep.mubr.msk.f32.mxu0 %vm10480_vm1, %v12544_v63 }
 0xe05   :  { %9768 = vmatprep.subr.mxu0 %v12544_v63 }
 0xe06   :  { %9769 = vmatpush3.msra.mxu0 %v10733_v30 }
 0xe07   :  { %9770 = vmatprep.subr.mxu0 %v12544_v63 }
 0xe08   :  { %9771 = vmatpush3.msra.mxu0 %v10742_v31 }
 0xe09   :  { %9772 = vmatprep.subr.mxu0 %v12544_v63 }
 0xe0a   :  { %9773 = vmatpush3.msra.mxu0 %v10749_v32 }
 0xe0b   :  { %9788 = vmatprep.subr.mxu0 %v12544_v63  ;;  %9775 = vmatmul.mubr.msk.f32.vlgmr.msra.gmra.mxu0 %vm81_vm0, %v11203_v8 }
 0xe0c   :  { %9789 = vmatpush3.msra.mxu0 %v10756_v33  ;;  %9796 = vmatprep.mubr.msk.f32.mxu0 %vm10480_vm1, %v12544_v63 }
 0xe0d   :  { %9790 = vmatprep.subr.mxu0 %v12544_v63 }
 0xe0e   :  { %9791 = vmatpush3.msra.mxu0 %v10765_v34 }
 0xe0f   :  { %9792 = vmatprep.subr.mxu0 %v12544_v63 }
 0xe10   :  { %9793 = vmatpush3.msra.mxu0 %v10774_v35  ;;  %v11276_v35 = vld [vmem:[%s12445_s1 + $0x1] ss:$0 sm:$0xff] }
 0xe11   :  { %9794 = vmatprep.subr.mxu0 %v12544_v63 }
 0xe12   :  { %9795 = vmatpush3.msra.mxu0 %v10781_v36 }
 0xe13   :  { %9797 = vmatmul.mubr.msk.f32.vlgmr.msra.gmra.mxu0 %vm81_vm0, %v11203_v8  ;;  %9809 = vmatprep.subr.mxu0 %v12544_v63 }
 0xe14   :  { %9810 = vmatpush3.msra.mxu0 %v10956_v58  ;;  %9811 = vmatprep.mubr.msk.f32.mxu0 %vm10480_vm1, %v12544_v63 }
 0xe15   :  { %9819 = vmatprep.subr.mxu0 %v12544_v63 }
 0xeaf   :  { %v1995_v10 = vpop.f32.mrf.mxu0 }
 0xeb0   :  { %9721 = vmatmul.mubr.msk.f32.vlgmr.msra.gmra.mxu1 %vm372_vm2, %v1995_v10 }
 0xeb1   :  { %9735 = vmatpush3.msra.mxu1 %v10622_v9  ;;  %v9717_v12 = vpop.f32.mrf.mxu0  ;;  %9742 = vmatprep.mubr.msk.f32.mxu1 %vm10480_vm1, %v12544_v63 }
 0xeb2   :  { %9736 = vmatprep.subr.mxu1 %v12544_v63 }
 0xeb3   :  { %9737 = vmatpush3.msra.mxu1 %v10636_v11 }
 0xeb4   :  { %9738 = vmatprep.subr.mxu1 %v12544_v63 }
 0xeb5   :  { %9739 = vmatpush3.msra.mxu1 %v10650_v13 }
 0xeb6   :  { %9740 = vmatprep.subr.mxu1 %v12544_v63 }
 0xeb7   :  { %9741 = vmatpush3.msra.mxu1 %v10664_v15 }
 0xeb8   :  { %9743 = vmatmul.mubr.msk.f32.vlgmr.msra.gmra.mxu1 %vm81_vm0, %v11203_v8  ;;  %9756 = vmatprep.subr.mxu1 %v12544_v63 }
 0xeb9   :  { %9758 = vmatprep.mubr.msk.f32.mxu1 %vm10480_vm1, %v12544_v63 }
 0xebb   :  { %v2158_v9 = vpop.f32.mrf.mxu0 }
 0xebc   :  { %v2159_v32 = vadd.f32 %v10863_v48, %v2158_v9 }
 0xebd   :  { %v9733_v14 = vpop.f32.mrf.mxu0 }
 0xec3   :  { %v2320_v20 = vpop.f32.mrf.mxu0 }
 0xec4   :  { %v2321_v33 = vadd.f32 %v10873_v53, %v2320_v20 }
 0xec5   :  { %v9755_v11 = vpop.f32.mrf.mxu0 }
 0xecb   :  { %v2570_v22 = vpop.f32.mrf.mxu0 }
 0xecd   :  { %v9776_v25 = vpop.f32.mrf.mxu0 }
 0xed3   :  { %v2732_v26 = vpop.f32.mrf.mxu0 }
 0xed5   :  { %v9798_v13 = vpop.f32.mrf.mxu0 }
 0xf70   :  { %v2070_v27 = vpop.f32.mrf.mxu1 }
 0xf71   :  { %v2074_v28 = vadd.f32 %v2070_v27, %v11149_v59 }
 0xf72   :  { %v9722_v15 = vpop.f32.mrf.mxu1 }
 0xf73   :  { %2075 = vst.msk [vmem:[#allocation2] sm:$0xff] %vm81_vm0, %v2074_v28 }
 0xf78   :  { %v2239_v29 = vpop.f32.mrf.mxu1 }
 0xf79   :  { %v2240_v30 = vadd.f32 %v10858_v45, %v2239_v29 }
 0xf7a   :  { %v9744_v31 = vpop.f32.mrf.mxu1 }
 0xf7b   :  { %9757 = vmatpush3.xpose.msk.msra.mxu1 %vm372_vm2, %v2240_v30 }
 0xf7c   :  { %9761 = vmatprep.subr.mxu1 %v12544_v63 }
 0xf7e   :  { %9759 = vmatmul.mubr.msk.f32.vlgmr.msra.gmra.mxu1 %vm372_vm2, %v2159_v32 }
 0xf7f   :  { %9762 = vmatpush3.msra.mxu1 %v2321_v33  ;;  %9763 = vmatprep.mubr.msk.f32.mxu1 %vm10480_vm1, %v12544_v63 }
 0xf80   :  { %9777 = vmatprep.subr.mxu1 %v12544_v63 }
0x103e   :  { %v2396_v34 = vpop.f32.mrf.mxu1 }
0x103f   :  { %v2400_v36 = vmul.f32 0.35355338, %v2396_v34 }
0x1040   :  { %v9760_v45 = vpop.f32.mrf.mxu1 }
0x1041   :  { %v2407_v48 = vadd.f32 %v11276_v35, %v2400_v36 }
0x1043   :  { %v2408_v53 = vsel %vm372_vm2, %v2407_v48, -inf }
0x1044   :  { %2409 = vmax.xlane.f32.xlu0 %v2408_v53  ;;  %v12548_v53 = vld [vmem:[#allocation7_spill] sm:$0xff] }
0x10cd   :  { %v2410_v58 = vpop.xlane.xlu0 %2409 }
0x10ce   :  { %v2411_v59 = vsub.f32 %v2407_v48, %v2410_v58  ;;  %v12547_v48 = vld [vmem:[#allocation6_spill] sm:$0xff]  ;;  %v12549_v58 = vld [vmem:[#allocation8_spill] sm:$0xff] }
0x10d0   :  { %v2412_v61 = vmul.f32 1.442695, %v2411_v59  ;;  %v12550_v59 = vld [vmem:[#allocation9_spill] sm:$0xff] }
0x10d2   :  { %10403 = vpow2.f32 %v2412_v61  ;;  %v12551_v61 = vld [vmem:[#allocation10_spill] sm:$0xff] }
0x10df   :  { %v10404_v19 = vpop.eup %10403 }
0x10e0   :  { %v2414_v2 = vsel %vm372_vm2, %v10404_v19, 0.0 }
0x10e1   :  { %2415 = vadd.xlane.f32.xlu1 %v2414_v2  ;;  %v12553_v2 = vld [vmem:[#allocation12_spill] sm:$0xff] }
0x116a   :  { %v2416_v18 = vpop.xlane.xlu1 %2415 }
0x116b   :  { %10405 = vrcp.f32 %v2416_v18  ;;  %v12554_v18 = vld [vmem:[#allocation13_spill] sm:$0xff] }
0x1178   :  { %v10406_v55 = vpop.eup %10405 }
0x1179   :  { %v2418_v47 = vmul.f32 %v10406_v55, %v10404_v19  ;;  %v12552_v19 = vld [vmem:[#allocation11_spill] sm:$0xff] }
0x117b   :  { %9764 = vmatmul.mubr.msk.f32.vlgmr.msra.gmra.mxu1 %vm372_vm2, %v2418_v47  ;;  %v12555_v47 = vld [vmem:[#allocation14_spill] sm:$0xff] }
0x117c   :  { %9778 = vmatpush3.msra.mxu1 %v10894_v49  ;;  %9785 = vmatprep.mubr.msk.f32.mxu1 %vm10480_vm1, %v12544_v63 }
0x117d   :  { %9779 = vmatprep.subr.mxu1 %v12544_v63 }
0x117e   :  { %9780 = vmatpush3.msra.mxu1 %v10900_v50 }
0x117f   :  { %9781 = vmatprep.subr.mxu1 %v12544_v63 }
0x1180   :  { %9782 = vmatpush3.msra.mxu1 %v10909_v51  ;;  %v2571_v51 = vadd.f32 %v10934_v60, %v2570_v22  ;;  %v12546_v22 = vld [vmem:[#allocation5_spill] sm:$0xff] }
0x1181   :  { %9783 = vmatprep.subr.mxu1 %v12544_v63 }
0x1182   :  { %9784 = vmatpush3.msra.mxu1 %v10916_v52  ;;  %v2733_v52 = vadd.f32 %v10940_v0, %v2732_v26 }
0x1183   :  { %9786 = vmatmul.mubr.msk.f32.vlgmr.msra.gmra.mxu1 %vm81_vm0, %v11203_v8  ;;  %9799 = vmatprep.subr.mxu1 %v12544_v63 }
0x1184   :  { %9801 = vmatprep.mubr.msk.f32.mxu1 %vm10480_vm1, %v12544_v63 }
0x123b   :  { %v2488_v49 = vpop.f32.mrf.mxu1 }
0x123d   :  { %v9765_v16 = vpop.f32.mrf.mxu1 }
0x123e   :  { %v12556_v16 = vld [vmem:[#allocation15_spill] sm:$0xff] }
0x1243   :  { %v2651_v57 = vpop.f32.mrf.mxu1 }
0x1244   :  { %v2652_v50 = vadd.f32 %v10929_v56, %v2651_v57  ;;  %v12557_v57 = vld [vmem:[#allocation16_spill] sm:$0xff] }
0x1245   :  { %v9787_v7 = vpop.f32.mrf.mxu1 }
0x1246   :  { %9800 = vmatpush3.xpose.msk.msra.mxu1 %vm372_vm2, %v2652_v50  ;;  %v12558_v50 = vld [vmem:[#allocation17_spill] sm:$0xff] }
0x1247   :  { %9804 = vmatprep.subr.mxu1 %v12544_v63 }
0x1249   :  { %9802 = vmatmul.mubr.msk.f32.vlgmr.msra.gmra.mxu1 %vm372_vm2, %v2571_v51 }
0x124a   :  { %9805 = vmatpush3.msra.mxu1 %v2733_v52  ;;  %9806 = vmatprep.mubr.msk.f32.mxu1 %vm10480_vm1, %v12544_v63 }
0x124b   :  { %9814 = vmatprep.subr.mxu1 %v12544_v63 }
0x1309   :  { %v2808_v17 = vpop.f32.mrf.mxu1 }
0x130a   :  { %v2812_v24 = vmul.f32 0.35355338, %v2808_v17 }
0x130b   :  { %v9803_v56 = vpop.f32.mrf.mxu1 }
0x130c   :  { %v2813_v46 = vadd.f32 %v11276_v35, %v2812_v24 }
0x130e   :  { %v2814_v23 = vsel %vm372_vm2, %v2813_v46, -inf }
0x130f   :  { %2815 = vmax.xlane.f32.xlu0 %v2814_v23 }
0x1398   :  { %v2816_v60 = vpop.xlane.xlu0 %2815 }
0x1399   :  { %v2817_v10 = vsub.f32 %v2813_v46, %v2816_v60  ;;  %v12559_v60 = vld [vmem:[#allocation18_spill] sm:$0xff] }
0x139b   :  { %v2818_v12 = vmul.f32 1.442695, %v2817_v10 }
0x139d   :  { %10407 = vpow2.f32 %v2818_v12 }
0x13aa   :  { %v10408_v0 = vpop.eup %10407 }
0x13ab   :  { %v2820_v9 = vsel %vm372_vm2, %v10408_v0, 0.0 }
0x13ac   :  { %2821 = vadd.xlane.f32.xlu1 %v2820_v9 }
0x1435   :  { %v2822_v14 = vpop.xlane.xlu1 %2821 }
0x1436   :  { %10409 = vrcp.f32 %v2822_v14  ;;  %v12561_v14 = vld [vmem:[#allocation20_spill] sm:$0xff] }
0x1443   :  { %v10410_v20 = vpop.eup %10409 }
0x1444   :  { %v2824_v11 = vmul.f32 %v10410_v20, %v10408_v0  ;;  %v12560_v0 = vld [vmem:[#allocation19_spill] sm:$0xff] }
0x1446   :  { %9807 = vmatmul.mubr.msk.f32.vlgmr.msra.gmra.mxu1 %vm372_vm2, %v2824_v11  ;;  %v4006_v11 = vld [vmem:[#allocation2] sm:$0xff] }
0x1447   :  { %9815 = vmatpush3.msra.mxu1 %v10966_v62  ;;  %9816 = vmatprep.mubr.msk.f32.mxu1 %vm10480_vm1, %v12544_v63 }
0x1448   :  { %9830 = vmatprep.subr.mxu1 %v12544_v63 }
0x144a   :  { %9817 = vmatmul.mubr.msk.f32.vlgmr.msra.gmra.mxu1 %vm372_vm2, %v2488_v49 }
0x144b   :  { %9831 = vmatpush3.msra.mxu1 %v10976_v4  ;;  %9838 = vmatprep.mubr.msk.f32.mxu1 %vm10480_vm1, %v12544_v63 }
0x144c   :  { %9832 = vmatprep.subr.mxu1 %v12544_v63 }
0x144d   :  { %9833 = vmatpush3.msra.mxu1 %v10982_v5 }
0x144e   :  { %9834 = vmatprep.subr.mxu1 %v12544_v63 }
0x144f   :  { %9835 = vmatpush3.msra.mxu1 %v10991_v6 }
0x1450   :  { %9836 = vmatprep.subr.mxu1 %v12544_v63 }
0x1451   :  { %9837 = vmatpush3.msra.mxu1 %v10998_v54 }
0x1452   :  { %9839 = vmatmul.mubr.msk.f32.vlgmr.msra.gmra.mxu1 %vm81_vm0, %v11203_v8  ;;  %9852 = vmatprep.subr.mxu1 %v12544_v63 }
0x1453   :  { %9854 = vmatprep.mubr.msk.f32.mxu1 %vm10480_vm1, %v12544_v63 }
0x1506   :  { %v2894_v62 = vpop.f32.mrf.mxu1 }
0x1507   :  { %9812 = vmatmul.mubr.msk.f32.vlgmr.msra.gmra.mxu0 %vm372_vm2, %v2894_v62  ;;  %v8893_v62 = vld [vmem:[%s12447_s11] ss:$0 sm:$0xff] }
0x1508   :  { %9820 = vmatpush3.msra.mxu0 %v10788_v37  ;;  %v9808_v4 = vpop.f32.mrf.mxu1  ;;  %9827 = vmatprep.mubr.msk.f32.mxu0 %vm10480_vm1, %v12544_v63 }
0x1509   :  { %9821 = vmatprep.subr.mxu0 %v12544_v63 }
0x150a   :  { %9822 = vmatpush3.msra.mxu0 %v10797_v38  ;;  %v11334_v5 = vpop.f32.mrf.mxu1 }
0x150b   :  { %9823 = vmatprep.subr.mxu0 %v12544_v63 }
0x150c   :  { %9824 = vmatpush3.msra.mxu0 %v10806_v39  ;;  %v9818_v6 = vpop.f32.mrf.mxu1 }
0x150d   :  { %9825 = vmatprep.subr.mxu0 %v12544_v63  ;;  %v4015_v6 = vadd.f32 %v8893_v62, %v4006_v11  ;;  %v4175_v11 = vld [vmem:[%s12451_s16 + $0x10] sm:$0xff] }
0x150e   :  { %9826 = vmatpush3.msra.mxu0 %v10813_v40 }
0x150f   :  { %9828 = vmatmul.mubr.msk.f32.vlgmr.msra.gmra.mxu0 %vm81_vm0, %v11203_v8  ;;  %9841 = vmatprep.subr.mxu0 %v12544_v63 }
0x1510   :  { %9842 = vmatpush3.msra.mxu0 %v10820_v41  ;;  %9849 = vmatprep.mubr.msk.f32.mxu0 %vm10480_vm1, %v12544_v63 }
0x1511   :  { %9843 = vmatprep.subr.mxu0 %v12544_v63 }
0x1512   :  { %v3203_v37 = vpop.f32.mrf.mxu1  ;;  %9844 = vmatpush3.msra.mxu0 %v10829_v42 }
0x1513   :  { %v3204_v38 = vadd.f32 %v11013_v21, %v3203_v37  ;;  %9845 = vmatprep.subr.mxu0 %v12544_v63 }
0x1514   :  { %v9840_v39 = vpop.f32.mrf.mxu1  ;;  %9846 = vmatpush3.msra.mxu0 %v10838_v43  ;;  %v12545_v43 = vld [vmem:[#allocation4_spill] sm:$0xff] }
0x1515   :  { %9847 = vmatprep.subr.mxu0 %v12544_v63  ;;  %9853 = vmatpush3.xpose.msk.msra.mxu1 %vm372_vm2, %v3204_v38 }
0x1516   :  { %9848 = vmatpush3.msra.mxu0 %v10845_v44  ;;  %9857 = vmatprep.subr.mxu1 %v12544_v63 }
0x1517   :  { %9850 = vmatmul.mubr.msk.f32.vlgmr.msra.gmra.mxu0 %vm81_vm0, %v11203_v8  ;;  %9862 = vmatprep.subr.mxu0 %v12544_v63 }
0x1518   :  { %9863 = vmatpush3.msra.mxu0 %v11042_v3  ;;  %9864 = vmatprep.mubr.msk.f32.mxu0 %vm10480_vm1, %v12544_v63 }
0x1519   :  { %9878 = vmatprep.subr.mxu0 %v12544_v63 }
0x15c7   :  { %v11362_v40 = vpop.f32.mrf.mxu0 }
0x15c8   :  { %v3042_v17 = vadd.f32 %v11334_v5, %v11362_v40  ;;  %v12562_v40 = vld [vmem:[#allocation3_spill] sm:$0xff] }
0x15c9   :  { %v9813_v41 = vpop.f32.mrf.mxu0 }
0x15ca   :  { %v4017_v41 = vadd.f32 %v4015_v6, %v12562_v40 }
0x15cf   :  { %v3122_v42 = vpop.f32.mrf.mxu0 }
0x15d0   :  { %v3123_v44 = vadd.f32 %v12545_v43, %v3122_v42  ;;  %v4021_v42 = vsel %vm81_vm0, %v4017_v41, 0.0 }
0x15d1   :  { %v9829_v54 = vpop.f32.mrf.mxu0 }
0x15d2   :  { %9855 = vmatmul.mubr.msk.f32.vlgmr.msra.gmra.mxu1 %vm372_vm2, %v3123_v44 }
0x15d3   :  { %9859 = vmatprep.mubr.msk.f32.mxu1 %vm10480_vm1, %v12544_v63 }
0x15d7   :  { %v3284_v21 = vpop.f32.mrf.mxu0 }
0x15d8   :  { %v3285_v3 = vadd.f32 %v12546_v22, %v3284_v21 }
0x15d9   :  { %v9851_v25 = vpop.f32.mrf.mxu0 }
0x15da   :  { %9858 = vmatpush3.msra.mxu1 %v3285_v3 }
0x15db   :  { %9867 = vmatprep.subr.mxu1 %v12544_v63 }
0x1692   :  { %v3360_v26 = vpop.f32.mrf.mxu1 }
0x1693   :  { %v3364_v13 = vmul.f32 0.35355338, %v3360_v26 }
0x1694   :  { %v9856_v27 = vpop.f32.mrf.mxu1 }
0x1695   :  { %v3365_v28 = vadd.f32 %v11276_v35, %v3364_v13 }
0x1697   :  { %v3366_v15 = vsel %vm372_vm2, %v3365_v28, -inf }
0x1698   :  { %3367 = vmax.xlane.f32.xlu0 %v3366_v15 }
0x1721   :  { %v3368_v29 = vpop.xlane.xlu0 %3367 }
0x1722   :  { %v3369_v30 = vsub.f32 %v3365_v28, %v3368_v29 }
0x1724   :  { %v3370_v31 = vmul.f32 1.442695, %v3369_v30 }
0x1726   :  { %10411 = vpow2.f32 %v3370_v31  ;;  %v8894_v31 = vld [vmem:[%s12448_s12] ss:$0 sm:$0xff] }
0x1733   :  { %v10412_v32 = vpop.eup %10411 }
0x1734   :  { %v3372_v33 = vsel %vm372_vm2, %v10412_v32, 0.0 }
0x1735   :  { %3373 = vadd.xlane.f32.xlu1 %v3372_v33  ;;  %v8895_v33 = vld [vmem:[%s12449_s13] ss:$0 sm:$0xff] }
0x17be   :  { %v3374_v34 = vpop.xlane.xlu1 %3373 }
0x17bf   :  { %10413 = vrcp.f32 %v3374_v34 }
0x17cc   :  { %v10414_v36 = vpop.eup %10413 }
0x17cd   :  { %v3376_v45 = vmul.f32 %v10414_v36, %v10412_v32 }
0x17cf   :  { %9860 = vmatmul.mubr.msk.f32.vlgmr.msra.gmra.mxu1 %vm372_vm2, %v3376_v45 }
0x17d0   :  { %9868 = vmatpush3.msra.mxu1 %v12547_v48  ;;  %9875 = vmatprep.mubr.msk.f32.mxu1 %vm10480_vm1, %v12544_v63 }
0x17d1   :  { %9869 = vmatprep.subr.mxu1 %v12544_v63 }
0x17d2   :  { %9870 = vmatpush3.msra.mxu1 %v12548_v53 }
0x17d3   :  { %9871 = vmatprep.subr.mxu1 %v12544_v63 }
0x17d4   :  { %9872 = vmatpush3.msra.mxu1 %v12549_v58 }
0x17d5   :  { %9873 = vmatprep.subr.mxu1 %v12544_v63 }
0x17d6   :  { %9874 = vmatpush3.msra.mxu1 %v12550_v59 }
0x17d7   :  { %9876 = vmatmul.mubr.msk.f32.vlgmr.msra.gmra.mxu1 %vm81_vm0, %v11203_v8  ;;  %9889 = vmatprep.subr.mxu1 %v12544_v63 }
0x17d8   :  { %9890 = vmatpush3.msra.mxu1 %v12551_v61  ;;  %9897 = vmatprep.mubr.msk.f32.mxu1 %vm10480_vm1, %v12544_v63 }
0x17d9   :  { %9891 = vmatprep.subr.mxu1 %v12544_v63 }
0x17da   :  { %9892 = vmatpush3.msra.mxu1 %v12552_v19 }
0x17db   :  { %9893 = vmatprep.subr.mxu1 %v12544_v63 }
0x17dc   :  { %9894 = vmatpush3.msra.mxu1 %v12553_v2 }
0x17dd   :  { %9895 = vmatprep.subr.mxu1 %v12544_v63 }
0x17de   :  { %9896 = vmatpush3.msra.mxu1 %v12554_v18 }
0x17df   :  { %9898 = vmatmul.mubr.msk.f32.vlgmr.msra.gmra.mxu1 %vm81_vm0, %v11203_v8  ;;  %9910 = vmatprep.subr.mxu1 %v12544_v63 }
0x17e0   :  { %9911 = vmatpush3.msra.mxu1 %v11186_v1  ;;  %9912 = vmatprep.mubr.msk.f32.mxu1 %vm10480_vm1, %v12544_v63 }
0x188f   :  { %v3446_v55 = vpop.f32.mrf.mxu1 }
0x1890   :  { %9865 = vmatmul.mubr.msk.f32.vlgmr.msra.gmra.mxu0 %vm372_vm2, %v3446_v55 }
0x1891   :  { %9879 = vmatpush3.msra.mxu0 %v12555_v47  ;;  %v9861_v49 = vpop.f32.mrf.mxu1  ;;  %9886 = vmatprep.mubr.msk.f32.mxu0 %vm10480_vm1, %v12544_v63 }
0x1892   :  { %9880 = vmatprep.subr.mxu0 %v12544_v63 }
0x1893   :  { %9881 = vmatpush3.msra.mxu0 %v12556_v16 }
0x1894   :  { %9882 = vmatprep.subr.mxu0 %v12544_v63 }
0x1895   :  { %9883 = vmatpush3.msra.mxu0 %v12557_v57 }
0x1896   :  { %9884 = vmatprep.subr.mxu0 %v12544_v63 }
0x1897   :  { %v3602_v1 = vpop.f32.mrf.mxu1  ;;  %9885 = vmatpush3.msra.mxu0 %v12558_v50 }
0x1898   :  { %9887 = vmatmul.mubr.msk.f32.vlgmr.msra.gmra.mxu0 %vm81_vm0, %v11203_v8  ;;  %9900 = vmatprep.subr.mxu0 %v12544_v63  ;;  %v3603_v9 = vadd.f32 %v12560_v0, %v3602_v1  ;;  %v4179_v0 = vld [vmem:[%s12451_s16 + $0x30] sm:$0xff] }
0x1899   :  { %v9877_v7 = vpop.f32.mrf.mxu1  ;;  %9902 = vmatprep.mubr.msk.f32.mxu0 %vm10480_vm1, %v12544_v63 }
0x189a   :  { %v4066_v7 = vld [vmem:[%s12450_s14 + $0x18] sm:$0xff] }
0x189f   :  { %v3764_v51 = vpop.f32.mrf.mxu1 }
0x18a0   :  { %v3765_v20 = vadd.f32 %v12561_v14, %v3764_v51  ;;  %v4064_v51 = vld [vmem:[%s12450_s14 + $0x8] sm:$0xff]  ;;  %v4177_v14 = vld [vmem:[%s12451_s16 + $0x20] sm:$0xff] }
0x18a1   :  { %v9899_v52 = vpop.f32.mrf.mxu1 }
0x18a2   :  { %v4063_v52 = vld [vmem:[%s12450_s14] sm:$0xff] }
0x1950   :  { %v3520_v24 = vpop.f32.mrf.mxu0 }
0x1951   :  { %v3524_v56 = vadd.f32 %v3520_v24, %v3042_v17 }
0x1952   :  { %v9866_v46 = vpop.f32.mrf.mxu0 }
0x1958   :  { %v3683_v23 = vpop.f32.mrf.mxu0 }
0x1959   :  { %v3684_v10 = vadd.f32 %v12559_v60, %v3683_v23 }
0x195a   :  { %v9888_v12 = vpop.f32.mrf.mxu0 }
0x195b   :  { %9901 = vmatpush3.xpose.msk.msra.mxu0 %vm372_vm2, %v3684_v10  ;;  %v4180_v12 = vld [vmem:[%s12451_s16 + $0x38] sm:$0xff] }
0x195c   :  { %9905 = vmatprep.subr.mxu0 %v12544_v63  ;;  %9926 = vmatprep.subr.mxu1 %v4180_v12 }
0x195e   :  { %9903 = vmatmul.mubr.msk.f32.vlgmr.msra.gmra.mxu0 %vm372_vm2, %v3603_v9  ;;  %v4178_v9 = vld [vmem:[%s12451_s16 + $0x28] sm:$0xff] }
0x195f   :  { %9906 = vmatpush3.msra.mxu0 %v3765_v20  ;;  %9907 = vmatprep.mubr.msk.f32.mxu0 %vm10480_vm1, %v12544_v63  ;;  %v4176_v20 = vld [vmem:[%s12451_s16 + $0x18] sm:$0xff] }
0x1960   :  { %9915 = vmatprep.subr.mxu0 %v4066_v7 }
0x1a1e   :  { %v3840_v4 = vpop.f32.mrf.mxu0 }
0x1a1f   :  { %v3844_v5 = vmul.f32 0.35355338, %v3840_v4  ;;  %v4173_v4 = vld [vmem:[%s12451_s16] sm:$0xff] }
0x1a20   :  { %v9904_v37 = vpop.f32.mrf.mxu0 }
0x1a21   :  { %v3845_v38 = vadd.f32 %v11276_v35, %v3844_v5  ;;  %v8896_v5 = vld [vmem:[%s12452_s15] ss:$0 sm:$0xff] }
0x1a23   :  { %v3846_v39 = vsel %vm372_vm2, %v3845_v38, -inf }
0x1a24   :  { %3847 = vmax.xlane.f32.xlu0 %v3846_v39 }
0x1a28   :  { %4022 = vadd.xlane.f32.xlu0 %v4021_v42 }
0x1aad   :  { %v3848_v43 = vpop.xlane.xlu0 %3847 }
0x1aae   :  { %v3849_v44 = vsub.f32 %v3845_v38, %v3848_v43 }
0x1ab0   :  { %v3850_v54 = vmul.f32 1.442695, %v3849_v44 }
0x1ab1   :  { %v4023_v21 = vpop.xlane.xlu0 %4022 }
0x1ab2   :  { %10415 = vpow2.f32 %v3850_v54  ;;  %v4027_v22 = vmul.f32 0.03125, %v4023_v21 }
0x1ab4   :  { %v4029_v3 = vsub.f32 %v4017_v41, %v4027_v22 }
0x1ab6   :  { %v4031_v25 = vmul.f32 %v4029_v3, %v4029_v3 }
0x1ab8   :  { %v4033_v26 = vsel %vm81_vm0, %v4031_v25, 0.0 }
0x1ab9   :  { %4034 = vadd.xlane.f32.xlu0 %v4033_v26 }
0x1abf   :  { %v10416_v35 = vpop.eup %10415 }
0x1ac0   :  { %v3852_v13 = vsel %vm372_vm2, %v10416_v35, 0.0 }
0x1ac1   :  { %3853 = vadd.xlane.f32.xlu1 %v3852_v13 }
0x1b42   :  { %v4035_v27 = vpop.xlane.xlu0 %4034 }
0x1b43   :  { %v4039_v28 = vmul.f32 0.03125, %v4035_v27 }
0x1b45   :  { %v4041_v15 = vadd.f32 1e-12, %v4039_v28 }
0x1b47   :  { %10417 = vrsqrt.f32 %v4041_v15 }
0x1b4a   :  { %v3854_v29 = vpop.xlane.xlu1 %3853 }
0x1b4b   :  { %10419 = vrcp.f32 %v3854_v29 }
0x1b54   :  { %v10418_v30 = vpop.eup %10417 }
0x1b55   :  { %v4045_v32 = vmul.f32 %v10418_v30, %v4029_v3 }
0x1b57   :  { %v4053_v34 = vmul.f32 %v8894_v31, %v4045_v32 }
0x1b58   :  { %v10420_v36 = vpop.eup %10419 }
0x1b59   :  { %v3856_v45 = vmul.f32 %v10420_v36, %v10416_v35  ;;  %v11441_v48 = vadd.f32 %v8895_v33, %v4053_v34 }
0x1b5b   :  { %9908 = vmatmul.mubr.msk.f32.vlgmr.msra.gmra.mxu0 %vm372_vm2, %v3856_v45 }
0x1b5c   :  { %9923 = vmatprep.mubr.msk.f32.mxu0 %vm81_vm0, %v11441_v48  ;;  %9916 = vmatpush3.msra.mxu0 %v4066_v7 }
0x1c1b   :  { %v3926_v53 = vpop.f32.mrf.mxu0 }
0x1c1c   :  { %9913 = vmatmul.mubr.msk.f32.vlgmr.msra.gmra.mxu1 %vm372_vm2, %v3926_v53 }
0x1c1d   :  { %v9909_v58 = vpop.f32.mrf.mxu0  ;;  %9927 = vmatpush3.msra.mxu1 %v4180_v12  ;;  %v11601_v12 = vld [vmem:[%s12519_s5 + $0x88] sm:$0xff] }
0x1c1e   :  { %9928 = vmatprep.subr.mxu1 %v4179_v0 }
0x1c1f   :  { %9929 = vmatpush3.msra.mxu1 %v4179_v0  ;;  %v11610_v0 = vld [vmem:[%s12519_s5 + $0x80] sm:$0xff] }
0x1c20   :  { %9930 = vmatprep.subr.mxu1 %v4178_v9 }
0x1c21   :  { %9931 = vmatpush3.msra.mxu1 %v4178_v9  ;;  %v11623_v9 = vld [vmem:[%s12526_s0 + $0x4] ss:$0 sm:$0xff] }
0x1c22   :  { %9932 = vmatprep.subr.mxu1 %v4177_v14 }
0x1c23   :  { %9933 = vmatpush3.msra.mxu1 %v4177_v14 }
0x1c24   :  { %9934 = vmatprep.subr.mxu1 %v4176_v20 }
0x1c25   :  { %9935 = vmatpush3.msra.mxu1 %v4176_v20 }
0x1c26   :  { %9936 = vmatprep.subr.mxu1 %v4175_v11 }
0x1c27   :  { %9937 = vmatpush3.msra.mxu1 %v4175_v11 }
0x1cdc   :  { %v4000_v59 = vpop.f32.mrf.mxu1 }
0x1cdd   :  { %v4004_v61 = vadd.f32 %v4000_v59, %v3524_v56 }
0x1cde   :  { %v9914_v19 = vpop.f32.mrf.mxu1 }
0x1cdf   :  { %4005 = vst.msk [vmem:[#allocation2 + $0x8] sm:$0xff] %vm81_vm0, %v4004_v61 }
0x1ce6   :  { %v4007_v2 = vld [vmem:[#allocation2 + $0x8] sm:$0xff] }
0x1ce7   :  { %v4016_v18 = vadd.f32 %v8893_v62, %v4007_v2  ;;  %v4174_v62 = vld [vmem:[%s12451_s16 + $0x8] sm:$0xff] }
0x1ce8   :  { %9938 = vmatprep.subr.mxu1 %v4174_v62 }
0x1ce9   :  { %v4018_v55 = vadd.f32 %v4016_v18, %v11203_v8  ;;  %v4065_v8 = vld [vmem:[%s12450_s14 + $0x10] sm:$0xff]  ;;  %9939 = vmatpush3.msra.mxu1 %v4174_v62  ;;  %v11513_v18 = vld [vmem:[%s12518_s6 + $0x98] sm:$0xff] }
0x1cea   :  { %9917 = vmatprep.subr.mxu0 %v4065_v8  ;;  %9940 = vmatprep.subr.mxu1 %v4173_v4 }
0x1ceb   :  { %v4024_v47 = vsel %vm81_vm0, %v4018_v55, 0.0  ;;  %9918 = vmatpush3.msra.mxu0 %v4065_v8  ;;  %9941 = vmatpush3.msra.mxu1 %v4173_v4 }
0x1cec   :  { %4025 = vadd.xlane.f32.xlu1 %v4024_v47  ;;  %9919 = vmatprep.subr.mxu0 %v4064_v51  ;;  %v11533_v47 = vld [vmem:[%s12523_s28 + $0x90] sm:$0xff] }
0x1ced   :  { %9920 = vmatpush3.msra.mxu0 %v4064_v51  ;;  %9967 = vmatprep.subr.mxu1 %v12544_v63 }
0x1cee   :  { %9921 = vmatprep.subr.mxu0 %v4063_v52 }
0x1cef   :  { %9922 = vmatpush3.msra.mxu0 %v4063_v52  ;;  %v11569_v52 = vld [vmem:[%s12454_s18] ss:$0 sm:$0xff] }
0x1cf0   :  { %9945 = vmatprep.subr.mxu0 %v12544_v63 }
0x1d75   :  { %v4026_v49 = vpop.xlane.xlu1 %4025 }
0x1d76   :  { %v4028_v16 = vmul.f32 0.03125, %v4026_v49  ;;  %v11540_v49 = vld [vmem:[%s12518_s6 + $0x88] sm:$0xff] }
0x1d78   :  { %v4030_v57 = vsub.f32 %v4018_v55, %v4028_v16  ;;  %v11526_v55 = vld [vmem:[%s12518_s6 + $0x90] sm:$0xff]  ;;  %v11547_v16 = vld [vmem:[%s12523_s28 + $0x88] sm:$0xff] }
0x1d7a   :  { %v4032_v1 = vmul.f32 %v4030_v57, %v4030_v57 }
0x1d7c   :  { %v4036_v50 = vsel %vm81_vm0, %v4032_v1, 0.0  ;;  %v11561_v1 = vld [vmem:[%s12523_s28 + $0x80] sm:$0xff] }
0x1d7d   :  { %4037 = vadd.xlane.f32.xlu1 %v4036_v50 }
0x1e06   :  { %v4038_v17 = vpop.xlane.xlu1 %4037 }
0x1e07   :  { %v4040_v24 = vmul.f32 0.03125, %v4038_v17 }
0x1e09   :  { %v4042_v56 = vadd.f32 1e-12, %v4040_v24  ;;  %v11574_v24 = vld [vmem:[%s12455_s19] ss:$0 sm:$0xff] }
0x1e0b   :  { %10421 = vrsqrt.f32 %v4042_v56 }
0x1e18   :  { %v10422_v46 = vpop.eup %10421 }
0x1e19   :  { %v4046_v23 = vmul.f32 %v10422_v46, %v4030_v57  ;;  %v11554_v57 = vld [vmem:[%s12518_s6 + $0x80] sm:$0xff] }
0x1e1b   :  { %v4054_v60 = vmul.f32 %v8894_v31, %v4046_v23  ;;  %v8899_v31 = vld [vmem:[%s12453_s17] ss:$0 sm:$0xff]  ;;  %v11583_v23 = vld [vmem:[%s12519_s5 + $0x98] sm:$0xff] }
0x1e1d   :  { %v11464_v10 = vadd.f32 %v8895_v33, %v4054_v60  ;;  %v11592_v60 = vld [vmem:[%s12519_s5 + $0x90] sm:$0xff] }
0x1e1f   :  { %9924 = vmatmul.mubr.msk.f32.vlgmr.msra.gmra.mxu0 %vm81_vm0, %v11464_v10 }
0x1e20   :  { %9953 = vmatprep.mubr.msk.f32.mxu0 %vm10480_vm1, %v12544_v63  ;;  %9946 = vmatpush3.msra.mxu0 %v11513_v18 }
0x1e21   :  { %9947 = vmatprep.subr.mxu0 %v12544_v63 }
0x1e22   :  { %9948 = vmatpush3.msra.mxu0 %v11526_v55 }
0x1e23   :  { %9949 = vmatprep.subr.mxu0 %v12544_v63 }
0x1e24   :  { %9950 = vmatpush3.msra.mxu0 %v11540_v49 }
0x1e25   :  { %9951 = vmatprep.subr.mxu0 %v12544_v63 }
0x1e26   :  { %9952 = vmatpush3.msra.mxu0 %v11554_v57 }
0x1e27   :  { %9956 = vmatprep.subr.mxu0 %v12544_v63 }
0x1edf   :  { %v9925_v6 = vpop.f32.mrf.mxu0 }
0x1ee0   :  { %v4152_v37 = vadd.f32 %v9925_v6, %v8896_v5 }
0x1ee1   :  { %v4146_v38 = vpop.f32.mrf.mxu0 }
0x1ee2   :  { %v4158_v39 = vmul.f32 0.044715, %v4152_v37  ;;  %v4147_v40 = vadd.f32 %v8896_v5, %v4146_v38  ;;  %v4156_v15 = vmul.f32 0.5, %v4152_v37  ;;  %v11630_v5 = vld [vmem:[%s12524_s3 + $0x4] ss:$0 sm:$0xff] }
0x1ee4   :  { %v4160_v41 = vmul.f32 %v4158_v39, %v4152_v37  ;;  %v4157_v42 = vmul.f32 0.044715, %v4147_v40  ;;  %v4155_v27 = vmul.f32 0.5, %v4147_v40 }
0x1ee6   :  { %v4162_v43 = vmul.f32 %v4160_v41, %v4152_v37  ;;  %v4159_v44 = vmul.f32 %v4157_v42, %v4147_v40  ;;  %v11644_v41 = vld [vmem:[%s12518_s6 + $0xb8] sm:$0xff]  ;;  %v11650_v42 = vld [vmem:[%s12518_s6 + $0xb0] sm:$0xff] }
0x1ee8   :  { %v4164_v54 = vadd.f32 %v4162_v43, %v4152_v37  ;;  %v4161_v21 = vmul.f32 %v4159_v44, %v4147_v40  ;;  %v11635_v37 = vld [vmem:[%s12525_s26 + $0x4] ss:$0 sm:$0xff]  ;;  %v11659_v43 = vld [vmem:[%s12518_s6 + $0xa8] sm:$0xff] }
0x1ee9   :  { %v11666_v44 = vld [vmem:[%s12518_s6 + $0xa0] sm:$0xff] }
0x1eea   :  { %v4166_v22 = vmul.f32 0.7978846, %v4164_v54  ;;  %v4163_v3 = vadd.f32 %v4161_v21, %v4147_v40  ;;  %v11673_v54 = vld [vmem:[%s12523_s28 + $0xb8] sm:$0xff]  ;;  %v11682_v21 = vld [vmem:[%s12523_s28 + $0xb0] sm:$0xff] }
0x1eec   :  { %10423 = vtanh.f32 %v4166_v22  ;;  %v4165_v25 = vmul.f32 0.7978846, %v4163_v3  ;;  %v11691_v22 = vld [vmem:[%s12523_s28 + $0xa8] sm:$0xff]  ;;  %v11698_v3 = vld [vmem:[%s12523_s28 + $0xa0] sm:$0xff] }
0x1eee   :  { %10425 = vtanh.f32 %v4165_v25 }
0x1ef9   :  { %v10424_v26 = vpop.eup %10423 }
0x1efa   :  { %v4170_v13 = vadd.f32 1.0, %v10424_v26  ;;  %v11711_v26 = vld [vmem:[%s12445_s1] ss:$0 sm:$0xff] }
0x1efb   :  { %v10426_v35 = vpop.eup %10425 }
0x1efc   :  { %v4169_v28 = vadd.f32 1.0, %v10426_v35  ;;  %v4172_v30 = vmul.f32 %v4170_v13, %v4156_v15 }
0x1efe   :  { %v4171_v29 = vmul.f32 %v4169_v28, %v4155_v27 }
0x1f00   :  { %9942 = vmatprep.mubr.msk.f32.mxu1 %vm4188_vm3, %v4171_v29 }
0x1f01   :  { %9943 = vmatmul.mubr.msk.f32.vlgmr.msra.gmra.mxu1 %vm4188_vm3, %v4172_v30 }
0x1f02   :  { %9975 = vmatprep.mubr.msk.f32.mxu1 %vm10480_vm1, %v12544_v63 }
0x1fc1   :  { %v9944_v32 = vpop.f32.mrf.mxu1 }
0x1fc2   :  { %v11505_v33 = vadd.f32 %v9944_v32, %v8899_v31 }
0x1fc3   :  { %v4261_v34 = vpop.f32.mrf.mxu1 }
0x1fc4   :  { %v4262_v36 = vadd.f32 %v8899_v31, %v4261_v34 }
0x1fc6   :  { %v4270_v45 = vadd.f32 %v4262_v36, %v11441_v48  ;;  %v11519_v48 = vld [vmem:[%s12523_s28 + $0x98] sm:$0xff] }
0x1fc7   :  { %9968 = vmatpush3.msra.mxu1 %v11519_v48 }
0x1fc8   :  { %v4274_v53 = vsel %vm81_vm0, %v4270_v45, 0.0  ;;  %9969 = vmatprep.subr.mxu1 %v12544_v63 }
0x1fc9   :  { %4275 = vadd.xlane.f32.xlu0 %v4274_v53  ;;  %9970 = vmatpush3.msra.mxu1 %v11533_v47 }
0x1fca   :  { %9971 = vmatprep.subr.mxu1 %v12544_v63 }
0x1fcb   :  { %9972 = vmatpush3.msra.mxu1 %v11547_v16 }
0x1fcc   :  { %9973 = vmatprep.subr.mxu1 %v12544_v63 }
0x1fcd   :  { %9974 = vmatpush3.msra.mxu1 %v11561_v1 }
0x1fce   :  { %9983 = vmatprep.subr.mxu1 %v12544_v63 }
0x2052   :  { %v4276_v58 = vpop.xlane.xlu0 %4275 }
0x2053   :  { %v4280_v59 = vmul.f32 0.03125, %v4276_v58 }
0x2055   :  { %v4282_v61 = vsub.f32 %v4270_v45, %v4280_v59 }
0x2057   :  { %v4284_v19 = vmul.f32 %v4282_v61, %v4282_v61 }
0x2059   :  { %v4286_v2 = vsel %vm81_vm0, %v4284_v19, 0.0  ;;  %v11719_v19 = vld [vmem:[%s12519_s5 + $0xb8] sm:$0xff] }
0x205a   :  { %4287 = vadd.xlane.f32.xlu1 %v4286_v2  ;;  %v11725_v2 = vld [vmem:[%s12519_s5 + $0xb0] sm:$0xff] }
0x20e3   :  { %v4288_v50 = vpop.xlane.xlu1 %4287 }
0x20e4   :  { %v4292_v7 = vmul.f32 0.03125, %v4288_v50  ;;  %v11734_v50 = vld [vmem:[%s12519_s5 + $0xa8] sm:$0xff] }
0x20e6   :  { %v4294_v8 = vadd.f32 1e-12, %v4292_v7  ;;  %v11741_v7 = vld [vmem:[%s12519_s5 + $0xa0] sm:$0xff] }
0x20e8   :  { %10427 = vrsqrt.f32 %v4294_v8 }
0x20f5   :  { %v10428_v51 = vpop.eup %10427 }
0x20f6   :  { %v4298_v17 = vmul.f32 %v10428_v51, %v4282_v61 }
0x20f8   :  { %v4306_v56 = vmul.f32 %v11569_v52, %v4298_v17  ;;  %v11754_v17 = vld [vmem:[%s12524_s3 + $0x5] ss:$0 sm:$0xff] }
0x20fa   :  { %v11578_v46 = vadd.f32 %v11574_v24, %v4306_v56 }
0x20fc   :  { %12563 = vst [vmem:[#allocation4_spill] sm:$0xff] %v11578_v46  ;;  %9954 = vmatmul.mubr.msk.f32.vlgmr.msra.gmra.mxu0 %vm81_vm0, %v11578_v46  ;;  %9976 = vmatmul.mubr.msk.f32.vlgmr.msra.gmra.mxu1 %vm81_vm0, %v11578_v46 }
0x20fd   :  { %9957 = vmatpush3.msra.mxu0 %v11583_v23  ;;  %9964 = vmatprep.mubr.msk.f32.mxu0 %vm10480_vm1, %v12544_v63 }
0x20fe   :  { %9958 = vmatprep.subr.mxu0 %v12544_v63  ;;  %9985 = vmatprep.mubr.msk.f32.mxu1 %vm10480_vm1, %v12544_v63 }
0x20ff   :  { %9959 = vmatpush3.msra.mxu0 %v11592_v60 }
0x2100   :  { %9960 = vmatprep.subr.mxu0 %v12544_v63 }
0x2101   :  { %9961 = vmatpush3.msra.mxu0 %v11601_v12 }
0x2102   :  { %9962 = vmatprep.subr.mxu0 %v12544_v63 }
0x2103   :  { %9963 = vmatpush3.msra.mxu0 %v11610_v0 }
0x2104   :  { %9965 = vmatmul.mubr.msk.f32.vlgmr.msra.gmra.mxu0 %vm81_vm0, %v11578_v46  ;;  %9978 = vmatprep.subr.mxu0 %v12544_v63 }
0x2105   :  { %9980 = vmatprep.mubr.msk.f32.mxu0 %vm10480_vm1, %v12544_v63 }
0x21bc   :  { %v4399_v14 = vpop.f32.mrf.mxu0  ;;  %v4565_v20 = vpop.f32.mrf.mxu1 }
0x21bd   :  { %v4566_v11 = vadd.f32 %v11623_v9, %v4565_v20  ;;  %v4400_v40 = vadd.f32 %v11635_v37, %v4399_v14  ;;  %v11759_v14 = vld [vmem:[%s12525_s26 + $0x5] ss:$0 sm:$0xff] }
0x21be   :  { %v9955_v62 = vpop.f32.mrf.mxu0  ;;  %v9977_v4 = vpop.f32.mrf.mxu1 }
0x21bf   :  { %9984 = vmatpush3.msra.mxu1 %v4566_v11  ;;  %v11765_v11 = vld [vmem:[%s12526_s0 + $0x5] ss:$0 sm:$0xff] }
0x21c0   :  { %9999 = vmatprep.subr.mxu1 %v12544_v63 }
0x21c4   :  { %v4482_v6 = vpop.f32.mrf.mxu0 }
0x21c5   :  { %v4483_v38 = vadd.f32 %v11630_v5, %v4482_v6 }
0x21c6   :  { %v9966_v39 = vpop.f32.mrf.mxu0 }
0x21c7   :  { %9979 = vmatpush3.xpose.msk.msra.mxu0 %vm372_vm2, %v4483_v38 }
0x21c8   :  { %9988 = vmatprep.subr.mxu0 %v12544_v63 }
0x21ca   :  { %9981 = vmatmul.mubr.msk.f32.vlgmr.msra.gmra.mxu0 %vm372_vm2, %v4400_v40 }
0x21cb   :  { %9989 = vmatpush3.msra.mxu0 %v11644_v41  ;;  %9996 = vmatprep.mubr.msk.f32.mxu0 %vm10480_vm1, %v12544_v63 }
0x21cc   :  { %9990 = vmatprep.subr.mxu0 %v12544_v63 }
0x21cd   :  { %9991 = vmatpush3.msra.mxu0 %v11650_v42 }
0x21ce   :  { %9992 = vmatprep.subr.mxu0 %v12544_v63 }
0x21cf   :  { %9993 = vmatpush3.msra.mxu0 %v11659_v43 }
0x21d0   :  { %9994 = vmatprep.subr.mxu0 %v12544_v63 }
0x21d1   :  { %9995 = vmatpush3.msra.mxu0 %v11666_v44 }
0x21d2   :  { %9997 = vmatmul.mubr.msk.f32.vlgmr.msra.gmra.mxu0 %vm81_vm0, %v11578_v46  ;;  %10010 = vmatprep.subr.mxu0 %v12544_v63 }
0x21d3   :  { %10011 = vmatpush3.msra.mxu0 %v11673_v54  ;;  %10018 = vmatprep.mubr.msk.f32.mxu0 %vm10480_vm1, %v12544_v63 }
0x21d4   :  { %10012 = vmatprep.subr.mxu0 %v12544_v63 }
0x21d5   :  { %10013 = vmatpush3.msra.mxu0 %v11682_v21 }
0x21d6   :  { %10014 = vmatprep.subr.mxu0 %v12544_v63 }
0x21d7   :  { %10015 = vmatpush3.msra.mxu0 %v11691_v22 }
0x21d8   :  { %10016 = vmatprep.subr.mxu0 %v12544_v63 }
0x21d9   :  { %10017 = vmatpush3.msra.mxu0 %v11698_v3 }
0x21da   :  { %10019 = vmatmul.mubr.msk.f32.vlgmr.msra.gmra.mxu0 %vm81_vm0, %v11578_v46  ;;  %10031 = vmatprep.subr.mxu0 %v12544_v63 }
0x21db   :  { %10033 = vmatprep.mubr.msk.f32.mxu0 %vm10480_vm1, %v12544_v63 }
0x228a   :  { %v4641_v25 = vpop.f32.mrf.mxu0 }
0x228b   :  { %v4645_v35 = vmul.f32 0.35355338, %v4641_v25 }
0x228c   :  { %v9982_v13 = vpop.f32.mrf.mxu0 }
0x228d   :  { %v4652_v27 = vadd.f32 %v11711_v26, %v4645_v35 }
0x228f   :  { %v4653_v28 = vsel %vm372_vm2, %v4652_v27, -inf }
0x2290   :  { %4654 = vmax.xlane.f32.xlu0 %v4653_v28 }
0x2292   :  { %v4818_v15 = vpop.f32.mrf.mxu0 }
0x2293   :  { %v4819_v4 = vadd.f32 %v11759_v14, %v4818_v15 }
0x2294   :  { %v9998_v29 = vpop.f32.mrf.mxu0 }
0x229a   :  { %v4984_v30 = vpop.f32.mrf.mxu0 }
0x229b   :  { %v4985_v6 = vadd.f32 %v11765_v11, %v4984_v30  ;;  %v11781_v30 = vld [vmem:[%s12446_s10 + $0x28] sm:$0xff] }
0x229c   :  { %v10020_v31 = vpop.f32.mrf.mxu0  ;;  %10032 = vmatpush3.msra.mxu0 %v11781_v30 }
0x229d   :  { %10041 = vmatprep.subr.mxu0 %v12544_v63 }
0x2319   :  { %v4655_v32 = vpop.xlane.xlu0 %4654 }
0x231a   :  { %v4656_v34 = vsub.f32 %v4652_v27, %v4655_v32 }
0x231c   :  { %v4657_v36 = vmul.f32 1.442695, %v4656_v34 }
0x231e   :  { %10429 = vpow2.f32 %v4657_v36  ;;  %v11788_v36 = vld [vmem:[%s12446_s10 + $0x20] sm:$0xff] }
0x232b   :  { %v10430_v45 = vpop.eup %10429 }
0x232c   :  { %v4659_v53 = vsel %vm372_vm2, %v10430_v45, 0.0 }
0x232d   :  { %4660 = vadd.xlane.f32.xlu1 %v4659_v53  ;;  %v11804_v53 = vld [vmem:[%s12519_s5 + $0xd0] sm:$0xff] }
0x23b6   :  { %v4661_v58 = vpop.xlane.xlu1 %4660 }
0x23b7   :  { %10431 = vrcp.f32 %v4661_v58  ;;  %v11813_v58 = vld [vmem:[%s12519_s5 + $0xc8] sm:$0xff] }
0x23c4   :  { %v10432_v59 = vpop.eup %10431 }
0x23c5   :  { %v4663_v61 = vmul.f32 %v10432_v59, %v10430_v45  ;;  %v11798_v45 = vld [vmem:[%s12519_s5 + $0xd8] sm:$0xff]  ;;  %v11820_v59 = vld [vmem:[%s12519_s5 + $0xc0] sm:$0xff] }
0x23c7   :  { %9986 = vmatmul.mubr.msk.f32.vlgmr.msra.gmra.mxu1 %vm372_vm2, %v4663_v61  ;;  %v11833_v61 = vld [vmem:[%s12518_s6 + $0xd8] sm:$0xff] }
0x23c8   :  { %10000 = vmatpush3.msra.mxu1 %v11719_v19  ;;  %10007 = vmatprep.mubr.msk.f32.mxu1 %vm10480_vm1, %v12544_v63 }
0x23c9   :  { %10001 = vmatprep.subr.mxu1 %v12544_v63 }
0x23ca   :  { %10002 = vmatpush3.msra.mxu1 %v11725_v2 }
0x23cb   :  { %10003 = vmatprep.subr.mxu1 %v12544_v63 }
0x23cc   :  { %10004 = vmatpush3.msra.mxu1 %v11734_v50 }
0x23cd   :  { %10005 = vmatprep.subr.mxu1 %v12544_v63 }
0x23ce   :  { %10006 = vmatpush3.msra.mxu1 %v11741_v7 }
0x23cf   :  { %10008 = vmatmul.mubr.msk.f32.vlgmr.msra.gmra.mxu1 %vm81_vm0, %v11578_v46  ;;  %10021 = vmatprep.subr.mxu1 %v12544_v63 }
0x23d0   :  { %10023 = vmatprep.mubr.msk.f32.mxu1 %vm10480_vm1, %v12544_v63 }
0x2487   :  { %v4733_v8 = vpop.f32.mrf.mxu1 }
0x2489   :  { %v9987_v51 = vpop.f32.mrf.mxu1 }
0x248a   :  { %v11839_v51 = vld [vmem:[%s12518_s6 + $0xd0] sm:$0xff] }
0x248f   :  { %v4901_v56 = vpop.f32.mrf.mxu1 }
0x2490   :  { %v4902_v20 = vadd.f32 %v11754_v17, %v4901_v56 }
0x2491   :  { %v10009_v62 = vpop.f32.mrf.mxu1 }
0x2492   :  { %10022 = vmatpush3.xpose.msk.msra.mxu1 %vm372_vm2, %v4902_v20  ;;  %v11848_v20 = vld [vmem:[%s12518_s6 + $0xc8] sm:$0xff] }
0x2493   :  { %10026 = vmatprep.subr.mxu1 %v12544_v63 }
0x2495   :  { %10024 = vmatmul.mubr.msk.f32.vlgmr.msra.gmra.mxu1 %vm372_vm2, %v4819_v4  ;;  %v11857_v4 = vld [vmem:[%s12518_s6 + $0xc0] sm:$0xff] }
0x2496   :  { %10027 = vmatpush3.msra.mxu1 %v4985_v6  ;;  %10028 = vmatprep.mubr.msk.f32.mxu1 %vm10480_vm1, %v12544_v63 }
0x2497   :  { %10036 = vmatprep.subr.mxu1 %v12544_v63 }
0x2555   :  { %v5060_v38 = vpop.f32.mrf.mxu1 }
0x2556   :  { %v5064_v39 = vmul.f32 0.35355338, %v5060_v38  ;;  %v11864_v38 = vld [vmem:[%s12523_s28 + $0xd8] sm:$0xff] }
0x2557   :  { %v10025_v40 = vpop.f32.mrf.mxu1 }
0x2558   :  { %v5065_v25 = vadd.f32 %v11711_v26, %v5064_v39  ;;  %v11873_v39 = vld [vmem:[%s12523_s28 + $0xd0] sm:$0xff]  ;;  %v11879_v40 = vld [vmem:[%s12524_s3 + $0x6] ss:$0 sm:$0xff] }
0x2559   :  { %12564 = vst [vmem:[#allocation5_spill] sm:$0xff] %v11873_v39  ;;  %12565 = vst [vmem:[#allocation6_spill] sm:$0xff] %v11879_v40 }
0x255a   :  { %v5066_v35 = vsel %vm372_vm2, %v5065_v25, -inf }
0x255b   :  { %5067 = vmax.xlane.f32.xlu0 %v5066_v35 }
0x25e4   :  { %v5068_v13 = vpop.xlane.xlu0 %5067 }
0x25e5   :  { %v5069_v27 = vsub.f32 %v5065_v25, %v5068_v13  ;;  %v11887_v25 = vld [vmem:[%s12523_s28 + $0xc8] sm:$0xff] }
0x25e6   :  { %12566 = vst [vmem:[#allocation7_spill] sm:$0xff] %v11887_v25 }
0x25e7   :  { %v5070_v28 = vmul.f32 1.442695, %v5069_v27  ;;  %v11895_v27 = vld [vmem:[%s12523_s28 + $0xc0] sm:$0xff] }
0x25e8   :  { %12567 = vst [vmem:[#allocation8_spill] sm:$0xff] %v11895_v27 }
0x25e9   :  { %10433 = vpow2.f32 %v5070_v28 }
0x25f6   :  { %v10434_v15 = vpop.eup %10433 }
0x25f7   :  { %v5072_v29 = vsel %vm372_vm2, %v10434_v15, 0.0 }
0x25f8   :  { %5073 = vadd.xlane.f32.xlu1 %v5072_v29 }
0x2681   :  { %v5074_v31 = vpop.xlane.xlu1 %5073 }
0x2682   :  { %10435 = vrcp.f32 %v5074_v31  ;;  %v11912_v31 = vld [vmem:[%s12525_s26 + $0x6] ss:$0 sm:$0xff] }
0x2683   :  { %12568 = vst [vmem:[#allocation9_spill] sm:$0xff] %v11912_v31 }
0x268f   :  { %v10436_v32 = vpop.eup %10435 }
0x2690   :  { %v5076_v34 = vmul.f32 %v10436_v32, %v10434_v15 }
0x2692   :  { %10029 = vmatmul.mubr.msk.f32.vlgmr.msra.gmra.mxu1 %vm372_vm2, %v5076_v34 }
0x2693   :  { %10037 = vmatpush3.msra.mxu1 %v11788_v36  ;;  %10038 = vmatprep.mubr.msk.f32.mxu1 %vm10480_vm1, %v12544_v63 }
0x2694   :  { %10052 = vmatprep.subr.mxu1 %v12544_v63 }
0x2696   :  { %10039 = vmatmul.mubr.msk.f32.vlgmr.msra.gmra.mxu1 %vm372_vm2, %v4733_v8 }
0x2697   :  { %10053 = vmatpush3.msra.mxu1 %v11798_v45  ;;  %10060 = vmatprep.mubr.msk.f32.mxu1 %vm10480_vm1, %v12544_v63 }
0x2698   :  { %10054 = vmatprep.subr.mxu1 %v12544_v63 }
0x2699   :  { %10055 = vmatpush3.msra.mxu1 %v11804_v53 }
0x269a   :  { %10056 = vmatprep.subr.mxu1 %v12544_v63 }
0x269b   :  { %10057 = vmatpush3.msra.mxu1 %v11813_v58 }
0x269c   :  { %10058 = vmatprep.subr.mxu1 %v12544_v63 }
0x269d   :  { %10059 = vmatpush3.msra.mxu1 %v11820_v59 }
0x269e   :  { %10061 = vmatmul.mubr.msk.f32.vlgmr.msra.gmra.mxu1 %vm81_vm0, %v11578_v46  ;;  %10074 = vmatprep.subr.mxu1 %v12544_v63 }
0x269f   :  { %10076 = vmatprep.mubr.msk.f32.mxu1 %vm10480_vm1, %v12544_v63 }
0x2752   :  { %v5146_v8 = vpop.f32.mrf.mxu1 }
0x2753   :  { %10034 = vmatmul.mubr.msk.f32.vlgmr.msra.gmra.mxu0 %vm372_vm2, %v5146_v8 }
0x2754   :  { %10042 = vmatpush3.msra.mxu0 %v11833_v61  ;;  %v10030_v56 = vpop.f32.mrf.mxu1  ;;  %10049 = vmatprep.mubr.msk.f32.mxu0 %vm10480_vm1, %v12544_v63 }
0x2755   :  { %10043 = vmatprep.subr.mxu0 %v12544_v63  ;;  %v11921_v56 = vld [vmem:[%s12526_s0 + $0x6] ss:$0 sm:$0xff] }
0x2756   :  { %10044 = vmatpush3.msra.mxu0 %v11839_v51  ;;  %v11851_v62 = vpop.f32.mrf.mxu1 }
0x2757   :  { %10045 = vmatprep.subr.mxu0 %v12544_v63 }
0x2758   :  { %10046 = vmatpush3.msra.mxu0 %v11848_v20  ;;  %v10040_v6 = vpop.f32.mrf.mxu1 }
0x2759   :  { %10047 = vmatprep.subr.mxu0 %v12544_v63 }
0x275a   :  { %10048 = vmatpush3.msra.mxu0 %v11857_v4 }
0x275b   :  { %10050 = vmatmul.mubr.msk.f32.vlgmr.msra.gmra.mxu0 %vm81_vm0, %v11578_v46  ;;  %10063 = vmatprep.subr.mxu0 %v12544_v63 }
0x275c   :  { %10064 = vmatpush3.msra.mxu0 %v11864_v38  ;;  %10071 = vmatprep.mubr.msk.f32.mxu0 %vm10480_vm1, %v12544_v63 }
0x275d   :  { %10065 = vmatprep.subr.mxu0 %v12544_v63 }
0x275e   :  { %v5460_v35 = vpop.f32.mrf.mxu1  ;;  %10066 = vmatpush3.msra.mxu0 %v11873_v39 }
0x275f   :  { %v5461_v13 = vadd.f32 %v11879_v40, %v5460_v35  ;;  %10067 = vmatprep.subr.mxu0 %v12544_v63 }
0x2760   :  { %v10062_v28 = vpop.f32.mrf.mxu1  ;;  %10068 = vmatpush3.msra.mxu0 %v11887_v25 }
0x2761   :  { %10069 = vmatprep.subr.mxu0 %v12544_v63  ;;  %10075 = vmatpush3.xpose.msk.msra.mxu1 %vm372_vm2, %v5461_v13 }
0x2762   :  { %10070 = vmatpush3.msra.mxu0 %v11895_v27  ;;  %10079 = vmatprep.subr.mxu1 %v12544_v63 }
0x2763   :  { %10072 = vmatmul.mubr.msk.f32.vlgmr.msra.gmra.mxu0 %vm81_vm0, %v11578_v46  ;;  %10084 = vmatprep.subr.mxu0 %v12544_v63 }
0x2764   :  { %10086 = vmatprep.mubr.msk.f32.mxu0 %vm10480_vm1, %v12544_v63 }
0x2813   :  { %v11907_v15 = vpop.f32.mrf.mxu0 }
0x2815   :  { %v10035_v29 = vpop.f32.mrf.mxu0 }
0x281b   :  { %v5377_v32 = vpop.f32.mrf.mxu0 }
0x281c   :  { %v5378_v34 = vadd.f32 %v11912_v31, %v5377_v32 }
0x281d   :  { %v10051_v8 = vpop.f32.mrf.mxu0 }
0x281e   :  { %10077 = vmatmul.mubr.msk.f32.vlgmr.msra.gmra.mxu1 %vm372_vm2, %v5378_v34 }
0x281f   :  { %10081 = vmatprep.mubr.msk.f32.mxu1 %vm10480_vm1, %v12544_v63 }
0x2823   :  { %v5543_v6 = vpop.f32.mrf.mxu0 }
0x2824   :  { %v5544_v35 = vadd.f32 %v11921_v56, %v5543_v6  ;;  %v11931_v6 = vld [vmem:[%s12446_s10 + $0x30] sm:$0xff] }
0x2825   :  { %v10073_v13 = vpop.f32.mrf.mxu0  ;;  %10085 = vmatpush3.msra.mxu0 %v11931_v6 }
0x2826   :  { %10080 = vmatpush3.msra.mxu1 %v5544_v35  ;;  %10100 = vmatprep.subr.mxu0 %v12544_v63 }
0x2827   :  { %10089 = vmatprep.subr.mxu1 %v12544_v63 }
0x28de   :  { %v5619_v28 = vpop.f32.mrf.mxu1 }
0x28df   :  { %v5623_v29 = vmul.f32 0.35355338, %v5619_v28 }
0x28e0   :  { %v10078_v32 = vpop.f32.mrf.mxu1 }
0x28e1   :  { %v5624_v34 = vadd.f32 %v11711_v26, %v5623_v29  ;;  %v11976_v29 = vld [vmem:[%s12523_s28 + $0xf0] sm:$0xff]  ;;  %v11985_v32 = vld [vmem:[%s12523_s28 + $0xe8] sm:$0xff] }
0x28e2   :  { %12573 = vst [vmem:[#allocation14_spill] sm:$0xff] %v11976_v29  ;;  %12574 = vst [vmem:[#allocation15_spill] sm:$0xff] %v11985_v32 }
0x28e3   :  { %v5625_v8 = vsel %vm372_vm2, %v5624_v34, -inf }
0x28e4   :  { %5626 = vmax.xlane.f32.xlu0 %v5625_v8  ;;  %v12005_v8 = vld [vmem:[%s12519_s5 + $0xf8] sm:$0xff] }
0x28e5   :  { %12576 = vst [vmem:[#allocation17_spill] sm:$0xff] %v12005_v8 }
0x296d   :  { %v5627_v31 = vpop.xlane.xlu0 %5626 }
0x296e   :  { %v5628_v27 = vsub.f32 %v5624_v34, %v5627_v31  ;;  %v11967_v31 = vld [vmem:[%s12523_s28 + $0xf8] sm:$0xff]  ;;  %v11992_v34 = vld [vmem:[%s12523_s28 + $0xe0] sm:$0xff] }
0x296f   :  { %12572 = vst [vmem:[#allocation13_spill] sm:$0xff] %v11967_v31  ;;  %12575 = vst [vmem:[#allocation16_spill] sm:$0xff] %v11992_v34 }
0x2970   :  { %v5629_v25 = vmul.f32 1.442695, %v5628_v27  ;;  %v11960_v27 = vld [vmem:[%s12518_s6 + $0xe0] sm:$0xff] }
0x2971   :  { %12571 = vst [vmem:[#allocation12_spill] sm:$0xff] %v11960_v27 }
0x2972   :  { %10437 = vpow2.f32 %v5629_v25  ;;  %v11938_v25 = vld [vmem:[%s12518_s6 + $0xf8] sm:$0xff] }
0x297f   :  { %v10438_v40 = vpop.eup %10437 }
0x2980   :  { %v5631_v39 = vsel %vm372_vm2, %v10438_v40, 0.0 }
0x2981   :  { %5632 = vadd.xlane.f32.xlu1 %v5631_v39  ;;  %v11944_v39 = vld [vmem:[%s12518_s6 + $0xf0] sm:$0xff] }
0x2982   :  { %12569 = vst [vmem:[#allocation10_spill] sm:$0xff] %v11944_v39 }
0x2a0a   :  { %v5633_v35 = vpop.xlane.xlu1 %5632 }
0x2a0b   :  { %10439 = vrcp.f32 %v5633_v35 }
0x2a18   :  { %v10440_v13 = vpop.eup %10439 }
0x2a19   :  { %v5635_v28 = vmul.f32 %v10440_v13, %v10438_v40  ;;  %v11953_v40 = vld [vmem:[%s12518_s6 + $0xe8] sm:$0xff]  ;;  %v12011_v13 = vld [vmem:[%s12519_s5 + $0xf0] sm:$0xff] }
0x2a1a   :  { %12570 = vst [vmem:[#allocation11_spill] sm:$0xff] %v11953_v40  ;;  %12577 = vst [vmem:[#allocation18_spill] sm:$0xff] %v12011_v13 }
0x2a1b   :  { %10082 = vmatmul.mubr.msk.f32.vlgmr.msra.gmra.mxu1 %vm372_vm2, %v5635_v28 }
0x2a1c   :  { %10090 = vmatpush3.msra.mxu1 %v11938_v25  ;;  %10097 = vmatprep.mubr.msk.f32.mxu1 %vm10480_vm1, %v12544_v63 }
0x2a1d   :  { %10091 = vmatprep.subr.mxu1 %v12544_v63 }
0x2a1e   :  { %10092 = vmatpush3.msra.mxu1 %v11944_v39 }
0x2a1f   :  { %10093 = vmatprep.subr.mxu1 %v12544_v63 }
0x2a20   :  { %10094 = vmatpush3.msra.mxu1 %v11953_v40 }
0x2a21   :  { %10095 = vmatprep.subr.mxu1 %v12544_v63 }
0x2a22   :  { %10096 = vmatpush3.msra.mxu1 %v11960_v27 }
0x2a23   :  { %10098 = vmatmul.mubr.msk.f32.vlgmr.msra.gmra.mxu1 %vm81_vm0, %v11578_v46  ;;  %10111 = vmatprep.subr.mxu1 %v12544_v63 }
0x2a24   :  { %10112 = vmatpush3.msra.mxu1 %v11967_v31  ;;  %10119 = vmatprep.mubr.msk.f32.mxu1 %vm10480_vm1, %v12544_v63 }
0x2a25   :  { %10113 = vmatprep.subr.mxu1 %v12544_v63 }
0x2a26   :  { %10114 = vmatpush3.msra.mxu1 %v11976_v29  ;;  %v5295_v29 = vadd.f32 %v11851_v62, %v11907_v15  ;;  %v12055_v62 = vld [vmem:[%s12526_s0 + $0x7] ss:$0 sm:$0xff] }
0x2a27   :  { %10115 = vmatprep.subr.mxu1 %v12544_v63  ;;  %12582 = vst [vmem:[#allocation22_spill] sm:$0xff] %v12055_v62 }
0x2a28   :  { %10116 = vmatpush3.msra.mxu1 %v11985_v32 }
0x2a29   :  { %10117 = vmatprep.subr.mxu1 %v12544_v63 }
0x2a2a   :  { %10118 = vmatpush3.msra.mxu1 %v11992_v34  ;;  %v12020_v34 = vld [vmem:[%s12519_s5 + $0xe8] sm:$0xff] }
0x2a2b   :  { %10120 = vmatmul.mubr.msk.f32.vlgmr.msra.gmra.mxu1 %vm81_vm0, %v11578_v46  ;;  %10132 = vmatprep.subr.mxu1 %v12544_v63  ;;  %12578 = vst [vmem:[#allocation19_spill] sm:$0xff] %v12020_v34 }
0x2a2c   :  { %10134 = vmatprep.mubr.msk.f32.mxu1 %vm10480_vm1, %v12544_v63 }
0x2adb   :  { %v5705_v35 = vpop.f32.mrf.mxu1 }
0x2adc   :  { %10087 = vmatmul.mubr.msk.f32.vlgmr.msra.gmra.mxu0 %vm372_vm2, %v5705_v35  ;;  %v12027_v35 = vld [vmem:[%s12519_s5 + $0xe0] sm:$0xff] }
0x2add   :  { %10101 = vmatpush3.msra.mxu0 %v12005_v8  ;;  %v10083_v28 = vpop.f32.mrf.mxu1  ;;  %10108 = vmatprep.mubr.msk.f32.mxu0 %vm10480_vm1, %v12544_v63  ;;  %12579 = vst [vmem:[#allocation20_spill] sm:$0xff] %v12027_v35 }
0x2ade   :  { %10102 = vmatprep.subr.mxu0 %v12544_v63 }
0x2adf   :  { %10103 = vmatpush3.msra.mxu0 %v12011_v13 }
0x2ae0   :  { %10104 = vmatprep.subr.mxu0 %v12544_v63 }
0x2ae1   :  { %10105 = vmatpush3.msra.mxu0 %v12020_v34 }
0x2ae2   :  { %10106 = vmatprep.subr.mxu0 %v12544_v63 }
0x2ae3   :  { %v5864_v28 = vpop.f32.mrf.mxu1  ;;  %10107 = vmatpush3.msra.mxu0 %v12027_v35  ;;  %v12044_v35 = vld [vmem:[%s12524_s3 + $0x7] ss:$0 sm:$0xff] }
0x2ae4   :  { %10109 = vmatmul.mubr.msk.f32.vlgmr.msra.gmra.mxu0 %vm81_vm0, %v11578_v46  ;;  %10122 = vmatprep.subr.mxu0 %v12544_v63  ;;  %12580 = vst [vmem:[#allocation3_spill] sm:$0xff] %v12044_v35 }
0x2ae5   :  { %v10099_v13 = vpop.f32.mrf.mxu1  ;;  %10124 = vmatprep.mubr.msk.f32.mxu0 %vm10480_vm1, %v12544_v63 }
0x2ae6   :  { %v12049_v13 = vld [vmem:[%s12525_s26 + $0x7] ss:$0 sm:$0xff] }
0x2ae7   :  { %12581 = vst [vmem:[#allocation21_spill] sm:$0xff] %v12049_v13 }
0x2aeb   :  { %v6030_v8 = vpop.f32.mrf.mxu1 }
0x2aed   :  { %v10121_v32 = vpop.f32.mrf.mxu1 }
0x2b9c   :  { %v5780_v34 = vpop.f32.mrf.mxu0 }
0x2b9d   :  { %v12039_v31 = vadd.f32 %v5780_v34, %v5295_v29  ;;  %v6031_v29 = vadd.f32 %v12055_v62, %v6030_v8 }
0x2b9e   :  { %v10088_v27 = vpop.f32.mrf.mxu0 }
0x2b9f   :  { %v5865_v27 = vadd.f32 %v12049_v13, %v5864_v28  ;;  %v4271_v28 = vadd.f32 %v11505_v33, %v11464_v10  ;;  %v12075_v10 = vld [vmem:[%s12446_s10 + $0x38] sm:$0xff] }
0x2ba0   :  { %10133 = vmatpush3.msra.mxu1 %v12075_v10 }
0x2ba1   :  { %v4277_v8 = vsel %vm81_vm0, %v4271_v28, 0.0  ;;  %10148 = vmatprep.subr.mxu1 %v12544_v63 }
0x2ba4   :  { %v5947_v46 = vpop.f32.mrf.mxu0 }
0x2ba5   :  { %v5948_v32 = vadd.f32 %v12044_v35, %v5947_v46 }
0x2ba6   :  { %v10110_v15 = vpop.f32.mrf.mxu0 }
0x2ba7   :  { %10123 = vmatpush3.xpose.msk.msra.mxu0 %vm372_vm2, %v5948_v32 }
0x2ba8   :  { %10127 = vmatprep.subr.mxu0 %v12544_v63 }
0x2baa   :  { %10125 = vmatmul.mubr.msk.f32.vlgmr.msra.gmra.mxu0 %vm372_vm2, %v5865_v27 }
0x2bab   :  { %10128 = vmatpush3.msra.mxu0 %v6031_v29  ;;  %10129 = vmatprep.mubr.msk.f32.mxu0 %vm10480_vm1, %v12544_v63 }
0x2bac   :  { %10137 = vmatprep.subr.mxu0 %v12544_v63 }
0x2c6a   :  { %v6106_v46 = vpop.f32.mrf.mxu0 }
0x2c6b   :  { %v6110_v34 = vmul.f32 0.35355338, %v6106_v46 }
0x2c6c   :  { %v10126_v35 = vpop.f32.mrf.mxu0 }
0x2c6d   :  { %v6111_v15 = vadd.f32 %v11711_v26, %v6110_v34 }
0x2c6f   :  { %v6112_v32 = vsel %vm372_vm2, %v6111_v15, -inf }
0x2c70   :  { %6113 = vmax.xlane.f32.xlu0 %v6112_v32 }
0x2c74   :  { %4278 = vadd.xlane.f32.xlu0 %v4277_v8 }
0x2cf9   :  { %v6114_v27 = vpop.xlane.xlu0 %6113 }
0x2cfa   :  { %v6115_v29 = vsub.f32 %v6111_v15, %v6114_v27 }
0x2cfc   :  { %v6116_v62 = vmul.f32 1.442695, %v6115_v29 }
0x2cfd   :  { %v4279_v13 = vpop.xlane.xlu0 %4278 }
0x2cfe   :  { %10441 = vpow2.f32 %v6116_v62  ;;  %v4281_v40 = vmul.f32 0.03125, %v4279_v13 }
0x2d00   :  { %v4283_v39 = vsub.f32 %v4271_v28, %v4281_v40 }
0x2d02   :  { %v4285_v26 = vmul.f32 %v4283_v39, %v4283_v39 }
0x2d04   :  { %v4289_v34 = vsel %vm81_vm0, %v4285_v26, 0.0 }
0x2d0b   :  { %v10442_v46 = vpop.eup %10441 }
0x2d0c   :  { %v6118_v35 = vsel %vm372_vm2, %v10442_v46, 0.0 }
0x2d0d   :  { %6119 = vadd.xlane.f32.xlu1 %v6118_v35 }
0x2d11   :  { %4290 = vadd.xlane.f32.xlu1 %v4289_v34 }
0x2d96   :  { %v6120_v33 = vpop.xlane.xlu1 %6119 }
0x2d97   :  { %10443 = vrcp.f32 %v6120_v33 }
0x2d9a   :  { %v4291_v40 = vpop.xlane.xlu1 %4290 }
0x2d9b   :  { %v4293_v13 = vmul.f32 0.03125, %v4291_v40 }
0x2d9d   :  { %v4295_v62 = vadd.f32 1e-12, %v4293_v13 }
0x2d9f   :  { %10445 = vrsqrt.f32 %v4295_v62 }
0x2da4   :  { %v10444_v15 = vpop.eup %10443 }
0x2da5   :  { %v6122_v32 = vmul.f32 %v10444_v15, %v10442_v46 }
0x2da7   :  { %10130 = vmatmul.mubr.msk.f32.vlgmr.msra.gmra.mxu0 %vm372_vm2, %v6122_v32 }
0x2da8   :  { %10138 = vmatpush3.msra.mxu0 %v11513_v18  ;;  %10145 = vmatprep.mubr.msk.f32.mxu0 %vm10480_vm1, %v12544_v63 }
0x2da9   :  { %10139 = vmatprep.subr.mxu0 %v12544_v63 }
0x2daa   :  { %10140 = vmatpush3.msra.mxu0 %v11526_v55 }
0x2dab   :  { %10141 = vmatprep.subr.mxu0 %v12544_v63 }
0x2dac   :  { %v10446_v28 = vpop.eup %10445  ;;  %10142 = vmatpush3.msra.mxu0 %v11540_v49 }
0x2dad   :  { %v4299_v8 = vmul.f32 %v10446_v28, %v4283_v39  ;;  %10143 = vmatprep.subr.mxu0 %v12544_v63 }
0x2dae   :  { %10144 = vmatpush3.msra.mxu0 %v11554_v57 }
0x2daf   :  { %v4307_v27 = vmul.f32 %v11569_v52, %v4299_v8  ;;  %10159 = vmatprep.subr.mxu0 %v12544_v63 }
0x2db1   :  { %v12092_v18 = vadd.f32 %v11574_v24, %v4307_v27 }
0x2db3   :  { %10146 = vmatmul.mubr.msk.f32.vlgmr.msra.gmra.mxu0 %vm81_vm0, %v12092_v18 }
0x2db4   :  { %10160 = vmatpush3.msra.mxu0 %v11519_v48  ;;  %10167 = vmatprep.mubr.msk.f32.mxu0 %vm10480_vm1, %v12544_v63 }
0x2db5   :  { %10161 = vmatprep.subr.mxu0 %v12544_v63 }
0x2db6   :  { %10162 = vmatpush3.msra.mxu0 %v11533_v47 }
0x2db7   :  { %10163 = vmatprep.subr.mxu0 %v12544_v63 }
0x2db8   :  { %10164 = vmatpush3.msra.mxu0 %v11547_v16 }
0x2db9   :  { %10165 = vmatprep.subr.mxu0 %v12544_v63 }
0x2dba   :  { %10166 = vmatpush3.msra.mxu0 %v11561_v1 }
0x2dbb   :  { %10168 = vmatmul.mubr.msk.f32.vlgmr.msra.gmra.mxu0 %vm81_vm0, %v12092_v18  ;;  %10180 = vmatprep.subr.mxu0 %v12544_v63 }
0x2dbc   :  { %10181 = vmatpush3.msra.mxu0 %v11644_v41  ;;  %10188 = vmatprep.mubr.msk.f32.mxu0 %vm10480_vm1, %v12544_v63 }
0x2dbd   :  { %10182 = vmatprep.subr.mxu0 %v12544_v63 }
0x2dbe   :  { %10183 = vmatpush3.msra.mxu0 %v11650_v42 }
0x2dbf   :  { %10184 = vmatprep.subr.mxu0 %v12544_v63 }
0x2dc0   :  { %10185 = vmatpush3.msra.mxu0 %v11659_v43 }
0x2dc1   :  { %10186 = vmatprep.subr.mxu0 %v12544_v63 }
0x2dc2   :  { %10187 = vmatpush3.msra.mxu0 %v11666_v44 }
0x2dc3   :  { %10189 = vmatmul.mubr.msk.f32.vlgmr.msra.gmra.mxu0 %vm81_vm0, %v12092_v18  ;;  %10202 = vmatprep.subr.mxu0 %v12544_v63 }
0x2dc4   :  { %10203 = vmatpush3.msra.mxu0 %v11673_v54  ;;  %10210 = vmatprep.mubr.msk.f32.mxu0 %vm10480_vm1, %v12544_v63 }
0x2dc5   :  { %10204 = vmatprep.subr.mxu0 %v12544_v63 }
0x2dc6   :  { %10205 = vmatpush3.msra.mxu0 %v11682_v21 }
0x2dc7   :  { %10206 = vmatprep.subr.mxu0 %v12544_v63 }
0x2dc8   :  { %10207 = vmatpush3.msra.mxu0 %v11691_v22 }
0x2dc9   :  { %10208 = vmatprep.subr.mxu0 %v12544_v63 }
0x2dca   :  { %10209 = vmatpush3.msra.mxu0 %v11698_v3 }
0x2dcb   :  { %10211 = vmatmul.mubr.msk.f32.vlgmr.msra.gmra.mxu0 %vm81_vm0, %v12092_v18  ;;  %10223 = vmatprep.subr.mxu0 %v12544_v63 }
0x2dcc   :  { %10224 = vmatpush3.msra.mxu0 %v11781_v30  ;;  %10225 = vmatprep.mubr.msk.f32.mxu0 %vm10480_vm1, %v12544_v63 }
0x2dcd   :  { %10233 = vmatprep.subr.mxu0 %v12544_v63 }
0x2e67   :  { %v6192_v48 = vpop.f32.mrf.mxu0 }
0x2e68   :  { %10135 = vmatmul.mubr.msk.f32.vlgmr.msra.gmra.mxu1 %vm372_vm2, %v6192_v48 }
0x2e69   :  { %10149 = vmatpush3.msra.mxu1 %v11583_v23  ;;  %v10131_v55 = vpop.f32.mrf.mxu0  ;;  %10156 = vmatprep.mubr.msk.f32.mxu1 %vm10480_vm1, %v12544_v63 }
0x2e6a   :  { %10150 = vmatprep.subr.mxu1 %v12544_v63 }
0x2e6b   :  { %10151 = vmatpush3.msra.mxu1 %v11592_v60 }
0x2e6c   :  { %10152 = vmatprep.subr.mxu1 %v12544_v63 }
0x2e6d   :  { %10153 = vmatpush3.msra.mxu1 %v11601_v12 }
0x2e6e   :  { %10154 = vmatprep.subr.mxu1 %v12544_v63 }
0x2e6f   :  { %10155 = vmatpush3.msra.mxu1 %v11610_v0 }
0x2e70   :  { %10157 = vmatmul.mubr.msk.f32.vlgmr.msra.gmra.mxu1 %vm81_vm0, %v12092_v18  ;;  %10170 = vmatprep.subr.mxu1 %v12544_v63 }
0x2e71   :  { %10172 = vmatprep.mubr.msk.f32.mxu1 %vm10480_vm1, %v12544_v63 }
0x2e73   :  { %v6354_v47 = vpop.f32.mrf.mxu0 }
0x2e74   :  { %v6355_v44 = vadd.f32 %v11635_v37, %v6354_v47 }
0x2e75   :  { %v10147_v49 = vpop.f32.mrf.mxu0 }
0x2e7b   :  { %v6516_v16 = vpop.f32.mrf.mxu0 }
0x2e7c   :  { %v6517_v54 = vadd.f32 %v11623_v9, %v6516_v16  ;;  %v12585_v16 = vld [vmem:[#allocation7_spill] sm:$0xff] }
0x2e7d   :  { %v10169_v57 = vpop.f32.mrf.mxu0 }
0x2e83   :  { %v6766_v1 = vpop.f32.mrf.mxu0 }
0x2e85   :  { %v10190_v52 = vpop.f32.mrf.mxu0 }
0x2e8b   :  { %v6928_v24 = vpop.f32.mrf.mxu0 }
0x2e8d   :  { %v10212_v23 = vpop.f32.mrf.mxu0 }
0x2f28   :  { %v6267_v60 = vpop.f32.mrf.mxu1 }
0x2f29   :  { %v6271_v12 = vadd.f32 %v6267_v60, %v12039_v31 }
0x2f2a   :  { %v10136_v0 = vpop.f32.mrf.mxu1 }
0x2f2b   :  { %6272 = vst.msk [vmem:[#allocation2] sm:$0xff] %vm81_vm0, %v6271_v12 }
0x2f30   :  { %v6435_v41 = vpop.f32.mrf.mxu1 }
0x2f31   :  { %v6436_v42 = vadd.f32 %v11630_v5, %v6435_v41  ;;  %v12165_v5 = vld [vmem:[%s12445_s1 + $0x1] ss:$0 sm:$0xff] }
0x2f32   :  { %v10158_v43 = vpop.f32.mrf.mxu1 }
0x2f33   :  { %10171 = vmatpush3.xpose.msk.msra.mxu1 %vm372_vm2, %v6436_v42 }
0x2f34   :  { %10175 = vmatprep.subr.mxu1 %v12544_v63 }
0x2f36   :  { %10173 = vmatmul.mubr.msk.f32.vlgmr.msra.gmra.mxu1 %vm372_vm2, %v6355_v44 }
0x2f37   :  { %10176 = vmatpush3.msra.mxu1 %v6517_v54  ;;  %10177 = vmatprep.mubr.msk.f32.mxu1 %vm10480_vm1, %v12544_v63 }
0x2f38   :  { %10191 = vmatprep.subr.mxu1 %v12544_v63 }
0x2ff6   :  { %v6592_v21 = vpop.f32.mrf.mxu1 }
0x2ff7   :  { %v6596_v22 = vmul.f32 0.35355338, %v6592_v21 }
0x2ff8   :  { %v10174_v37 = vpop.f32.mrf.mxu1 }
0x2ff9   :  { %v6603_v3 = vadd.f32 %v12165_v5, %v6596_v22 }
0x2ffb   :  { %v6604_v9 = vsel %vm372_vm2, %v6603_v3, -inf }
0x2ffc   :  { %6605 = vmax.xlane.f32.xlu0 %v6604_v9 }
0x3085   :  { %v6606_v30 = vpop.xlane.xlu0 %6605 }
0x3086   :  { %v6607_v39 = vsub.f32 %v6603_v3, %v6606_v30 }
0x3088   :  { %v6608_v31 = vmul.f32 1.442695, %v6607_v39 }
0x308a   :  { %10447 = vpow2.f32 %v6608_v31  ;;  %v12588_v31 = vld [vmem:[#allocation10_spill] sm:$0xff] }
0x3097   :  { %v10448_v29 = vpop.eup %10447 }
0x3098   :  { %v6610_v46 = vsel %vm372_vm2, %v10448_v29, 0.0 }
0x3099   :  { %6611 = vadd.xlane.f32.xlu1 %v6610_v46  ;;  %v12590_v46 = vld [vmem:[#allocation12_spill] sm:$0xff] }
0x3122   :  { %v6612_v35 = vpop.xlane.xlu1 %6611 }
0x3123   :  { %10449 = vrcp.f32 %v6612_v35  ;;  %v12592_v35 = vld [vmem:[#allocation14_spill] sm:$0xff] }
0x3130   :  { %v10450_v26 = vpop.eup %10449 }
0x3131   :  { %v6614_v34 = vmul.f32 %v10450_v26, %v10448_v29  ;;  %v12589_v29 = vld [vmem:[#allocation11_spill] sm:$0xff] }
0x3132   :  { %v12593_v26 = vld [vmem:[#allocation15_spill] sm:$0xff] }
0x3133   :  { %10178 = vmatmul.mubr.msk.f32.vlgmr.msra.gmra.mxu1 %vm372_vm2, %v6614_v34  ;;  %v12594_v34 = vld [vmem:[#allocation16_spill] sm:$0xff] }
0x3134   :  { %10192 = vmatpush3.msra.mxu1 %v11719_v19  ;;  %10199 = vmatprep.mubr.msk.f32.mxu1 %vm10480_vm1, %v12544_v63 }
0x3135   :  { %10193 = vmatprep.subr.mxu1 %v12544_v63 }
0x3136   :  { %10194 = vmatpush3.msra.mxu1 %v11725_v2 }
0x3137   :  { %10195 = vmatprep.subr.mxu1 %v12544_v63 }
0x3138   :  { %10196 = vmatpush3.msra.mxu1 %v11734_v50  ;;  %v6767_v50 = vadd.f32 %v11759_v14, %v6766_v1 }
0x3139   :  { %10197 = vmatprep.subr.mxu1 %v12544_v63 }
0x313a   :  { %10198 = vmatpush3.msra.mxu1 %v11741_v7  ;;  %v6929_v7 = vadd.f32 %v11765_v11, %v6928_v24  ;;  %v12587_v24 = vld [vmem:[#allocation9_spill] sm:$0xff] }
0x313b   :  { %10200 = vmatmul.mubr.msk.f32.vlgmr.msra.gmra.mxu1 %vm81_vm0, %v12092_v18  ;;  %10213 = vmatprep.subr.mxu1 %v12544_v63 }
0x313c   :  { %10215 = vmatprep.mubr.msk.f32.mxu1 %vm10480_vm1, %v12544_v63 }
0x31f3   :  { %v6684_v19 = vpop.f32.mrf.mxu1 }
0x31f5   :  { %v10179_v33 = vpop.f32.mrf.mxu1 }
0x31f6   :  { %v12595_v33 = vld [vmem:[#allocation17_spill] sm:$0xff] }
0x31fb   :  { %v6847_v40 = vpop.f32.mrf.mxu1 }
0x31fc   :  { %v6848_v2 = vadd.f32 %v11754_v17, %v6847_v40 }
0x31fd   :  { %v10201_v13 = vpop.f32.mrf.mxu1 }
0x31fe   :  { %10214 = vmatpush3.xpose.msk.msra.mxu1 %vm372_vm2, %v6848_v2  ;;  %v12596_v2 = vld [vmem:[#allocation18_spill] sm:$0xff]  ;;  %v12597_v13 = vld [vmem:[#allocation19_spill] sm:$0xff] }
0x31ff   :  { %10218 = vmatprep.subr.mxu1 %v12544_v63 }
0x3201   :  { %10216 = vmatmul.mubr.msk.f32.vlgmr.msra.gmra.mxu1 %vm372_vm2, %v6767_v50  ;;  %v12598_v50 = vld [vmem:[#allocation20_spill] sm:$0xff] }
0x3202   :  { %10219 = vmatpush3.msra.mxu1 %v6929_v7  ;;  %10220 = vmatprep.mubr.msk.f32.mxu1 %vm10480_vm1, %v12544_v63 }
0x3203   :  { %10228 = vmatprep.subr.mxu1 %v12544_v63 }
0x32c1   :  { %v7004_v62 = vpop.f32.mrf.mxu1 }
0x32c2   :  { %v7008_v15 = vmul.f32 0.35355338, %v7004_v62 }
0x32c3   :  { %v10217_v17 = vpop.f32.mrf.mxu1 }
0x32c4   :  { %v7009_v32 = vadd.f32 %v12165_v5, %v7008_v15 }
0x32c6   :  { %v7010_v28 = vsel %vm372_vm2, %v7009_v32, -inf }
0x32c7   :  { %7011 = vmax.xlane.f32.xlu0 %v7010_v28 }
0x3350   :  { %v7012_v14 = vpop.xlane.xlu0 %7011 }
0x3351   :  { %v7013_v8 = vsub.f32 %v7009_v32, %v7012_v14 }
0x3353   :  { %v7014_v27 = vmul.f32 1.442695, %v7013_v8 }
0x3355   :  { %10451 = vpow2.f32 %v7014_v27  ;;  %v12599_v27 = vld [vmem:[#allocation3_spill] sm:$0xff] }
0x3362   :  { %v10452_v11 = vpop.eup %10451 }
0x3363   :  { %v7016_v48 = vsel %vm372_vm2, %v10452_v11, 0.0 }
0x3364   :  { %7017 = vadd.xlane.f32.xlu1 %v7016_v48 }
0x33ed   :  { %v7018_v55 = vpop.xlane.xlu1 %7017 }
0x33ee   :  { %10453 = vrcp.f32 %v7018_v55  ;;  %v12600_v55 = vld [vmem:[#allocation21_spill] sm:$0xff] }
0x33fb   :  { %v10454_v47 = vpop.eup %10453 }
0x33fc   :  { %v7020_v49 = vmul.f32 %v10454_v47, %v10452_v11 }
0x33fe   :  { %10221 = vmatmul.mubr.msk.f32.vlgmr.msra.gmra.mxu1 %vm372_vm2, %v7020_v49  ;;  %v12601_v49 = vld [vmem:[#allocation22_spill] sm:$0xff] }
0x33ff   :  { %10229 = vmatpush3.msra.mxu1 %v11788_v36  ;;  %10230 = vmatprep.mubr.msk.f32.mxu1 %vm10480_vm1, %v12544_v63 }
0x3400   :  { %10244 = vmatprep.subr.mxu1 %v12544_v63 }
0x3402   :  { %10231 = vmatmul.mubr.msk.f32.vlgmr.msra.gmra.mxu1 %vm372_vm2, %v6684_v19 }
0x3403   :  { %10245 = vmatpush3.msra.mxu1 %v11798_v45  ;;  %10252 = vmatprep.mubr.msk.f32.mxu1 %vm10480_vm1, %v12544_v63 }
0x3404   :  { %10246 = vmatprep.subr.mxu1 %v12544_v63 }
0x3405   :  { %10247 = vmatpush3.msra.mxu1 %v11804_v53 }
0x3406   :  { %10248 = vmatprep.subr.mxu1 %v12544_v63 }
0x3407   :  { %10249 = vmatpush3.msra.mxu1 %v11813_v58 }
0x3408   :  { %10250 = vmatprep.subr.mxu1 %v12544_v63 }
0x3409   :  { %10251 = vmatpush3.msra.mxu1 %v11820_v59 }
0x340a   :  { %10253 = vmatmul.mubr.msk.f32.vlgmr.msra.gmra.mxu1 %vm81_vm0, %v12092_v18  ;;  %10266 = vmatprep.subr.mxu1 %v12544_v63 }
0x340b   :  { %10268 = vmatprep.mubr.msk.f32.mxu1 %vm10480_vm1, %v12544_v63 }
0x34be   :  { %v7090_v36 = vpop.f32.mrf.mxu1 }
0x34bf   :  { %10226 = vmatmul.mubr.msk.f32.vlgmr.msra.gmra.mxu0 %vm372_vm2, %v7090_v36 }
0x34c0   :  { %10234 = vmatpush3.msra.mxu0 %v11833_v61  ;;  %v10222_v45 = vpop.f32.mrf.mxu1  ;;  %10241 = vmatprep.mubr.msk.f32.mxu0 %vm10480_vm1, %v12544_v63  ;;  %v12583_v61 = vld [vmem:[#allocation5_spill] sm:$0xff] }
0x34c1   :  { %10235 = vmatprep.subr.mxu0 %v12544_v63  ;;  %v8202_v45 = vld [vmem:[#allocation2] sm:$0xff] }
0x34c2   :  { %10236 = vmatpush3.msra.mxu0 %v11839_v51  ;;  %v12223_v53 = vpop.f32.mrf.mxu1  ;;  %v12584_v51 = vld [vmem:[#allocation6_spill] sm:$0xff] }
0x34c3   :  { %10237 = vmatprep.subr.mxu0 %v12544_v63 }
0x34c4   :  { %10238 = vmatpush3.msra.mxu0 %v11848_v20  ;;  %v10232_v58 = vpop.f32.mrf.mxu1 }
0x34c5   :  { %10239 = vmatprep.subr.mxu0 %v12544_v63 }
0x34c6   :  { %10240 = vmatpush3.msra.mxu0 %v11857_v4 }
0x34c7   :  { %10242 = vmatmul.mubr.msk.f32.vlgmr.msra.gmra.mxu0 %vm81_vm0, %v12092_v18  ;;  %10255 = vmatprep.subr.mxu0 %v12544_v63 }
0x34c8   :  { %10256 = vmatpush3.msra.mxu0 %v11864_v38  ;;  %10263 = vmatprep.mubr.msk.f32.mxu0 %vm10480_vm1, %v12544_v63  ;;  %v12586_v38 = vld [vmem:[#allocation8_spill] sm:$0xff] }
0x34c9   :  { %10257 = vmatprep.subr.mxu0 %v12544_v63 }
0x34ca   :  { %v7399_v59 = vpop.f32.mrf.mxu1  ;;  %10258 = vmatpush3.msra.mxu0 %v12583_v61 }
0x34cb   :  { %v7400_v20 = vadd.f32 %v12584_v51, %v7399_v59  ;;  %10259 = vmatprep.subr.mxu0 %v12544_v63 }
0x34cc   :  { %v10254_v4 = vpop.f32.mrf.mxu1  ;;  %10260 = vmatpush3.msra.mxu0 %v12585_v16  ;;  %v12602_v16 = vld [vmem:[#allocation4_spill] sm:$0xff] }
0x34cd   :  { %10261 = vmatprep.subr.mxu0 %v12544_v63  ;;  %10267 = vmatpush3.xpose.msk.msra.mxu1 %vm372_vm2, %v7400_v20 }
0x34ce   :  { %10262 = vmatpush3.msra.mxu0 %v12586_v38  ;;  %10271 = vmatprep.subr.mxu1 %v12544_v63 }
0x34cf   :  { %10264 = vmatmul.mubr.msk.f32.vlgmr.msra.gmra.mxu0 %vm81_vm0, %v12092_v18  ;;  %10276 = vmatprep.subr.mxu0 %v12544_v63 }
0x34d0   :  { %10277 = vmatpush3.msra.mxu0 %v11931_v6  ;;  %10278 = vmatprep.mubr.msk.f32.mxu0 %vm10480_vm1, %v12544_v63 }
0x34d1   :  { %10292 = vmatprep.subr.mxu0 %v12544_v63 }
0x357f   :  { %v12251_v57 = vpop.f32.mrf.mxu0 }
0x3580   :  { %v7238_v17 = vadd.f32 %v12223_v53, %v12251_v57  ;;  %v9116_v53 = vld [vmem:[%s12447_s11 + $0x1] ss:$0 sm:$0xff] }
0x3581   :  { %v10227_v1 = vpop.f32.mrf.mxu0  ;;  %v8212_v61 = vadd.f32 %v9116_v53, %v8202_v45  ;;  %v9130_v45 = vld [vmem:[%s12451_s16 + $0x48] sm:$0xff] }
0x3583   :  { %v8214_v38 = vadd.f32 %v8212_v61, %v12602_v16 }
0x3585   :  { %v8220_v57 = vsel %vm81_vm0, %v8214_v38, 0.0 }
0x3587   :  { %v7318_v52 = vpop.f32.mrf.mxu0 }
0x3588   :  { %v7319_v23 = vadd.f32 %v12587_v24, %v7318_v52 }
0x3589   :  { %v10243_v60 = vpop.f32.mrf.mxu0 }
0x358a   :  { %10269 = vmatmul.mubr.msk.f32.vlgmr.msra.gmra.mxu1 %vm372_vm2, %v7319_v23 }
0x358b   :  { %10273 = vmatprep.mubr.msk.f32.mxu1 %vm10480_vm1, %v12544_v63 }
0x358f   :  { %v7480_v12 = vpop.f32.mrf.mxu0 }
0x3590   :  { %v7481_v6 = vadd.f32 %v11921_v56, %v7480_v12 }
0x3591   :  { %v10265_v0 = vpop.f32.mrf.mxu0 }
0x3592   :  { %10272 = vmatpush3.msra.mxu1 %v7481_v6 }
0x3593   :  { %10281 = vmatprep.subr.mxu1 %v12544_v63 }
0x364a   :  { %v7556_v41 = vpop.f32.mrf.mxu1 }
0x364b   :  { %v7560_v42 = vmul.f32 0.35355338, %v7556_v41 }
0x364c   :  { %v10270_v43 = vpop.f32.mrf.mxu1 }
0x364d   :  { %v7561_v44 = vadd.f32 %v12165_v5, %v7560_v42 }
0x364f   :  { %v7562_v54 = vsel %vm372_vm2, %v7561_v44, -inf }
0x3650   :  { %7563 = vmax.xlane.f32.xlu0 %v7562_v54 }
0x36d9   :  { %v7564_v21 = vpop.xlane.xlu0 %7563 }
0x36da   :  { %v7565_v22 = vsub.f32 %v7561_v44, %v7564_v21  ;;  %v9119_v21 = vld [vmem:[%s12448_s12 + $0x1] ss:$0 sm:$0xff] }
0x36dc   :  { %v7566_v37 = vmul.f32 1.442695, %v7565_v22 }
0x36de   :  { %10455 = vpow2.f32 %v7566_v37  ;;  %v9120_v37 = vld [vmem:[%s12449_s13 + $0x1] ss:$0 sm:$0xff] }
0x36eb   :  { %v10456_v3 = vpop.eup %10455 }
0x36ec   :  { %v7568_v9 = vsel %vm372_vm2, %v10456_v3, 0.0 }
0x36ed   :  { %7569 = vadd.xlane.f32.xlu1 %v7568_v9 }
0x3776   :  { %v7570_v56 = vpop.xlane.xlu1 %7569 }
0x3777   :  { %10457 = vrcp.f32 %v7570_v56 }
0x3784   :  { %v10458_v30 = vpop.eup %10457 }
0x3785   :  { %v7572_v39 = vmul.f32 %v10458_v30, %v10456_v3 }
0x3787   :  { %10274 = vmatmul.mubr.msk.f32.vlgmr.msra.gmra.mxu1 %vm372_vm2, %v7572_v39 }
0x3788   :  { %10282 = vmatpush3.msra.mxu1 %v11938_v25  ;;  %10289 = vmatprep.mubr.msk.f32.mxu1 %vm10480_vm1, %v12544_v63  ;;  %v12591_v25 = vld [vmem:[#allocation13_spill] sm:$0xff] }
0x3789   :  { %10283 = vmatprep.subr.mxu1 %v12544_v63 }
0x378a   :  { %10284 = vmatpush3.msra.mxu1 %v12588_v31 }
0x378b   :  { %10285 = vmatprep.subr.mxu1 %v12544_v63 }
0x378c   :  { %10286 = vmatpush3.msra.mxu1 %v12589_v29 }
0x378d   :  { %10287 = vmatprep.subr.mxu1 %v12544_v63 }
0x378e   :  { %10288 = vmatpush3.msra.mxu1 %v12590_v46 }
0x378f   :  { %10290 = vmatmul.mubr.msk.f32.vlgmr.msra.gmra.mxu1 %vm81_vm0, %v12092_v18  ;;  %10303 = vmatprep.subr.mxu1 %v12544_v63 }
0x3790   :  { %10304 = vmatpush3.msra.mxu1 %v12591_v25  ;;  %10311 = vmatprep.mubr.msk.f32.mxu1 %vm10480_vm1, %v12544_v63 }
0x3791   :  { %10305 = vmatprep.subr.mxu1 %v12544_v63 }
0x3792   :  { %10306 = vmatpush3.msra.mxu1 %v12592_v35 }
0x3793   :  { %10307 = vmatprep.subr.mxu1 %v12544_v63 }
0x3794   :  { %10308 = vmatpush3.msra.mxu1 %v12593_v26 }
0x3795   :  { %10309 = vmatprep.subr.mxu1 %v12544_v63 }
0x3796   :  { %10310 = vmatpush3.msra.mxu1 %v12594_v34 }
0x3797   :  { %10312 = vmatmul.mubr.msk.f32.vlgmr.msra.gmra.mxu1 %vm81_vm0, %v12092_v18  ;;  %10324 = vmatprep.subr.mxu1 %v12544_v63 }
0x3798   :  { %10325 = vmatpush3.msra.mxu1 %v12075_v10  ;;  %10326 = vmatprep.mubr.msk.f32.mxu1 %vm10480_vm1, %v12544_v63 }
0x3847   :  { %v7642_v19 = vpop.f32.mrf.mxu1 }
0x3848   :  { %10279 = vmatmul.mubr.msk.f32.vlgmr.msra.gmra.mxu0 %vm372_vm2, %v7642_v19 }
0x3849   :  { %10293 = vmatpush3.msra.mxu0 %v12595_v33  ;;  %v10275_v40 = vpop.f32.mrf.mxu1  ;;  %10300 = vmatprep.mubr.msk.f32.mxu0 %vm10480_vm1, %v12544_v63 }
0x384a   :  { %10294 = vmatprep.subr.mxu0 %v12544_v63 }
0x384b   :  { %10295 = vmatpush3.msra.mxu0 %v12596_v2 }
0x384c   :  { %10296 = vmatprep.subr.mxu0 %v12544_v63 }
0x384d   :  { %10297 = vmatpush3.msra.mxu0 %v12597_v13 }
0x384e   :  { %10298 = vmatprep.subr.mxu0 %v12544_v63 }
0x384f   :  { %v7798_v10 = vpop.f32.mrf.mxu1  ;;  %10299 = vmatpush3.msra.mxu0 %v12598_v50  ;;  %v9124_v50 = vld [vmem:[%s12450_s14 + $0x38] sm:$0xff] }
0x3850   :  { %10301 = vmatmul.mubr.msk.f32.vlgmr.msra.gmra.mxu0 %vm81_vm0, %v12092_v18  ;;  %10314 = vmatprep.subr.mxu0 %v12544_v63  ;;  %v7799_v47 = vadd.f32 %v12600_v55, %v7798_v10  ;;  %v9134_v55 = vld [vmem:[%s12451_s16 + $0x68] sm:$0xff] }
0x3851   :  { %v10291_v7 = vpop.f32.mrf.mxu1  ;;  %10316 = vmatprep.mubr.msk.f32.mxu0 %vm10480_vm1, %v12544_v63 }
0x3852   :  { %v9122_v7 = vld [vmem:[%s12450_s14 + $0x28] sm:$0xff] }
0x3857   :  { %v7960_v62 = vpop.f32.mrf.mxu1 }
0x3858   :  { %v7961_v36 = vadd.f32 %v12601_v49, %v7960_v62  ;;  %v9121_v62 = vld [vmem:[%s12450_s14 + $0x20] sm:$0xff]  ;;  %v9132_v49 = vld [vmem:[%s12451_s16 + $0x58] sm:$0xff] }
0x3859   :  { %v10313_v15 = vpop.f32.mrf.mxu1 }
0x3908   :  { %v7716_v32 = vpop.f32.mrf.mxu0 }
0x3909   :  { %v7720_v28 = vadd.f32 %v7716_v32, %v7238_v17 }
0x390a   :  { %v10280_v14 = vpop.f32.mrf.mxu0 }
0x3910   :  { %v7879_v8 = vpop.f32.mrf.mxu0 }
0x3911   :  { %v7880_v11 = vadd.f32 %v12599_v27, %v7879_v8 }
0x3912   :  { %v10302_v48 = vpop.f32.mrf.mxu0 }
0x3913   :  { %10315 = vmatpush3.xpose.msk.msra.mxu0 %vm372_vm2, %v7880_v11  ;;  %v9136_v11 = vld [vmem:[%s12451_s16 + $0x78] sm:$0xff]  ;;  %v9135_v48 = vld [vmem:[%s12451_s16 + $0x70] sm:$0xff] }
0x3914   :  { %10319 = vmatprep.subr.mxu0 %v12544_v63  ;;  %10340 = vmatprep.subr.mxu1 %v9136_v11 }
0x3916   :  { %10317 = vmatmul.mubr.msk.f32.vlgmr.msra.gmra.mxu0 %vm372_vm2, %v7799_v47  ;;  %v9133_v47 = vld [vmem:[%s12451_s16 + $0x60] sm:$0xff] }
0x3917   :  { %10320 = vmatpush3.msra.mxu0 %v7961_v36  ;;  %10321 = vmatprep.mubr.msk.f32.mxu0 %vm10480_vm1, %v12544_v63  ;;  %v9131_v36 = vld [vmem:[%s12451_s16 + $0x50] sm:$0xff] }
0x3918   :  { %10329 = vmatprep.subr.mxu0 %v9124_v50 }
0x39d6   :  { %v8036_v58 = vpop.f32.mrf.mxu0 }
0x39d7   :  { %v8040_v59 = vmul.f32 0.35355338, %v8036_v58  ;;  %v9126_v58 = vld [vmem:[%s12452_s15 + $0x1] ss:$0 sm:$0xff] }
0x39d8   :  { %v10318_v51 = vpop.f32.mrf.mxu0 }
0x39d9   :  { %v8041_v20 = vadd.f32 %v12165_v5, %v8040_v59 }
0x39db   :  { %v8042_v4 = vsel %vm372_vm2, %v8041_v20, -inf }
0x39dc   :  { %8043 = vmax.xlane.f32.xlu0 %v8042_v4 }
0x39e0   :  { %8221 = vadd.xlane.f32.xlu0 %v8220_v57 }
0x3a65   :  { %v8044_v63 = vpop.xlane.xlu0 %8043 }
0x3a66   :  { %v8045_v1 = vsub.f32 %v8041_v20, %v8044_v63 }
0x3a68   :  { %v8046_v52 = vmul.f32 1.442695, %v8045_v1 }
0x3a69   :  { %v8222_v24 = vpop.xlane.xlu0 %8221 }
0x3a6a   :  { %10459 = vpow2.f32 %v8046_v52  ;;  %v8226_v23 = vmul.f32 0.03125, %v8222_v24 }
0x3a6c   :  { %v8228_v60 = vsub.f32 %v8214_v38, %v8226_v23 }
0x3a6e   :  { %v8230_v12 = vmul.f32 %v8228_v60, %v8228_v60 }
0x3a70   :  { %v8232_v6 = vsel %vm81_vm0, %v8230_v12, 0.0 }
0x3a71   :  { %8233 = vadd.xlane.f32.xlu0 %v8232_v6 }
0x3a77   :  { %v10460_v5 = vpop.eup %10459 }
0x3a78   :  { %v8048_v0 = vsel %vm372_vm2, %v10460_v5, 0.0 }
0x3a79   :  { %8049 = vadd.xlane.f32.xlu1 %v8048_v0 }
0x3afa   :  { %v8234_v41 = vpop.xlane.xlu0 %8233 }
0x3afb   :  { %v8238_v42 = vmul.f32 0.03125, %v8234_v41 }
0x3afd   :  { %v8240_v43 = vadd.f32 1e-12, %v8238_v42 }
0x3aff   :  { %10461 = vrsqrt.f32 %v8240_v43 }
0x3b02   :  { %v8050_v44 = vpop.xlane.xlu1 %8049 }
0x3b03   :  { %10463 = vrcp.f32 %v8050_v44 }
0x3b0c   :  { %v10462_v54 = vpop.eup %10461 }
0x3b0d   :  { %v8244_v22 = vmul.f32 %v10462_v54, %v8228_v60  ;;  %v9138_v54 = vld [vmem:[%s12453_s17 + $0x1] ss:$0 sm:$0xff] }
0x3b0f   :  { %v8252_v3 = vmul.f32 %v9119_v21, %v8244_v22 }
0x3b10   :  { %v10464_v9 = vpop.eup %10463 }
0x3b11   :  { %v8052_v56 = vmul.f32 %v10464_v9, %v10460_v5  ;;  %v12330_v30 = vadd.f32 %v9120_v37, %v8252_v3 }
0x3b13   :  { %10322 = vmatmul.mubr.msk.f32.vlgmr.msra.gmra.mxu0 %vm372_vm2, %v8052_v56 }
0x3b14   :  { %10337 = vmatprep.mubr.msk.f32.mxu0 %vm81_vm0, %v12330_v30  ;;  %10330 = vmatpush3.msra.mxu0 %v9124_v50  ;;  %v8520_v50 = vld [vmem:[%s12456_s20] sm:$0xff] }
0x3bd3   :  { %v8122_v39 = vpop.f32.mrf.mxu0 }
0x3bd4   :  { %10327 = vmatmul.mubr.msk.f32.vlgmr.msra.gmra.mxu1 %vm372_vm2, %v8122_v39 }
0x3bd5   :  { %v10323_v31 = vpop.f32.mrf.mxu0  ;;  %10341 = vmatpush3.msra.mxu1 %v9136_v11 }
0x3bd6   :  { %10342 = vmatprep.subr.mxu1 %v9135_v48 }
0x3bd7   :  { %10343 = vmatpush3.msra.mxu1 %v9135_v48 }
0x3bd8   :  { %10344 = vmatprep.subr.mxu1 %v9134_v55 }
0x3bd9   :  { %10345 = vmatpush3.msra.mxu1 %v9134_v55  ;;  %v9144_v55 = vld [vmem:[%s12455_s19 + $0x1] ss:$0 sm:$0xff] }
0x3bda   :  { %10346 = vmatprep.subr.mxu1 %v9133_v47 }
0x3bdb   :  { %10347 = vmatpush3.msra.mxu1 %v9133_v47 }
0x3bdc   :  { %10348 = vmatprep.subr.mxu1 %v9132_v49 }
0x3bdd   :  { %10349 = vmatpush3.msra.mxu1 %v9132_v49 }
0x3bde   :  { %10350 = vmatprep.subr.mxu1 %v9131_v36 }
0x3bdf   :  { %10351 = vmatpush3.msra.mxu1 %v9131_v36 }
0x3be0   :  { %10352 = vmatprep.subr.mxu1 %v9130_v45 }
0x3be1   :  { %10353 = vmatpush3.msra.mxu1 %v9130_v45  ;;  %v8617_v45 = vld [vmem:[%s12457_s22 + $0x18] sm:$0xff] }
0x3c94   :  { %v8196_v29 = vpop.f32.mrf.mxu1 }
0x3c95   :  { %v8200_v46 = vadd.f32 %v8196_v29, %v7720_v28 }
0x3c96   :  { %v10328_v25 = vpop.f32.mrf.mxu1 }
0x3c97   :  { %8201 = vst.msk [vmem:[#allocation2 + $0x8] sm:$0xff] %vm81_vm0, %v8200_v46 }
0x3c9e   :  { %v8203_v35 = vld [vmem:[#allocation2 + $0x8] sm:$0xff] }
0x3c9f   :  { %v8213_v26 = vadd.f32 %v9116_v53, %v8203_v35  ;;  %v9129_v53 = vld [vmem:[%s12451_s16 + $0x40] sm:$0xff] }
0x3ca0   :  { %10354 = vmatprep.subr.mxu1 %v9129_v53 }
0x3ca1   :  { %v8215_v34 = vadd.f32 %v8213_v26, %v12092_v18  ;;  %v9123_v18 = vld [vmem:[%s12450_s14 + $0x30] sm:$0xff]  ;;  %10355 = vmatpush3.msra.mxu1 %v9129_v53 }
0x3ca2   :  { %10331 = vmatprep.subr.mxu0 %v9123_v18  ;;  %v8616_v53 = vld [vmem:[%s12457_s22 + $0x10] sm:$0xff] }
0x3ca3   :  { %v8223_v19 = vsel %vm81_vm0, %v8215_v34, 0.0  ;;  %10332 = vmatpush3.msra.mxu0 %v9123_v18 }
0x3ca4   :  { %8224 = vadd.xlane.f32.xlu1 %v8223_v19  ;;  %10333 = vmatprep.subr.mxu0 %v9122_v7 }
0x3ca5   :  { %10334 = vmatpush3.msra.mxu0 %v9122_v7 }
0x3ca6   :  { %10335 = vmatprep.subr.mxu0 %v9121_v62 }
0x3ca7   :  { %10336 = vmatpush3.msra.mxu0 %v9121_v62 }
0x3d2d   :  { %v8225_v33 = vpop.xlane.xlu1 %8224 }
0x3d2e   :  { %v8227_v40 = vmul.f32 0.03125, %v8225_v33 }
0x3d30   :  { %v8229_v2 = vsub.f32 %v8215_v34, %v8227_v40 }
0x3d32   :  { %v8231_v13 = vmul.f32 %v8229_v2, %v8229_v2 }
0x3d34   :  { %v8235_v10 = vsel %vm81_vm0, %v8231_v13, 0.0  ;;  %v8522_v13 = vld [vmem:[%s12456_s20 + $0x10] sm:$0xff] }
0x3d35   :  { %8236 = vadd.xlane.f32.xlu1 %v8235_v10  ;;  %v8521_v10 = vld [vmem:[%s12456_s20 + $0x8] sm:$0xff] }
0x3dbe   :  { %v8237_v15 = vpop.xlane.xlu1 %8236 }
0x3dbf   :  { %v8239_v17 = vmul.f32 0.03125, %v8237_v15 }
0x3dc1   :  { %v8241_v32 = vadd.f32 1e-12, %v8239_v17 }
0x3dc3   :  { %10465 = vrsqrt.f32 %v8241_v32 }
0x3dd0   :  { %v10466_v28 = vpop.eup %10465 }
0x3dd1   :  { %v8245_v14 = vmul.f32 %v10466_v28, %v8229_v2 }
0x3dd3   :  { %v8253_v8 = vmul.f32 %v9119_v21, %v8245_v14  ;;  %v9143_v14 = vld [vmem:[%s12454_s18 + $0x1] ss:$0 sm:$0xff] }
0x3dd5   :  { %v8261_v27 = vadd.f32 %v9120_v37, %v8253_v8 }
0x3dd7   :  { %10338 = vmatmul.mubr.msk.f32.vlgmr.msra.gmra.mxu0 %vm81_vm0, %v8261_v27 }
0x3e97   :  { %v10339_v59 = vpop.f32.mrf.mxu0 }
0x3e98   :  { %v8353_v61 = vadd.f32 %v10339_v59, %v9126_v58  ;;  %v8614_v59 = vld [vmem:[%s12457_s22] sm:$0xff] }
0x3e99   :  { %v8347_v51 = vpop.f32.mrf.mxu0 }
0x3e9a   :  { %v8359_v20 = vmul.f32 0.044715, %v8353_v61  ;;  %v8348_v4 = vadd.f32 %v9126_v58, %v8347_v51  ;;  %v8357_v42 = vmul.f32 0.5, %v8353_v61  ;;  %v8615_v58 = vld [vmem:[%s12457_s22 + $0x8] sm:$0xff] }
0x3e9c   :  { %v8361_v16 = vmul.f32 %v8359_v20, %v8353_v61  ;;  %v8358_v38 = vmul.f32 0.044715, %v8348_v4  ;;  %v8356_v0 = vmul.f32 0.5, %v8348_v4 }
0x3e9e   :  { %v8363_v57 = vmul.f32 %v8361_v16, %v8353_v61  ;;  %v8360_v63 = vmul.f32 %v8358_v38, %v8348_v4 }
0x3ea0   :  { %v8365_v1 = vadd.f32 %v8363_v57, %v8353_v61  ;;  %v8362_v52 = vmul.f32 %v8360_v63, %v8348_v4  ;;  %v9145_v61 = vld [vmem:[%s12458_s21] ss:$0 sm:$0xff] }
0x3ea1   :  { %v9148_v63 = vld [vmem:[%s12459_s23] ss:$0 sm:$0xff] }
0x3ea2   :  { %v8367_v24 = vmul.f32 0.7978846, %v8365_v1  ;;  %v8364_v23 = vadd.f32 %v8362_v52, %v8348_v4 }
0x3ea4   :  { %10467 = vtanh.f32 %v8367_v24  ;;  %v8366_v60 = vmul.f32 0.7978846, %v8364_v23 }
0x3ea6   :  { %10469 = vtanh.f32 %v8366_v60 }
0x3eb1   :  { %v10468_v12 = vpop.eup %10467 }
0x3eb2   :  { %v8371_v5 = vadd.f32 1.0, %v10468_v12 }
0x3eb3   :  { %v10470_v6 = vpop.eup %10469 }
0x3eb4   :  { %v8370_v41 = vadd.f32 1.0, %v10470_v6  ;;  %v8373_v44 = vmul.f32 %v8371_v5, %v8357_v42 }
0x3eb6   :  { %v8372_v43 = vmul.f32 %v8370_v41, %v8356_v0 }
0x3eb8   :  { %10356 = vmatprep.mubr.msk.f32.mxu1 %vm4188_vm3, %v8372_v43 }
0x3eb9   :  { %10357 = vmatmul.mubr.msk.f32.vlgmr.msra.gmra.mxu1 %vm4188_vm3, %v8373_v44 }
0x3f79   :  { %v10358_v21 = vpop.f32.mrf.mxu1 }
0x3f7a   :  { %v8469_v22 = vadd.f32 %v10358_v21, %v9138_v54 }
0x3f7b   :  { %v8463_v37 = vpop.f32.mrf.mxu1 }
0x3f7c   :  { %v8464_v3 = vadd.f32 %v9138_v54, %v8463_v37  ;;  %v8473_v9 = vadd.f32 %v8469_v22, %v8261_v27 }
0x3f7e   :  { %v8481_v56 = vsel %vm81_vm0, %v8473_v9, 0.0  ;;  %v8472_v39 = vadd.f32 %v8464_v3, %v12330_v30  ;;  %v8523_v30 = vld [vmem:[%s12456_s20 + $0x18] sm:$0xff] }
0x3f7f   :  { %8482 = vadd.xlane.f32.xlu1 %v8481_v56  ;;  %10359 = vmatprep.subr.mxu0 %v8523_v30 }
0x3f80   :  { %v8478_v31 = vsel %vm81_vm0, %v8472_v39, 0.0  ;;  %10360 = vmatpush3.msra.mxu0 %v8523_v30 }
0x3f81   :  { %8479 = vadd.xlane.f32.xlu0 %v8478_v31  ;;  %10361 = vmatprep.subr.mxu0 %v8522_v13 }
0x3f82   :  { %10362 = vmatpush3.msra.mxu0 %v8522_v13 }
0x3f83   :  { %10363 = vmatprep.subr.mxu0 %v8521_v10 }
0x3f84   :  { %10364 = vmatpush3.msra.mxu0 %v8521_v10 }
0x3f85   :  { %10365 = vmatprep.subr.mxu0 %v8520_v50 }
0x3f86   :  { %10366 = vmatpush3.msra.mxu0 %v8520_v50 }
0x3f87   :  { %10370 = vmatprep.subr.mxu0 %v8617_v45 }
0x4008   :  { %v8483_v29 = vpop.xlane.xlu1 %8482 }
0x4009   :  { %v8485_v46 = vmul.f32 0.03125, %v8483_v29 }
0x400a   :  { %v8480_v25 = vpop.xlane.xlu0 %8479 }
0x400b   :  { %v8487_v35 = vsub.f32 %v8473_v9, %v8485_v46  ;;  %v8484_v26 = vmul.f32 0.03125, %v8480_v25 }
0x400d   :  { %v8486_v34 = vsub.f32 %v8472_v39, %v8484_v26  ;;  %v8489_v19 = vmul.f32 %v8487_v35, %v8487_v35 }
0x400f   :  { %v8493_v33 = vsel %vm81_vm0, %v8489_v19, 0.0  ;;  %v8488_v40 = vmul.f32 %v8486_v34, %v8486_v34 }
0x4010   :  { %8494 = vadd.xlane.f32.xlu1 %v8493_v33 }
0x4011   :  { %v8490_v2 = vsel %vm81_vm0, %v8488_v40, 0.0 }
0x4012   :  { %8491 = vadd.xlane.f32.xlu0 %v8490_v2 }
0x4099   :  { %v8495_v18 = vpop.xlane.xlu1 %8494 }
0x409a   :  { %v8497_v7 = vmul.f32 0.03125, %v8495_v18 }
0x409b   :  { %v8492_v62 = vpop.xlane.xlu0 %8491 }
0x409c   :  { %v8499_v15 = vadd.f32 1e-12, %v8497_v7  ;;  %v8496_v17 = vmul.f32 0.03125, %v8492_v62 }
0x409e   :  { %10471 = vrsqrt.f32 %v8499_v15  ;;  %v8498_v32 = vadd.f32 1e-12, %v8496_v17 }
0x40a0   :  { %10473 = vrsqrt.f32 %v8498_v32 }
0x40ab   :  { %v10472_v28 = vpop.eup %10471 }
0x40ac   :  { %v8503_v8 = vmul.f32 %v10472_v28, %v8487_v35 }
0x40ad   :  { %v10474_v27 = vpop.eup %10473 }
0x40ae   :  { %v8502_v11 = vmul.f32 %v10474_v27, %v8486_v34  ;;  %v8511_v48 = vmul.f32 %v9143_v14, %v8503_v8 }
0x40b0   :  { %v8510_v47 = vmul.f32 %v9143_v14, %v8502_v11  ;;  %v8519_v36 = vadd.f32 %v9144_v55, %v8511_v48 }
0x40b2   :  { %v8518_v49 = vadd.f32 %v9144_v55, %v8510_v47 }
0x40b4   :  { %10367 = vmatprep.mubr.msk.f32.mxu0 %vm81_vm0, %v8518_v49 }
0x40b5   :  { %10368 = vmatmul.mubr.msk.f32.vlgmr.msra.gmra.mxu0 %vm81_vm0, %v8519_v36 }
0x40b6   :  { %10371 = vmatpush3.msra.mxu0 %v8617_v45 }
0x40b7   :  { %10372 = vmatprep.subr.mxu0 %v8616_v53 }
0x40b8   :  { %10373 = vmatpush3.msra.mxu0 %v8616_v53 }
0x40b9   :  { %10374 = vmatprep.subr.mxu0 %v8615_v58 }
0x40ba   :  { %10375 = vmatpush3.msra.mxu0 %v8615_v58 }
0x40bb   :  { %10376 = vmatprep.subr.mxu0 %v8614_v59 }
0x40bc   :  { %10377 = vmatpush3.msra.mxu0 %v8614_v59 }
0x4175   :  { %v10369_v51 = vpop.f32.mrf.mxu0 }
0x4176   :  { %v8609_v20 = vadd.f32 %v10369_v51, %v9145_v61 }
0x4177   :  { %v8603_v4 = vpop.f32.mrf.mxu0 }
0x4178   :  { %v8604_v16 = vadd.f32 %v9145_v61, %v8603_v4 }
0x417a   :  { %10475 = vtanh.f32 %v8604_v16 }
0x417b   :  { %10477 = vtanh.f32 %v8609_v20 }
0x4187   :  { %v10476_v38 = vpop.eup %10475 }
0x4188   :  { %v10478_v57 = vpop.eup %10477  ;;  %10378 = vmatprep.mubr.msk.f32.mxu0 %vm81_vm0, %v10476_v38 }
0x4189   :  { %10379 = vmatmul.mubr.msk.f32.vlgmr.msra.gmra.mxu0 %vm81_vm0, %v10478_v57 }
0x4249   :  { %v10380_v1 = vpop.f32.mrf.mxu0 }
0x424a   :  { %v8703_v52 = vadd.f32 %v10380_v1, %v9148_v63 }
0x424b   :  { %v8697_v24 = vpop.f32.mrf.mxu0 }
0x424c   :  { %8707 = vst [vmem:[%s12460_s24 + $0x8] sm:$0xff] %v8703_v52  ;;  %v8698_v23 = vadd.f32 %v9148_v63, %v8697_v24 }
0x424e   :  { %8706 = vst [vmem:[%s12460_s24] sm:$0xff] %v8698_v23 }

</bundles_post_ra>
